<compile_context>
chip_gen: v6e
topology: v6e:2x2x1
jax: 0.10.0
libtpu: 0.0.40
codegen_flags: <defaults>
</compile_context>

<pallas_src>
import jax
import jax.numpy as jnp
from jax import lax
from jax.experimental import pallas as pl
from jax.experimental.pallas import tpu as pltpu


def _full_spec(shape):
    return pl.BlockSpec(shape, lambda i, _s=shape: (0,) * len(_s))


# ----------------------------- fused BiLSTM kernel ----------------------------
def bilstm_kernel(x_ref, wih_ref, whh_ref, b_ref, out_rev_ref, out_rep_ref):
    """Fused bidirectional LSTM over BOTH sequences (review + reply, shared weights).

    x_ref   : (T, 4B, D) bf16, time-major. Rows: [review_fwd | reply_fwd |
              review_bwd(time-reversed) | reply_bwd(time-reversed)], zero-padded to T.
    wih_ref : (D, 4H) bf16, packed input->gate weights, per-gate layout [fwd | bwd]
    whh_ref : (H, 4H) bf16, packed recurrent weights (block-diag over directions)
    b_ref   : (1, 4H) f32, packed pre-summed bias
    out_rev_ref : (B, Lrev, H)  [:, :, :H/2] forward hidden, [:, :, H/2:] backward
    out_rep_ref : (B, Lrep, H)
    """
    T, R, D = x_ref.shape
    B, Lrev, H = out_rev_ref.shape
    Lrep = out_rep_ref.shape[1]
    Hh = H // 2
    G = 4 * H
    NR = R // 2                                     # 2B state rows: [review | reply]

    # Hoisted input projection: ONE bf16 MXU matmul for all sequences/directions.
    gx = jnp.dot(x_ref[...].reshape(T * R, D), wih_ref[...],
                 preferred_element_type=jnp.float32) + b_ref[...]
    gx = gx.reshape(T, R, G)                        # time-major -> cheap per-step slices

    whh = whh_ref[...]                              # bf16 (H, 4H), hoisted load
    col = lax.broadcasted_iota(jnp.int32, (NR, G), 1)
    fwd_mask = (col % H) < Hh                       # fwd lanes within each gate block
    half = lax.broadcasted_iota(jnp.int32, (B, H), 1) < Hh

    h = jnp.zeros((NR, H), jnp.float32)             # [review | reply], [fwd | bwd] lanes
    c = jnp.zeros((NR, H), jnp.float32)
    h_list = []

    # TODO(synk): for long T switch to lax.fori_loop(..., unroll=k) + a VMEM h-buffer
    # to bound vreg live ranges; static unroll is fine at these sequence lengths.
    for s in range(T):
        gx_s = jnp.where(fwd_mask, gx[s, 0:NR, :], gx[s, NR:R, :])
        gates = gx_s + jnp.dot(h.astype(jnp.bfloat16), whh,
                               preferred_element_type=jnp.float32)
        i_g = jax.nn.sigmoid(gates[:, 0:H])
        f_g = jax.nn.sigmoid(gates[:, H:2 * H])
        g_g = jnp.tanh(gates[:, 2 * H:3 * H])
        o_g = jax.nn.sigmoid(gates[:, 3 * H:4 * H])
        c = f_g * c + i_g * g_g
        h = o_g * jnp.tanh(c)
        h_list.append(h)

    # Single stacked writeback per output (no per-step half-lane masked stores).
    # fwd lanes come from step t, bwd lanes from step len-1-t (bwd input was reversed).
    out_rev_ref[...] = jnp.stack(
        [jnp.where(half, h_list[t][0:B], h_list[Lrev - 1 - t][0:B])
         for t in range(Lrev)], axis=1)
    out_rep_ref[...] = jnp.stack(
        [jnp.where(half, h_list[t][B:2 * B], h_list[Lrep - 1 - t][B:2 * B])
         for t in range(Lrep)], axis=1)


def pack_bilstm_params(p):
    """Pack separate fwd/bwd LSTM weights into the fused 128-lane layout.

    Gate-major layout with per-gate direction interleave:
      columns [g*H : g*H + Hh]     -> forward gate g   (g in i,f,g,o)
      columns [g*H + Hh : (g+1)*H] -> backward gate g
    whh is block-structured so that h = [h_fwd | h_bwd] feeds only its own direction.
    """
    Hh = p["whh_f"].shape[0]
    H = 2 * Hh

    def interleave_cols(wf, wb):
        rows = wf.shape[0]
        wf4 = wf.reshape(rows, 4, Hh)
        wb4 = wb.reshape(rows, 4, Hh)
        return jnp.concatenate([wf4, wb4], axis=-1).reshape(rows, 4 * H)

    wih = interleave_cols(p["wih_f"], p["wih_b"])          # (D, 4H)
    b = interleave_cols(p["b_f"], p["b_b"])                # (1, 4H)

    whh_f4 = p["whh_f"].reshape(Hh, 4, Hh)
    whh_b4 = p["whh_b"].reshape(Hh, 4, Hh)
    zeros = jnp.zeros_like(whh_f4)
    top = jnp.concatenate([whh_f4, zeros], axis=-1)        # rows = h_fwd
    bot = jnp.concatenate([zeros, whh_b4], axis=-1)        # rows = h_bwd
    whh = jnp.concatenate([top, bot], axis=0).reshape(H, 4 * H)
    return wih, whh, b


def bilstm_encode_pair(review, reply, wih_bf, whh_bf, b):
    """Encode review (B,Lrev,D) and reply (B,Lrep,D) with ONE fused pallas_call."""
    B, Lrev, D = review.shape
    _, Lrep, _ = reply.shape
    T = max(Lrev, Lrep)
    H = whh_bf.shape[0]

    def pad_t(x):
        return jnp.pad(x, ((0, 0), (0, T - x.shape[1]), (0, 0)))

    x_fwd = jnp.concatenate([pad_t(review), pad_t(reply)], axis=0)              # (2B,T,D)
    x_bwd = jnp.concatenate([pad_t(review[:, ::-1]), pad_t(reply[:, ::-1])], axis=0)
    x_all = jnp.transpose(jnp.concatenate([x_fwd, x_bwd], axis=0),
                          (1, 0, 2)).astype(jnp.bfloat16)                       # (T,4B,D)

    # TODO(synk): on v7x shard a leading batch grid axis across the 2 TensorCores.
    return pl.pallas_call(
        bilstm_kernel,
        grid=(1,),
        out_shape=(jax.ShapeDtypeStruct((B, Lrev, H), jnp.float32),
                   jax.ShapeDtypeStruct((B, Lrep, H), jnp.float32)),
        in_specs=[_full_spec(x_all.shape), _full_spec(wih_bf.shape),
                  _full_spec(whh_bf.shape), _full_spec(b.shape)],
        out_specs=(_full_spec((B, Lrev, H)), _full_spec((B, Lrep, H))),
    )(x_all, wih_bf, whh_bf, b)


# --------------------------- fused RelGraphConv kernel -------------------------
def relgcn_kernel(av2v_ref, ab2v_ref, aslrev_ref, ab2b_ref, av2b_ref, aslrep_ref,
                  xrev_ref, xrep_ref, w_ref, b_ref, hrev_ref, hrep_ref):
    # All MXU operands bf16, accumulation f32. Per-relation products are SUMMED
    # (no lane-axis concatenation / relayouts).
    xrev = xrev_ref[...]                 # bf16
    xrep = xrep_ref[...]                 # bf16
    w = w_ref[...]                       # bf16 (8, H, H)
    b = b_ref[...]                       # f32  (1, H)

    def rel(a_ref, x_bf, wi):
        m = jnp.dot(a_ref[...], x_bf, preferred_element_type=jnp.float32)
        return jnp.dot(m.astype(jnp.bfloat16), w[wi], preferred_element_type=jnp.float32)

    # destination 'rev' <- {v2v(rev), b2v(rep), sl-rev(rev)} + self loop
    h_rev = (rel(av2v_ref, xrev, 0) + rel(ab2v_ref, xrep, 1) + rel(aslrev_ref, xrev, 2)
             + jnp.dot(xrev, w[3], preferred_element_type=jnp.float32) + b)
    hrev_ref[...] = jnp.maximum(h_rev, 0.0)           # ReLU (dropout = identity)

    # destination 'rep' <- {b2b(rep), v2b(rev), sl-rep(rep)} + self loop
    h_rep = (rel(ab2b_ref, xrep, 4) + rel(av2b_ref, xrev, 5) + rel(aslrep_ref, xrep, 6)
             + jnp.dot(xrep, w[7], preferred_element_type=jnp.float32) + b)
    hrep_ref[...] = jnp.maximum(h_rep, 0.0)


def relgcn_both(adj_bf, x_rev_bf, x_rep_bf, w_stack_bf, bias):
    # TODO(synk): for large graphs (B*L in the thousands) tile with a
    # (dst_tile, src_tile) grid + f32 accumulator (128-row tiles on v5e, 'parallel'
    # dst axis for v7x's 2 TCs) instead of full-array specs — six O(N^2) adjacencies
    # will not fit v7x's 64 MiB VMEM.
    Nrev, H = x_rev_bf.shape
    Nrep = x_rep_bf.shape[0]
    return pl.pallas_call(
        relgcn_kernel,
        grid=(1,),
        out_shape=(jax.ShapeDtypeStruct((Nrev, H), jnp.float32),
                   jax.ShapeDtypeStruct((Nrep, H), jnp.float32)),
        in_specs=[_full_spec(adj_bf["v2v"].shape), _full_spec(adj_bf["b2v"].shape),
                  _full_spec(adj_bf["sl-rev"].shape), _full_spec(adj_bf["b2b"].shape),
                  _full_spec(adj_bf["v2b"].shape), _full_spec(adj_bf["sl-rep"].shape),
                  _full_spec(x_rev_bf.shape), _full_spec(x_rep_bf.shape),
                  _full_spec(w_stack_bf.shape), _full_spec(bias.shape)],
        out_specs=(_full_spec((Nrev, H)), _full_spec((Nrep, H))),
        compiler_params=pltpu.CompilerParams(vmem_limit_bytes=32 * 1024 * 1024),
    )(adj_bf["v2v"], adj_bf["b2v"], adj_bf["sl-rev"], adj_bf["b2b"], adj_bf["v2b"],
      adj_bf["sl-rep"], x_rev_bf, x_rep_bf, w_stack_bf, bias)


# ------------- table encoder (RoPE + linear + ReLU + residual + LN) ------------
def table_kernel(rev_ref, rep_ref, cosv_ref, sinv_ref, cosp_ref, sinp_ref, rot_ref,
                 wtopt_ref, wbot_ref, b_ref, table_ref, gammat_ref, betat_ref,
                 mavg_ref, out_ref):
    """Per-batch table cell: output is lane-dense (Lrev, Lrep*H)."""
    Lrep, H = rep_ref.shape[1], rep_ref.shape[2]
    rev = rev_ref[0]                                              # (Lrev, H)
    rep = rep_ref[0]                                              # (Lrep, H)

    # Fused RoPE: rotate-half as a signed-permutation matmul on the MXU.
    rot = rot_ref[...]
    rev_r = rev * cosv_ref[...] + jnp.dot(rev, rot, preferred_element_type=jnp.float32) * sinv_ref[...]
    rep_r = rep * cosp_ref[...] + jnp.dot(rep, rot, preferred_element_type=jnp.float32) * sinp_ref[...]

    # cat(rev_i, rep_j) @ W + b == rev_i @ Wtop + rep_j @ Wbot + b, built directly in
    # the lane-dense layout: review part uses a pre-tiled (H, Lrep*H) weight.
    p = jnp.dot(rev_r, wtopt_ref[...], preferred_element_type=jnp.float32)   # (Lrev, Lrep*H)
    q = jnp.dot(rep_r, wbot_ref[...], preferred_element_type=jnp.float32) + b_ref[...]  # (Lrep, H)
    q_flat = jnp.concatenate([q[j:j + 1, :] for j in range(Lrep)], axis=1)   # (1, Lrep*H)

    x = jnp.maximum(p + q_flat, 0.0) + table_ref[0]               # ReLU + residual

    # LayerNorm over each H-wide lane chunk via a block-diagonal averaging matmul
    # (idle MXU, no reshapes crossing the lane axis).
    mavg = mavg_ref[...]
    mean = jnp.dot(x, mavg, preferred_element_type=jnp.float32)
    xc = x - mean
    var = jnp.dot(xc * xc, mavg, preferred_element_type=jnp.float32)
    y = xc * lax.rsqrt(var + 1e-5)
    out_ref[0] = y * gammat_ref[...] + betat_ref[...]             # (Lrev, Lrep*H)


def table_grid(rev, rep, prep, table_input):
    B, Lrev, H = rev.shape
    _, Lrep, _ = rep.shape
    LH = Lrep * H
    table2d = table_input.reshape(B, Lrev, LH)          # free: same row-major layout
    # TODO(synk): tile the Lrev axis too if Lrev*Lrep*H approaches v7x VMEM limits.
    out = pl.pallas_call(
        table_kernel,
        grid=(B,),
        out_shape=jax.ShapeDtypeStruct((B, Lrev, LH), jnp.float32),
        in_specs=[
            pl.BlockSpec((1, Lrev, H), lambda b: (b, 0, 0)),
            pl.BlockSpec((1, Lrep, H), lambda b: (b, 0, 0)),
            pl.BlockSpec((Lrev, H), lambda b: (0, 0)),
            pl.BlockSpec((Lrev, H), lambda b: (0, 0)),
            pl.BlockSpec((Lrep, H), lambda b: (0, 0)),
            pl.BlockSpec((Lrep, H), lambda b: (0, 0)),
            pl.BlockSpec((H, H), lambda b: (0, 0)),
            pl.BlockSpec((H, LH), lambda b: (0, 0)),
            pl.BlockSpec((H, H), lambda b: (0, 0)),
            pl.BlockSpec((1, H), lambda b: (0, 0)),
            pl.BlockSpec((1, Lrev, LH), lambda b: (b, 0, 0)),
            pl.BlockSpec((1, LH), lambda b: (0, 0)),
            pl.BlockSpec((1, LH), lambda b: (0, 0)),
            pl.BlockSpec((LH, LH), lambda b: (0, 0)),
        ],
        out_specs=pl.BlockSpec((1, Lrev, LH), lambda b: (b, 0, 0)),
        compiler_params=pltpu.CompilerParams(dimension_semantics=("parallel",)),
    )(rev, rep, prep["cos_v"], prep["sin_v"], prep["cos_p"], prep["sin_p"],
      prep["rot"], prep["wtop_tiled"], prep["w_bot"], prep["tbl_b"],
      table2d, prep["gamma_t"], prep["beta_t"], prep["mavg"])
    return out.reshape(B, Lrev, Lrep, H)


# ------------------------------ prep (done ONCE) --------------------------------
def rope_tables(L, H):
    """cos/sin tables matching the PyTorch rotary_position_embedding exactly."""
    pos = jnp.arange(L, dtype=jnp.float32)[:, None]
    idx = jnp.arange(H // 2, dtype=jnp.float32)
    theta = jnp.power(10000.0, -2.0 * idx / H)
    ang = pos * theta                                   # (L, H/2)
    cos = jnp.repeat(jnp.cos(ang), 2, axis=-1)          # (L, H)
    sin = jnp.repeat(jnp.sin(ang), 2, axis=-1)
    return cos, sin


def rot_half_matrix(H):
    """Signed permutation R s.t. (x @ R)[2k] = -x[2k+1], (x @ R)[2k+1] = x[2k]."""
    idx = jnp.arange(H // 2)
    R = jnp.zeros((H, H), jnp.float32)
    R = R.at[2 * idx + 1, 2 * idx].set(-1.0)
    R = R.at[2 * idx, 2 * idx + 1].set(1.0)
    return R


def right_norm(a):
    """DGL GraphConv norm='right': divide aggregated message by in-degree (clamp min 1)."""
    deg = jnp.clip(jnp.sum(a, axis=1, keepdims=True), 1.0, None)
    return a / deg


def prepare_joint_params(params, adj, Lrev, Lrep):
    """Input-independent packing / casting, hoisted out of the per-call path."""
    H = params["gcn_loop"].shape[0]
    wih, whh, b_lstm = pack_bilstm_params(params["lstm"])
    W = params["gcn_w"]           # (6,H,H): ['v2v','b2b','v2b','b2v','sl-rep','sl-rev']
    Wl = params["gcn_loop"]
    # order: [rev: v2v, b2v, sl-rev, loop | rep: b2b, v2b, sl-rep, loop]
    gcn_w_stack = jnp.stack([W[0], W[3], W[5], Wl, W[1], W[2], W[4], Wl],
                            axis=0).astype(jnp.bfloat16)
    cos_v, sin_v = rope_tables(Lrev, H)
    cos_p, sin_p = rope_tables(Lrep, H)
    w_top = params["tbl_w"][:H]
    w_bot = params["tbl_w"][H:]
    mavg = jnp.kron(jnp.eye(Lrep, dtype=jnp.float32),
                    jnp.full((H, H), 1.0 / H, jnp.float32))       # (Lrep*H, Lrep*H)
    return {
        "wih": wih.astype(jnp.bfloat16), "whh": whh.astype(jnp.bfloat16),
        "b_lstm": b_lstm,
        "gcn_w_stack": gcn_w_stack, "gcn_bias": params["gcn_bias"],
        "adj": {k: v.astype(jnp.bfloat16) for k, v in adj.items()},
        "cos_v": cos_v, "sin_v": sin_v, "cos_p": cos_p, "sin_p": sin_p,
        "rot": rot_half_matrix(H),
        "wtop_tiled": jnp.tile(w_top, (1, Lrep)), "w_bot": w_bot,
        "tbl_b": params["tbl_b"],
        "gamma_t": jnp.tile(params["ln_gamma"], (1, Lrep)),
        "beta_t": jnp.tile(params["ln_beta"], (1, Lrep)),
        "mavg": mavg,
    }


# ------------------------------ forward (jitted) --------------------------------
def joint_module_forward(review_input, reply_input, table_input,
                         review_seq_lens, reply_seq_lens, prep):
    # TODO(synk): review_seq_lens / reply_seq_lens are unused (full lengths assumed).
    del review_seq_lens, reply_seq_lens
    B, Lrev, _ = review_input.shape
    _, Lrep, _ = reply_input.shape
    H = prep["whh"].shape[0]

    # Fused BiLSTM (lstm_share_param=True): one launch for both sequences.
    review_lstm, reply_lstm = bilstm_encode_pair(
        review_input.astype(jnp.float32), reply_input.astype(jnp.float32),
        prep["wih"], prep["whh"], prep["b_lstm"])

    x_rev = review_lstm.reshape(-1, H).astype(jnp.bfloat16)
    x_rep = reply_lstm.reshape(-1, H).astype(jnp.bfloat16)

    h_rev, h_rep = relgcn_both(prep["adj"], x_rev, x_rep,
                               prep["gcn_w_stack"], prep["gcn_bias"])

    # single GCN layer -> mean over the 1-element stack is identity
    review_gcn = h_rev.reshape(B, Lrev, H)
    reply_gcn = h_rep.reshape(B, Lrep, H)

    grid_feature = table_grid(review_gcn, reply_gcn, prep, table_input)
    return review_gcn, reply_gcn, grid_feature


joint_module_forward_jit = jax.jit(joint_module_forward)


# ---------------------------------- main ---------------------------------------
if __name__ == "__main__":
    B, Lrev, Lrep = 2, 10, 8
    D_in, H = 48, 32
    Hh = H // 2

    key = jax.random.PRNGKey(0)
    ks = jax.random.split(key, 20)

    params = {
        "lstm": {
            "wih_f": 0.1 * jax.random.normal(ks[0], (D_in, 4 * Hh), jnp.float32),
            "whh_f": 0.1 * jax.random.normal(ks[1], (Hh, 4 * Hh), jnp.float32),
            "b_f": 0.1 * jax.random.normal(ks[2], (1, 4 * Hh), jnp.float32),
            "wih_b": 0.1 * jax.random.normal(ks[3], (D_in, 4 * Hh), jnp.float32),
            "whh_b": 0.1 * jax.random.normal(ks[4], (Hh, 4 * Hh), jnp.float32),
            "b_b": 0.1 * jax.random.normal(ks[5], (1, 4 * Hh), jnp.float32),
        },
        "gcn_w": 0.2 * jax.random.normal(ks[6], (6, H, H), jnp.float32),
        "gcn_loop": 0.2 * jax.random.normal(ks[7], (H, H), jnp.float32),
        "gcn_bias": jnp.zeros((1, H), jnp.float32),
        "tbl_w": 0.2 * jax.random.normal(ks[8], (2 * H, H), jnp.float32),
        "tbl_b": 0.05 * jax.random.normal(ks[9], (1, H), jnp.float32),
        "ln_gamma": jnp.ones((1, H), jnp.float32),
        "ln_beta": jnp.zeros((1, H), jnp.float32),
    }

    review_input = jax.random.normal(ks[10], (B, Lrev, D_in), jnp.float32)
    reply_input = jax.random.normal(ks[11], (B, Lrep, D_in), jnp.float32)
    table_input = jax.random.normal(ks[12], (B, Lrev, Lrep, H), jnp.float32)
    review_seq_lens = jnp.full((B,), Lrev, jnp.int32)
    reply_seq_lens = jnp.full((B,), Lrep, jnp.int32)

    N_rev, N_rep = B * Lrev, B * Lrep

    def rand_adj(k, n_dst, n_src):
        a = (jax.random.uniform(k, (n_dst, n_src)) < 0.3).astype(jnp.float32)
        return right_norm(a)

    adj = {
        "v2v": rand_adj(ks[13], N_rev, N_rev),
        "b2b": rand_adj(ks[14], N_rep, N_rep),
        "v2b": rand_adj(ks[15], N_rep, N_rev),
        "b2v": rand_adj(ks[16], N_rev, N_rep),
        "sl-rep": rand_adj(ks[17], N_rep, N_rep),
        "sl-rev": rand_adj(ks[18], N_rev, N_rev),
    }

    # One-time prep (weight packing, bf16 casts, RoPE tables, LN tiling, adj cast).
    prep = prepare_joint_params(params, adj, Lrev, Lrep)

    review_gcn, reply_gcn, grid_feature = joint_module_forward_jit(
        review_input, reply_input, table_input,
        review_seq_lens, reply_seq_lens, prep)

    jax.block_until_ready((review_gcn, reply_gcn, grid_feature))
    assert review_gcn.shape == (B, Lrev, H)
    assert reply_gcn.shape == (B, Lrep, H)
    assert grid_feature.shape == (B, Lrev, Lrep, H)
    print("KERNEL_OK")
</pallas_src>

<mosaic_0001>
module attributes {stable_mosaic.version = 11 : i64} {
  func.func @relgcn_kernel(%arg0: i32, %arg1: memref<20x20xbf16, #tpu.memory_space<vmem>>, %arg2: memref<20x16xbf16, #tpu.memory_space<vmem>>, %arg3: memref<20x20xbf16, #tpu.memory_space<vmem>>, %arg4: memref<16x16xbf16, #tpu.memory_space<vmem>>, %arg5: memref<16x20xbf16, #tpu.memory_space<vmem>>, %arg6: memref<16x16xbf16, #tpu.memory_space<vmem>>, %arg7: memref<20x32xbf16, #tpu.memory_space<vmem>>, %arg8: memref<16x32xbf16, #tpu.memory_space<vmem>>, %arg9: memref<8x32x32xbf16, #tpu.memory_space<vmem>>, %arg10: memref<1x32xf32, #tpu.memory_space<vmem>>, %arg11: memref<20x32xf32, #tpu.memory_space<vmem>>, %arg12: memref<16x32xf32, #tpu.memory_space<vmem>>) attributes {dimension_semantics = [#tpu.dimension_semantics<arbitrary>], iteration_bounds = array<i64: 1>, scalar_prefetch = 0 : i64, scratch_operands = 0 : i64, tpu.core_type = #tpu.core_type<tc>, window_params = [{pipeline_mode = #tpu.pipeline_mode<synchronous>, transform_indices = @transform_0, window_bounds = array<i64: 20, 20>}, {pipeline_mode = #tpu.pipeline_mode<synchronous>, transform_indices = @transform_1, window_bounds = array<i64: 20, 16>}, {pipeline_mode = #tpu.pipeline_mode<synchronous>, transform_indices = @transform_2, window_bounds = array<i64: 20, 20>}, {pipeline_mode = #tpu.pipeline_mode<synchronous>, transform_indices = @transform_3, window_bounds = array<i64: 16, 16>}, {pipeline_mode = #tpu.pipeline_mode<synchronous>, transform_indices = @transform_4, window_bounds = array<i64: 16, 20>}, {pipeline_mode = #tpu.pipeline_mode<synchronous>, transform_indices = @transform_5, window_bounds = array<i64: 16, 16>}, {pipeline_mode = #tpu.pipeline_mode<synchronous>, transform_indices = @transform_6, window_bounds = array<i64: 20, 32>}, {pipeline_mode = #tpu.pipeline_mode<synchronous>, transform_indices = @transform_7, window_bounds = array<i64: 16, 32>}, {pipeline_mode = #tpu.pipeline_mode<synchronous>, transform_indices = @transform_8, window_bounds = array<i64: 8, 32, 32>}, {pipeline_mode = #tpu.pipeline_mode<synchronous>, transform_indices = @transform_9, window_bounds = array<i64: 1, 32>}, {pipeline_mode = #tpu.pipeline_mode<synchronous>, transform_indices = @transform_10, window_bounds = array<i64: 20, 32>}, {pipeline_mode = #tpu.pipeline_mode<synchronous>, transform_indices = @transform_11, window_bounds = array<i64: 16, 32>}]} {
    %c0 = arith.constant 0 : index
    %c0_0 = arith.constant 0 : index
    %0 = vector.load %arg7[%c0, %c0_0] : memref<20x32xbf16, #tpu.memory_space<vmem>>, vector<20x32xbf16>
    %c0_1 = arith.constant 0 : index
    %c0_2 = arith.constant 0 : index
    %1 = vector.load %arg8[%c0_1, %c0_2] : memref<16x32xbf16, #tpu.memory_space<vmem>>, vector<16x32xbf16>
    %c0_3 = arith.constant 0 : index
    %c0_4 = arith.constant 0 : index
    %c0_5 = arith.constant 0 : index
    %2 = vector.load %arg9[%c0_3, %c0_4, %c0_5] : memref<8x32x32xbf16, #tpu.memory_space<vmem>>, vector<8x32x32xbf16>
    %c0_6 = arith.constant 0 : index
    %c0_7 = arith.constant 0 : index
    %3 = vector.load %arg10[%c0_6, %c0_7] : memref<1x32xf32, #tpu.memory_space<vmem>>, vector<1x32xf32>
    %c0_8 = arith.constant 0 : index
    %c0_9 = arith.constant 0 : index
    %4 = vector.load %arg1[%c0_8, %c0_9] : memref<20x20xbf16, #tpu.memory_space<vmem>>, vector<20x20xbf16>
    %cst = arith.constant dense<0.000000e+00> : vector<20x32xf32>
    %5 = tpu.matmul %4, %0, %cst {dimension_numbers = #tpu.dot_dimension_numbers<[1], [0], [0], [1], [0, 0, 1, 1], [], []>} : vector<20x20xbf16>, vector<20x32xbf16>, vector<20x32xf32> -> vector<20x32xf32>
    %6 = arith.truncf %5 : vector<20x32xf32> to vector<20x32xbf16>
    %7 = vector.extract_strided_slice %2 {offsets = [0, 0, 0], sizes = [1, 32, 32], strides = [1, 1, 1]} : vector<8x32x32xbf16> to vector<1x32x32xbf16>
    %8 = vector.shape_cast %7 : vector<1x32x32xbf16> to vector<32x32xbf16>
    %cst_10 = arith.constant dense<0.000000e+00> : vector<20x32xf32>
    %9 = tpu.matmul %6, %8, %cst_10 {dimension_numbers = #tpu.dot_dimension_numbers<[1], [0], [0], [1], [0, 0, 1, 1], [], []>} : vector<20x32xbf16>, vector<32x32xbf16>, vector<20x32xf32> -> vector<20x32xf32>
    %c0_11 = arith.constant 0 : index
    %c0_12 = arith.constant 0 : index
    %10 = vector.load %arg2[%c0_11, %c0_12] : memref<20x16xbf16, #tpu.memory_space<vmem>>, vector<20x16xbf16>
    %cst_13 = arith.constant dense<0.000000e+00> : vector<20x32xf32>
    %11 = tpu.matmul %10, %1, %cst_13 {dimension_numbers = #tpu.dot_dimension_numbers<[1], [0], [0], [1], [0, 0, 1, 1], [], []>} : vector<20x16xbf16>, vector<16x32xbf16>, vector<20x32xf32> -> vector<20x32xf32>
    %12 = arith.truncf %11 : vector<20x32xf32> to vector<20x32xbf16>
    %13 = vector.extract_strided_slice %2 {offsets = [1, 0, 0], sizes = [1, 32, 32], strides = [1, 1, 1]} : vector<8x32x32xbf16> to vector<1x32x32xbf16>
    %14 = vector.shape_cast %13 : vector<1x32x32xbf16> to vector<32x32xbf16>
    %cst_14 = arith.constant dense<0.000000e+00> : vector<20x32xf32>
    %15 = tpu.matmul %12, %14, %cst_14 {dimension_numbers = #tpu.dot_dimension_numbers<[1], [0], [0], [1], [0, 0, 1, 1], [], []>} : vector<20x32xbf16>, vector<32x32xbf16>, vector<20x32xf32> -> vector<20x32xf32>
    %16 = arith.addf %9, %15 : vector<20x32xf32>
    %c0_15 = arith.constant 0 : index
    %c0_16 = arith.constant 0 : index
    %17 = vector.load %arg3[%c0_15, %c0_16] : memref<20x20xbf16, #tpu.memory_space<vmem>>, vector<20x20xbf16>
    %cst_17 = arith.constant dense<0.000000e+00> : vector<20x32xf32>
    %18 = tpu.matmul %17, %0, %cst_17 {dimension_numbers = #tpu.dot_dimension_numbers<[1], [0], [0], [1], [0, 0, 1, 1], [], []>} : vector<20x20xbf16>, vector<20x32xbf16>, vector<20x32xf32> -> vector<20x32xf32>
    %19 = arith.truncf %18 : vector<20x32xf32> to vector<20x32xbf16>
    %20 = vector.extract_strided_slice %2 {offsets = [2, 0, 0], sizes = [1, 32, 32], strides = [1, 1, 1]} : vector<8x32x32xbf16> to vector<1x32x32xbf16>
    %21 = vector.shape_cast %20 : vector<1x32x32xbf16> to vector<32x32xbf16>
    %cst_18 = arith.constant dense<0.000000e+00> : vector<20x32xf32>
    %22 = tpu.matmul %19, %21, %cst_18 {dimension_numbers = #tpu.dot_dimension_numbers<[1], [0], [0], [1], [0, 0, 1, 1], [], []>} : vector<20x32xbf16>, vector<32x32xbf16>, vector<20x32xf32> -> vector<20x32xf32>
    %23 = arith.addf %16, %22 : vector<20x32xf32>
    %24 = vector.extract_strided_slice %2 {offsets = [3, 0, 0], sizes = [1, 32, 32], strides = [1, 1, 1]} : vector<8x32x32xbf16> to vector<1x32x32xbf16>
    %25 = vector.shape_cast %24 : vector<1x32x32xbf16> to vector<32x32xbf16>
    %cst_19 = arith.constant dense<0.000000e+00> : vector<20x32xf32>
    %26 = tpu.matmul %0, %25, %cst_19 {dimension_numbers = #tpu.dot_dimension_numbers<[1], [0], [0], [1], [0, 0, 1, 1], [], []>} : vector<20x32xbf16>, vector<32x32xbf16>, vector<20x32xf32> -> vector<20x32xf32>
    %27 = arith.addf %23, %26 : vector<20x32xf32>
    %28 = vector.broadcast %3 : vector<1x32xf32> to vector<20x32xf32>
    %29 = arith.addf %27, %28 : vector<20x32xf32>
    %cst_20 = arith.constant 0.000000e+00 : f32
    %30 = vector.broadcast %cst_20 : f32 to vector<20x32xf32>
    %31 = arith.maximumf %29, %30 : vector<20x32xf32>
    %c0_21 = arith.constant 0 : index
    %c0_22 = arith.constant 0 : index
    %32 = vector.load %arg11[%c0_21, %c0_22] : memref<20x32xf32, #tpu.memory_space<vmem>>, vector<20x32xf32>
    tpu.vector_store %arg11[%c0_21, %c0_22], %31 {strides = array<i32>} : memref<20x32xf32, #tpu.memory_space<vmem>>, vector<20x32xf32>,
    %c0_23 = arith.constant 0 : index
    %c0_24 = arith.constant 0 : index
    %33 = vector.load %arg4[%c0_23, %c0_24] : memref<16x16xbf16, #tpu.memory_space<vmem>>, vector<16x16xbf16>
    %cst_25 = arith.constant dense<0.000000e+00> : vector<16x32xf32>
    %34 = tpu.matmul %33, %1, %cst_25 {dimension_numbers = #tpu.dot_dimension_numbers<[1], [0], [0], [1], [0, 0, 1, 1], [], []>} : vector<16x16xbf16>, vector<16x32xbf16>, vector<16x32xf32> -> vector<16x32xf32>
    %35 = arith.truncf %34 : vector<16x32xf32> to vector<16x32xbf16>
    %36 = vector.extract_strided_slice %2 {offsets = [4, 0, 0], sizes = [1, 32, 32], strides = [1, 1, 1]} : vector<8x32x32xbf16> to vector<1x32x32xbf16>
    %37 = vector.shape_cast %36 : vector<1x32x32xbf16> to vector<32x32xbf16>
    %cst_26 = arith.constant dense<0.000000e+00> : vector<16x32xf32>
    %38 = tpu.matmul %35, %37, %cst_26 {dimension_numbers = #tpu.dot_dimension_numbers<[1], [0], [0], [1], [0, 0, 1, 1], [], []>} : vector<16x32xbf16>, vector<32x32xbf16>, vector<16x32xf32> -> vector<16x32xf32>
    %c0_27 = arith.constant 0 : index
    %c0_28 = arith.constant 0 : index
    %39 = vector.load %arg5[%c0_27, %c0_28] : memref<16x20xbf16, #tpu.memory_space<vmem>>, vector<16x20xbf16>
    %cst_29 = arith.constant dense<0.000000e+00> : vector<16x32xf32>
    %40 = tpu.matmul %39, %0, %cst_29 {dimension_numbers = #tpu.dot_dimension_numbers<[1], [0], [0], [1], [0, 0, 1, 1], [], []>} : vector<16x20xbf16>, vector<20x32xbf16>, vector<16x32xf32> -> vector<16x32xf32>
    %41 = arith.truncf %40 : vector<16x32xf32> to vector<16x32xbf16>
    %42 = vector.extract_strided_slice %2 {offsets = [5, 0, 0], sizes = [1, 32, 32], strides = [1, 1, 1]} : vector<8x32x32xbf16> to vector<1x32x32xbf16>
    %43 = vector.shape_cast %42 : vector<1x32x32xbf16> to vector<32x32xbf16>
    %cst_30 = arith.constant dense<0.000000e+00> : vector<16x32xf32>
    %44 = tpu.matmul %41, %43, %cst_30 {dimension_numbers = #tpu.dot_dimension_numbers<[1], [0], [0], [1], [0, 0, 1, 1], [], []>} : vector<16x32xbf16>, vector<32x32xbf16>, vector<16x32xf32> -> vector<16x32xf32>
    %45 = arith.addf %38, %44 : vector<16x32xf32>
    %c0_31 = arith.constant 0 : index
    %c0_32 = arith.constant 0 : index
    %46 = vector.load %arg6[%c0_31, %c0_32] : memref<16x16xbf16, #tpu.memory_space<vmem>>, vector<16x16xbf16>
    %cst_33 = arith.constant dense<0.000000e+00> : vector<16x32xf32>
    %47 = tpu.matmul %46, %1, %cst_33 {dimension_numbers = #tpu.dot_dimension_numbers<[1], [0], [0], [1], [0, 0, 1, 1], [], []>} : vector<16x16xbf16>, vector<16x32xbf16>, vector<16x32xf32> -> vector<16x32xf32>
    %48 = arith.truncf %47 : vector<16x32xf32> to vector<16x32xbf16>
    %49 = vector.extract_strided_slice %2 {offsets = [6, 0, 0], sizes = [1, 32, 32], strides = [1, 1, 1]} : vector<8x32x32xbf16> to vector<1x32x32xbf16>
    %50 = vector.shape_cast %49 : vector<1x32x32xbf16> to vector<32x32xbf16>
    %cst_34 = arith.constant dense<0.000000e+00> : vector<16x32xf32>
    %51 = tpu.matmul %48, %50, %cst_34 {dimension_numbers = #tpu.dot_dimension_numbers<[1], [0], [0], [1], [0, 0, 1, 1], [], []>} : vector<16x32xbf16>, vector<32x32xbf16>, vector<16x32xf32> -> vector<16x32xf32>
    %52 = arith.addf %45, %51 : vector<16x32xf32>
    %53 = vector.extract_strided_slice %2 {offsets = [7, 0, 0], sizes = [1, 32, 32], strides = [1, 1, 1]} : vector<8x32x32xbf16> to vector<1x32x32xbf16>
    %54 = vector.shape_cast %53 : vector<1x32x32xbf16> to vector<32x32xbf16>
    %cst_35 = arith.constant dense<0.000000e+00> : vector<16x32xf32>
    %55 = tpu.matmul %1, %54, %cst_35 {dimension_numbers = #tpu.dot_dimension_numbers<[1], [0], [0], [1], [0, 0, 1, 1], [], []>} : vector<16x32xbf16>, vector<32x32xbf16>, vector<16x32xf32> -> vector<16x32xf32>
    %56 = arith.addf %52, %55 : vector<16x32xf32>
    %57 = vector.broadcast %3 : vector<1x32xf32> to vector<16x32xf32>
    %58 = arith.addf %56, %57 : vector<16x32xf32>
    %cst_36 = arith.constant 0.000000e+00 : f32
    %59 = vector.broadcast %cst_36 : f32 to vector<16x32xf32>
    %60 = arith.maximumf %58, %59 : vector<16x32xf32>
    %c0_37 = arith.constant 0 : index
    %c0_38 = arith.constant 0 : index
    %61 = vector.load %arg12[%c0_37, %c0_38] : memref<16x32xf32, #tpu.memory_space<vmem>>, vector<16x32xf32>
    tpu.vector_store %arg12[%c0_37, %c0_38], %60 {strides = array<i32>} : memref<16x32xf32, #tpu.memory_space<vmem>>, vector<16x32xf32>,
    return
  }
  func.func @transform_0(%arg0: i32) -> (i32, i32) {
    %c0_i32 = arith.constant 0 : i32
    %c0_i32_0 = arith.constant 0 : i32
    %c0_i32_1 = arith.constant 0 : i32
    return %c0_i32, %c0_i32_0 : i32, i32
  }
  func.func @transform_1(%arg0: i32) -> (i32, i32) {
    %c0_i32 = arith.constant 0 : i32
    %c0_i32_0 = arith.constant 0 : i32
    %c0_i32_1 = arith.constant 0 : i32
    return %c0_i32, %c0_i32_0 : i32, i32
  }
  func.func @transform_2(%arg0: i32) -> (i32, i32) {
    %c0_i32 = arith.constant 0 : i32
    %c0_i32_0 = arith.constant 0 : i32
    %c0_i32_1 = arith.constant 0 : i32
    return %c0_i32, %c0_i32_0 : i32, i32
  }
  func.func @transform_3(%arg0: i32) -> (i32, i32) {
    %c0_i32 = arith.constant 0 : i32
    %c0_i32_0 = arith.constant 0 : i32
    %c0_i32_1 = arith.constant 0 : i32
    return %c0_i32, %c0_i32_0 : i32, i32
  }
  func.func @transform_4(%arg0: i32) -> (i32, i32) {
    %c0_i32 = arith.constant 0 : i32
    %c0_i32_0 = arith.constant 0 : i32
    %c0_i32_1 = arith.constant 0 : i32
    return %c0_i32, %c0_i32_0 : i32, i32
  }
  func.func @transform_5(%arg0: i32) -> (i32, i32) {
    %c0_i32 = arith.constant 0 : i32
    %c0_i32_0 = arith.constant 0 : i32
    %c0_i32_1 = arith.constant 0 : i32
    return %c0_i32, %c0_i32_0 : i32, i32
  }
  func.func @transform_6(%arg0: i32) -> (i32, i32) {
    %c0_i32 = arith.constant 0 : i32
    %c0_i32_0 = arith.constant 0 : i32
    %c0_i32_1 = arith.constant 0 : i32
    return %c0_i32, %c0_i32_0 : i32, i32
  }
  func.func @transform_7(%arg0: i32) -> (i32, i32) {
    %c0_i32 = arith.constant 0 : i32
    %c0_i32_0 = arith.constant 0 : i32
    %c0_i32_1 = arith.constant 0 : i32
    return %c0_i32, %c0_i32_0 : i32, i32
  }
  func.func @transform_8(%arg0: i32) -> (i32, i32, i32) {
    %c0_i32 = arith.constant 0 : i32
    %c0_i32_0 = arith.constant 0 : i32
    %c0_i32_1 = arith.constant 0 : i32
    %c0_i32_2 = arith.constant 0 : i32
    return %c0_i32, %c0_i32_0, %c0_i32_1 : i32, i32, i32
  }
  func.func @transform_9(%arg0: i32) -> (i32, i32) {
    %c0_i32 = arith.constant 0 : i32
    %c0_i32_0 = arith.constant 0 : i32
    %c0_i32_1 = arith.constant 0 : i32
    return %c0_i32, %c0_i32_0 : i32, i32
  }
  func.func @transform_10(%arg0: i32) -> (i32, i32) {
    %c0_i32 = arith.constant 0 : i32
    %c0_i32_0 = arith.constant 0 : i32
    %c0_i32_1 = arith.constant 0 : i32
    return %c0_i32, %c0_i32_0 : i32, i32
  }
  func.func @transform_11(%arg0: i32) -> (i32, i32) {
    %c0_i32 = arith.constant 0 : i32
    %c0_i32_0 = arith.constant 0 : i32
    %c0_i32_1 = arith.constant 0 : i32
    return %c0_i32, %c0_i32_0 : i32, i32
  }
}

module attributes {stable_mosaic.version = 11 : i64} {
  func.func @bilstm_kernel(%arg0: i32, %arg1: memref<10x8x48xbf16, #tpu.memory_space<vmem>>, %arg2: memref<48x128xbf16, #tpu.memory_space<vmem>>, %arg3: memref<32x128xbf16, #tpu.memory_space<vmem>>, %arg4: memref<1x128xf32, #tpu.memory_space<vmem>>, %arg5: memref<2x10x32xf32, #tpu.memory_space<vmem>>, %arg6: memref<2x8x32xf32, #tpu.memory_space<vmem>>) attributes {dimension_semantics = [#tpu.dimension_semantics<arbitrary>], iteration_bounds = array<i64: 1>, scalar_prefetch = 0 : i64, scratch_operands = 0 : i64, tpu.core_type = #tpu.core_type<tc>, window_params = [{pipeline_mode = #tpu.pipeline_mode<synchronous>, transform_indices = @transform_0, window_bounds = array<i64: 10, 8, 48>}, {pipeline_mode = #tpu.pipeline_mode<synchronous>, transform_indices = @transform_1, window_bounds = array<i64: 48, 128>}, {pipeline_mode = #tpu.pipeline_mode<synchronous>, transform_indices = @transform_2, window_bounds = array<i64: 32, 128>}, {pipeline_mode = #tpu.pipeline_mode<synchronous>, transform_indices = @transform_3, window_bounds = array<i64: 1, 128>}, {pipeline_mode = #tpu.pipeline_mode<synchronous>, transform_indices = @transform_4, window_bounds = array<i64: 2, 10, 32>}, {pipeline_mode = #tpu.pipeline_mode<synchronous>, transform_indices = @transform_5, window_bounds = array<i64: 2, 8, 32>}]} {
    %c0 = arith.constant 0 : index
    %c0_0 = arith.constant 0 : index
    %c0_1 = arith.constant 0 : index
    %0 = vector.load %arg1[%c0, %c0_0, %c0_1] : memref<10x8x48xbf16, #tpu.memory_space<vmem>>, vector<10x8x48xbf16>
    %1 = vector.shape_cast %0 : vector<10x8x48xbf16> to vector<80x48xbf16>
    %c0_2 = arith.constant 0 : index
    %c0_3 = arith.constant 0 : index
    %2 = vector.load %arg2[%c0_2, %c0_3] : memref<48x128xbf16, #tpu.memory_space<vmem>>, vector<48x128xbf16>
    %cst = arith.constant dense<0.000000e+00> : vector<80x128xf32>
    %3 = tpu.matmul %1, %2, %cst {dimension_numbers = #tpu.dot_dimension_numbers<[1], [0], [0], [1], [0, 0, 1, 1], [], []>} : vector<80x48xbf16>, vector<48x128xbf16>, vector<80x128xf32> -> vector<80x128xf32>
    %c0_4 = arith.constant 0 : index
    %c0_5 = arith.constant 0 : index
    %4 = vector.load %arg4[%c0_4, %c0_5] : memref<1x128xf32, #tpu.memory_space<vmem>>, vector<1x128xf32>
    %5 = vector.broadcast %4 : vector<1x128xf32> to vector<80x128xf32>
    %6 = arith.addf %3, %5 : vector<80x128xf32>
    %7 = vector.shape_cast %6 : vector<80x128xf32> to vector<10x8x128xf32>
    %c0_6 = arith.constant 0 : index
    %c0_7 = arith.constant 0 : index
    %8 = vector.load %arg3[%c0_6, %c0_7] : memref<32x128xbf16, #tpu.memory_space<vmem>>, vector<32x128xbf16>
    %9 = tpu.iota {dimensions = array<i32: 1>} : vector<4x128xi32>
    %c32_i32 = arith.constant 32 : i32
    %c0_i32 = arith.constant 0 : i32
    %10 = arith.cmpi eq, %c32_i32, %c0_i32 : i32
    %c1_i32 = arith.constant 1 : i32
    %11 = arith.select %10, %c1_i32, %c32_i32 : i32
    %12 = vector.broadcast %11 : i32 to vector<4x128xi32>
    %13 = arith.remsi %9, %12 : vector<4x128xi32>
    %c0_i32_8 = arith.constant 0 : i32
    %14 = vector.broadcast %c0_i32_8 : i32 to vector<4x128xi32>
    %15 = arith.cmpi ne, %13, %14 : vector<4x128xi32>
    %c0_i32_9 = arith.constant 0 : i32
    %16 = vector.broadcast %c0_i32_9 : i32 to vector<4x128xi32>
    %17 = arith.cmpi slt, %13, %16 : vector<4x128xi32>
    %c0_i32_10 = arith.constant 0 : i32
    %18 = arith.cmpi slt, %11, %c0_i32_10 : i32
    %19 = vector.broadcast %18 : i1 to vector<4x128xi1>
    %20 = vector.broadcast %19 : vector<4x128xi1> to vector<4x128xi1>
    %21 = arith.xori %17, %20 : vector<4x128xi1>
    %22 = arith.andi %21, %15 : vector<4x128xi1>
    %23 = vector.broadcast %11 : i32 to vector<4x128xi32>
    %24 = arith.addi %13, %23 : vector<4x128xi32>
    %25 = arith.select %22, %24, %13 : vector<4x128xi1>, vector<4x128xi32>
    %c16_i32 = arith.constant 16 : i32
    %26 = vector.broadcast %c16_i32 : i32 to vector<4x128xi32>
    %27 = arith.cmpi slt, %25, %26 : vector<4x128xi32>
    %28 = tpu.iota {dimensions = array<i32: 1>} : vector<2x32xi32>
    %c16_i32_11 = arith.constant 16 : i32
    %29 = vector.broadcast %c16_i32_11 : i32 to vector<2x32xi32>
    %30 = arith.cmpi slt, %28, %29 : vector<2x32xi32>
    %cst_12 = arith.constant 0.000000e+00 : f32
    %31 = vector.broadcast %cst_12 : f32 to vector<4x32xf32>
    %cst_13 = arith.constant 0.000000e+00 : f32
    %32 = vector.broadcast %cst_13 : f32 to vector<4x32xf32>
    %33 = vector.extract_strided_slice %7 {offsets = [0, 0, 0], sizes = [1, 4, 128], strides = [1, 1, 1]} : vector<10x8x128xf32> to vector<1x4x128xf32>
    %34 = vector.shape_cast %33 : vector<1x4x128xf32> to vector<4x128xf32>
    %35 = vector.extract_strided_slice %7 {offsets = [0, 4, 0], sizes = [1, 4, 128], strides = [1, 1, 1]} : vector<10x8x128xf32> to vector<1x4x128xf32>
    %36 = vector.shape_cast %35 : vector<1x4x128xf32> to vector<4x128xf32>
    %37 = arith.select %27, %34, %36 : vector<4x128xi1>, vector<4x128xf32>
    %38 = arith.truncf %31 : vector<4x32xf32> to vector<4x32xbf16>
    %cst_14 = arith.constant dense<0.000000e+00> : vector<4x128xf32>
    %39 = tpu.matmul %38, %8, %cst_14 {dimension_numbers = #tpu.dot_dimension_numbers<[1], [0], [0], [1], [0, 0, 1, 1], [], []>} : vector<4x32xbf16>, vector<32x128xbf16>, vector<4x128xf32> -> vector<4x128xf32>
    %40 = arith.addf %37, %39 : vector<4x128xf32>
    %41 = vector.extract_strided_slice %40 {offsets = [0, 0], sizes = [4, 32], strides = [1, 1]} : vector<4x128xf32> to vector<4x32xf32>
    %42 = arith.negf %41 : vector<4x32xf32>
    %43 = math.exp %42 : vector<4x32xf32>
    %cst_15 = arith.constant 1.000000e+00 : f32
    %44 = vector.broadcast %cst_15 : f32 to vector<4x32xf32>
    %45 = arith.addf %44, %43 : vector<4x32xf32>
    %46 = arith.divf %44, %45 : vector<4x32xf32>
    %47 = vector.extract_strided_slice %40 {offsets = [0, 32], sizes = [4, 32], strides = [1, 1]} : vector<4x128xf32> to vector<4x32xf32>
    %48 = arith.negf %47 : vector<4x32xf32>
    %49 = math.exp %48 : vector<4x32xf32>
    %cst_16 = arith.constant 1.000000e+00 : f32
    %50 = vector.broadcast %cst_16 : f32 to vector<4x32xf32>
    %51 = arith.addf %50, %49 : vector<4x32xf32>
    %52 = arith.divf %50, %51 : vector<4x32xf32>
    %53 = vector.extract_strided_slice %40 {offsets = [0, 64], sizes = [4, 32], strides = [1, 1]} : vector<4x128xf32> to vector<4x32xf32>
    %54 = math.tanh %53 : vector<4x32xf32>
    %55 = vector.extract_strided_slice %40 {offsets = [0, 96], sizes = [4, 32], strides = [1, 1]} : vector<4x128xf32> to vector<4x32xf32>
    %56 = arith.negf %55 : vector<4x32xf32>
    %57 = math.exp %56 : vector<4x32xf32>
    %cst_17 = arith.constant 1.000000e+00 : f32
    %58 = vector.broadcast %cst_17 : f32 to vector<4x32xf32>
    %59 = arith.addf %58, %57 : vector<4x32xf32>
    %60 = arith.divf %58, %59 : vector<4x32xf32>
    %61 = arith.mulf %52, %32 : vector<4x32xf32>
    %62 = arith.mulf %46, %54 : vector<4x32xf32>
    %63 = arith.addf %61, %62 : vector<4x32xf32>
    %64 = math.tanh %63 : vector<4x32xf32>
    %65 = arith.mulf %60, %64 : vector<4x32xf32>
    %66 = vector.extract_strided_slice %7 {offsets = [1, 0, 0], sizes = [1, 4, 128], strides = [1, 1, 1]} : vector<10x8x128xf32> to vector<1x4x128xf32>
    %67 = vector.shape_cast %66 : vector<1x4x128xf32> to vector<4x128xf32>
    %68 = vector.extract_strided_slice %7 {offsets = [1, 4, 0], sizes = [1, 4, 128], strides = [1, 1, 1]} : vector<10x8x128xf32> to vector<1x4x128xf32>
    %69 = vector.shape_cast %68 : vector<1x4x128xf32> to vector<4x128xf32>
    %70 = arith.select %27, %67, %69 : vector<4x128xi1>, vector<4x128xf32>
    %71 = arith.truncf %65 : vector<4x32xf32> to vector<4x32xbf16>
    %cst_18 = arith.constant dense<0.000000e+00> : vector<4x128xf32>
    %72 = tpu.matmul %71, %8, %cst_18 {dimension_numbers = #tpu.dot_dimension_numbers<[1], [0], [0], [1], [0, 0, 1, 1], [], []>} : vector<4x32xbf16>, vector<32x128xbf16>, vector<4x128xf32> -> vector<4x128xf32>
    %73 = arith.addf %70, %72 : vector<4x128xf32>
    %74 = vector.extract_strided_slice %73 {offsets = [0, 0], sizes = [4, 32], strides = [1, 1]} : vector<4x128xf32> to vector<4x32xf32>
    %75 = arith.negf %74 : vector<4x32xf32>
    %76 = math.exp %75 : vector<4x32xf32>
    %cst_19 = arith.constant 1.000000e+00 : f32
    %77 = vector.broadcast %cst_19 : f32 to vector<4x32xf32>
    %78 = arith.addf %77, %76 : vector<4x32xf32>
    %79 = arith.divf %77, %78 : vector<4x32xf32>
    %80 = vector.extract_strided_slice %73 {offsets = [0, 32], sizes = [4, 32], strides = [1, 1]} : vector<4x128xf32> to vector<4x32xf32>
    %81 = arith.negf %80 : vector<4x32xf32>
    %82 = math.exp %81 : vector<4x32xf32>
    %cst_20 = arith.constant 1.000000e+00 : f32
    %83 = vector.broadcast %cst_20 : f32 to vector<4x32xf32>
    %84 = arith.addf %83, %82 : vector<4x32xf32>
    %85 = arith.divf %83, %84 : vector<4x32xf32>
    %86 = vector.extract_strided_slice %73 {offsets = [0, 64], sizes = [4, 32], strides = [1, 1]} : vector<4x128xf32> to vector<4x32xf32>
    %87 = math.tanh %86 : vector<4x32xf32>
    %88 = vector.extract_strided_slice %73 {offsets = [0, 96], sizes = [4, 32], strides = [1, 1]} : vector<4x128xf32> to vector<4x32xf32>
    %89 = arith.negf %88 : vector<4x32xf32>
    %90 = math.exp %89 : vector<4x32xf32>
    %cst_21 = arith.constant 1.000000e+00 : f32
    %91 = vector.broadcast %cst_21 : f32 to vector<4x32xf32>
    %92 = arith.addf %91, %90 : vector<4x32xf32>
    %93 = arith.divf %91, %92 : vector<4x32xf32>
    %94 = arith.mulf %85, %63 : vector<4x32xf32>
    %95 = arith.mulf %79, %87 : vector<4x32xf32>
    %96 = arith.addf %94, %95 : vector<4x32xf32>
    %97 = math.tanh %96 : vector<4x32xf32>
    %98 = arith.mulf %93, %97 : vector<4x32xf32>
    %99 = vector.extract_strided_slice %7 {offsets = [2, 0, 0], sizes = [1, 4, 128], strides = [1, 1, 1]} : vector<10x8x128xf32> to vector<1x4x128xf32>
    %100 = vector.shape_cast %99 : vector<1x4x128xf32> to vector<4x128xf32>
    %101 = vector.extract_strided_slice %7 {offsets = [2, 4, 0], sizes = [1, 4, 128], strides = [1, 1, 1]} : vector<10x8x128xf32> to vector<1x4x128xf32>
    %102 = vector.shape_cast %101 : vector<1x4x128xf32> to vector<4x128xf32>
    %103 = arith.select %27, %100, %102 : vector<4x128xi1>, vector<4x128xf32>
    %104 = arith.truncf %98 : vector<4x32xf32> to vector<4x32xbf16>
    %cst_22 = arith.constant dense<0.000000e+00> : vector<4x128xf32>
    %105 = tpu.matmul %104, %8, %cst_22 {dimension_numbers = #tpu.dot_dimension_numbers<[1], [0], [0], [1], [0, 0, 1, 1], [], []>} : vector<4x32xbf16>, vector<32x128xbf16>, vector<4x128xf32> -> vector<4x128xf32>
    %106 = arith.addf %103, %105 : vector<4x128xf32>
    %107 = vector.extract_strided_slice %106 {offsets = [0, 0], sizes = [4, 32], strides = [1, 1]} : vector<4x128xf32> to vector<4x32xf32>
    %108 = arith.negf %107 : vector<4x32xf32>
    %109 = math.exp %108 : vector<4x32xf32>
    %cst_23 = arith.constant 1.000000e+00 : f32
    %110 = vector.broadcast %cst_23 : f32 to vector<4x32xf32>
    %111 = arith.addf %110, %109 : vector<4x32xf32>
    %112 = arith.divf %110, %111 : vector<4x32xf32>
    %113 = vector.extract_strided_slice %106 {offsets = [0, 32], sizes = [4, 32], strides = [1, 1]} : vector<4x128xf32> to vector<4x32xf32>
    %114 = arith.negf %113 : vector<4x32xf32>
    %115 = math.exp %114 : vector<4x32xf32>
    %cst_24 = arith.constant 1.000000e+00 : f32
    %116 = vector.broadcast %cst_24 : f32 to vector<4x32xf32>
    %117 = arith.addf %116, %115 : vector<4x32xf32>
    %118 = arith.divf %116, %117 : vector<4x32xf32>
    %119 = vector.extract_strided_slice %106 {offsets = [0, 64], sizes = [4, 32], strides = [1, 1]} : vector<4x128xf32> to vector<4x32xf32>
    %120 = math.tanh %119 : vector<4x32xf32>
    %121 = vector.extract_strided_slice %106 {offsets = [0, 96], sizes = [4, 32], strides = [1, 1]} : vector<4x128xf32> to vector<4x32xf32>
    %122 = arith.negf %121 : vector<4x32xf32>
    %123 = math.exp %122 : vector<4x32xf32>
    %cst_25 = arith.constant 1.000000e+00 : f32
    %124 = vector.broadcast %cst_25 : f32 to vector<4x32xf32>
    %125 = arith.addf %124, %123 : vector<4x32xf32>
    %126 = arith.divf %124, %125 : vector<4x32xf32>
    %127 = arith.mulf %118, %96 : vector<4x32xf32>
    %128 = arith.mulf %112, %120 : vector<4x32xf32>
    %129 = arith.addf %127, %128 : vector<4x32xf32>
    %130 = math.tanh %129 : vector<4x32xf32>
    %131 = arith.mulf %126, %130 : vector<4x32xf32>
    %132 = vector.extract_strided_slice %7 {offsets = [3, 0, 0], sizes = [1, 4, 128], strides = [1, 1, 1]} : vector<10x8x128xf32> to vector<1x4x128xf32>
    %133 = vector.shape_cast %132 : vector<1x4x128xf32> to vector<4x128xf32>
    %134 = vector.extract_strided_slice %7 {offsets = [3, 4, 0], sizes = [1, 4, 128], strides = [1, 1, 1]} : vector<10x8x128xf32> to vector<1x4x128xf32>
    %135 = vector.shape_cast %134 : vector<1x4x128xf32> to vector<4x128xf32>
    %136 = arith.select %27, %133, %135 : vector<4x128xi1>, vector<4x128xf32>
    %137 = arith.truncf %131 : vector<4x32xf32> to vector<4x32xbf16>
    %cst_26 = arith.constant dense<0.000000e+00> : vector<4x128xf32>
    %138 = tpu.matmul %137, %8, %cst_26 {dimension_numbers = #tpu.dot_dimension_numbers<[1], [0], [0], [1], [0, 0, 1, 1], [], []>} : vector<4x32xbf16>, vector<32x128xbf16>, vector<4x128xf32> -> vector<4x128xf32>
    %139 = arith.addf %136, %138 : vector<4x128xf32>
    %140 = vector.extract_strided_slice %139 {offsets = [0, 0], sizes = [4, 32], strides = [1, 1]} : vector<4x128xf32> to vector<4x32xf32>
    %141 = arith.negf %140 : vector<4x32xf32>
    %142 = math.exp %141 : vector<4x32xf32>
    %cst_27 = arith.constant 1.000000e+00 : f32
    %143 = vector.broadcast %cst_27 : f32 to vector<4x32xf32>
    %144 = arith.addf %143, %142 : vector<4x32xf32>
    %145 = arith.divf %143, %144 : vector<4x32xf32>
    %146 = vector.extract_strided_slice %139 {offsets = [0, 32], sizes = [4, 32], strides = [1, 1]} : vector<4x128xf32> to vector<4x32xf32>
    %147 = arith.negf %146 : vector<4x32xf32>
    %148 = math.exp %147 : vector<4x32xf32>
    %cst_28 = arith.constant 1.000000e+00 : f32
    %149 = vector.broadcast %cst_28 : f32 to vector<4x32xf32>
    %150 = arith.addf %149, %148 : vector<4x32xf32>
    %151 = arith.divf %149, %150 : vector<4x32xf32>
    %152 = vector.extract_strided_slice %139 {offsets = [0, 64], sizes = [4, 32], strides = [1, 1]} : vector<4x128xf32> to vector<4x32xf32>
    %153 = math.tanh %152 : vector<4x32xf32>
    %154 = vector.extract_strided_slice %139 {offsets = [0, 96], sizes = [4, 32], strides = [1, 1]} : vector<4x128xf32> to vector<4x32xf32>
    %155 = arith.negf %154 : vector<4x32xf32>
    %156 = math.exp %155 : vector<4x32xf32>
    %cst_29 = arith.constant 1.000000e+00 : f32
    %157 = vector.broadcast %cst_29 : f32 to vector<4x32xf32>
    %158 = arith.addf %157, %156 : vector<4x32xf32>
    %159 = arith.divf %157, %158 : vector<4x32xf32>
    %160 = arith.mulf %151, %129 : vector<4x32xf32>
    %161 = arith.mulf %145, %153 : vector<4x32xf32>
    %162 = arith.addf %160, %161 : vector<4x32xf32>
    %163 = math.tanh %162 : vector<4x32xf32>
    %164 = arith.mulf %159, %163 : vector<4x32xf32>
    %165 = vector.extract_strided_slice %7 {offsets = [4, 0, 0], sizes = [1, 4, 128], strides = [1, 1, 1]} : vector<10x8x128xf32> to vector<1x4x128xf32>
    %166 = vector.shape_cast %165 : vector<1x4x128xf32> to vector<4x128xf32>
    %167 = vector.extract_strided_slice %7 {offsets = [4, 4, 0], sizes = [1, 4, 128], strides = [1, 1, 1]} : vector<10x8x128xf32> to vector<1x4x128xf32>
    %168 = vector.shape_cast %167 : vector<1x4x128xf32> to vector<4x128xf32>
    %169 = arith.select %27, %166, %168 : vector<4x128xi1>, vector<4x128xf32>
    %170 = arith.truncf %164 : vector<4x32xf32> to vector<4x32xbf16>
    %cst_30 = arith.constant dense<0.000000e+00> : vector<4x128xf32>
    %171 = tpu.matmul %170, %8, %cst_30 {dimension_numbers = #tpu.dot_dimension_numbers<[1], [0], [0], [1], [0, 0, 1, 1], [], []>} : vector<4x32xbf16>, vector<32x128xbf16>, vector<4x128xf32> -> vector<4x128xf32>
    %172 = arith.addf %169, %171 : vector<4x128xf32>
    %173 = vector.extract_strided_slice %172 {offsets = [0, 0], sizes = [4, 32], strides = [1, 1]} : vector<4x128xf32> to vector<4x32xf32>
    %174 = arith.negf %173 : vector<4x32xf32>
    %175 = math.exp %174 : vector<4x32xf32>
    %cst_31 = arith.constant 1.000000e+00 : f32
    %176 = vector.broadcast %cst_31 : f32 to vector<4x32xf32>
    %177 = arith.addf %176, %175 : vector<4x32xf32>
    %178 = arith.divf %176, %177 : vector<4x32xf32>
    %179 = vector.extract_strided_slice %172 {offsets = [0, 32], sizes = [4, 32], strides = [1, 1]} : vector<4x128xf32> to vector<4x32xf32>
    %180 = arith.negf %179 : vector<4x32xf32>
    %181 = math.exp %180 : vector<4x32xf32>
    %cst_32 = arith.constant 1.000000e+00 : f32
    %182 = vector.broadcast %cst_32 : f32 to vector<4x32xf32>
    %183 = arith.addf %182, %181 : vector<4x32xf32>
    %184 = arith.divf %182, %183 : vector<4x32xf32>
    %185 = vector.extract_strided_slice %172 {offsets = [0, 64], sizes = [4, 32], strides = [1, 1]} : vector<4x128xf32> to vector<4x32xf32>
    %186 = math.tanh %185 : vector<4x32xf32>
    %187 = vector.extract_strided_slice %172 {offsets = [0, 96], sizes = [4, 32], strides = [1, 1]} : vector<4x128xf32> to vector<4x32xf32>
    %188 = arith.negf %187 : vector<4x32xf32>
    %189 = math.exp %188 : vector<4x32xf32>
    %cst_33 = arith.constant 1.000000e+00 : f32
    %190 = vector.broadcast %cst_33 : f32 to vector<4x32xf32>
    %191 = arith.addf %190, %189 : vector<4x32xf32>
    %192 = arith.divf %190, %191 : vector<4x32xf32>
    %193 = arith.mulf %184, %162 : vector<4x32xf32>
    %194 = arith.mulf %178, %186 : vector<4x32xf32>
    %195 = arith.addf %193, %194 : vector<4x32xf32>
    %196 = math.tanh %195 : vector<4x32xf32>
    %197 = arith.mulf %192, %196 : vector<4x32xf32>
    %198 = vector.extract_strided_slice %7 {offsets = [5, 0, 0], sizes = [1, 4, 128], strides = [1, 1, 1]} : vector<10x8x128xf32> to vector<1x4x128xf32>
    %199 = vector.shape_cast %198 : vector<1x4x128xf32> to vector<4x128xf32>
    %200 = vector.extract_strided_slice %7 {offsets = [5, 4, 0], sizes = [1, 4, 128], strides = [1, 1, 1]} : vector<10x8x128xf32> to vector<1x4x128xf32>
    %201 = vector.shape_cast %200 : vector<1x4x128xf32> to vector<4x128xf32>
    %202 = arith.select %27, %199, %201 : vector<4x128xi1>, vector<4x128xf32>
    %203 = arith.truncf %197 : vector<4x32xf32> to vector<4x32xbf16>
    %cst_34 = arith.constant dense<0.000000e+00> : vector<4x128xf32>
    %204 = tpu.matmul %203, %8, %cst_34 {dimension_numbers = #tpu.dot_dimension_numbers<[1], [0], [0], [1], [0, 0, 1, 1], [], []>} : vector<4x32xbf16>, vector<32x128xbf16>, vector<4x128xf32> -> vector<4x128xf32>
    %205 = arith.addf %202, %204 : vector<4x128xf32>
    %206 = vector.extract_strided_slice %205 {offsets = [0, 0], sizes = [4, 32], strides = [1, 1]} : vector<4x128xf32> to vector<4x32xf32>
    %207 = arith.negf %206 : vector<4x32xf32>
    %208 = math.exp %207 : vector<4x32xf32>
    %cst_35 = arith.constant 1.000000e+00 : f32
    %209 = vector.broadcast %cst_35 : f32 to vector<4x32xf32>
    %210 = arith.addf %209, %208 : vector<4x32xf32>
    %211 = arith.divf %209, %210 : vector<4x32xf32>
    %212 = vector.extract_strided_slice %205 {offsets = [0, 32], sizes = [4, 32], strides = [1, 1]} : vector<4x128xf32> to vector<4x32xf32>
    %213 = arith.negf %212 : vector<4x32xf32>
    %214 = math.exp %213 : vector<4x32xf32>
    %cst_36 = arith.constant 1.000000e+00 : f32
    %215 = vector.broadcast %cst_36 : f32 to vector<4x32xf32>
    %216 = arith.addf %215, %214 : vector<4x32xf32>
    %217 = arith.divf %215, %216 : vector<4x32xf32>
    %218 = vector.extract_strided_slice %205 {offsets = [0, 64], sizes = [4, 32], strides = [1, 1]} : vector<4x128xf32> to vector<4x32xf32>
    %219 = math.tanh %218 : vector<4x32xf32>
    %220 = vector.extract_strided_slice %205 {offsets = [0, 96], sizes = [4, 32], strides = [1, 1]} : vector<4x128xf32> to vector<4x32xf32>
    %221 = arith.negf %220 : vector<4x32xf32>
    %222 = math.exp %221 : vector<4x32xf32>
    %cst_37 = arith.constant 1.000000e+00 : f32
    %223 = vector.broadcast %cst_37 : f32 to vector<4x32xf32>
    %224 = arith.addf %223, %222 : vector<4x32xf32>
    %225 = arith.divf %223, %224 : vector<4x32xf32>
    %226 = arith.mulf %217, %195 : vector<4x32xf32>
    %227 = arith.mulf %211, %219 : vector<4x32xf32>
    %228 = arith.addf %226, %227 : vector<4x32xf32>
    %229 = math.tanh %228 : vector<4x32xf32>
    %230 = arith.mulf %225, %229 : vector<4x32xf32>
    %231 = vector.extract_strided_slice %7 {offsets = [6, 0, 0], sizes = [1, 4, 128], strides = [1, 1, 1]} : vector<10x8x128xf32> to vector<1x4x128xf32>
    %232 = vector.shape_cast %231 : vector<1x4x128xf32> to vector<4x128xf32>
    %233 = vector.extract_strided_slice %7 {offsets = [6, 4, 0], sizes = [1, 4, 128], strides = [1, 1, 1]} : vector<10x8x128xf32> to vector<1x4x128xf32>
    %234 = vector.shape_cast %233 : vector<1x4x128xf32> to vector<4x128xf32>
    %235 = arith.select %27, %232, %234 : vector<4x128xi1>, vector<4x128xf32>
    %236 = arith.truncf %230 : vector<4x32xf32> to vector<4x32xbf16>
    %cst_38 = arith.constant dense<0.000000e+00> : vector<4x128xf32>
    %237 = tpu.matmul %236, %8, %cst_38 {dimension_numbers = #tpu.dot_dimension_numbers<[1], [0], [0], [1], [0, 0, 1, 1], [], []>} : vector<4x32xbf16>, vector<32x128xbf16>, vector<4x128xf32> -> vector<4x128xf32>
    %238 = arith.addf %235, %237 : vector<4x128xf32>
    %239 = vector.extract_strided_slice %238 {offsets = [0, 0], sizes = [4, 32], strides = [1, 1]} : vector<4x128xf32> to vector<4x32xf32>
    %240 = arith.negf %239 : vector<4x32xf32>
    %241 = math.exp %240 : vector<4x32xf32>
    %cst_39 = arith.constant 1.000000e+00 : f32
    %242 = vector.broadcast %cst_39 : f32 to vector<4x32xf32>
    %243 = arith.addf %242, %241 : vector<4x32xf32>
    %244 = arith.divf %242, %243 : vector<4x32xf32>
    %245 = vector.extract_strided_slice %238 {offsets = [0, 32], sizes = [4, 32], strides = [1, 1]} : vector<4x128xf32> to vector<4x32xf32>
    %246 = arith.negf %245 : vector<4x32xf32>
    %247 = math.exp %246 : vector<4x32xf32>
    %cst_40 = arith.constant 1.000000e+00 : f32
    %248 = vector.broadcast %cst_40 : f32 to vector<4x32xf32>
    %249 = arith.addf %248, %247 : vector<4x32xf32>
    %250 = arith.divf %248, %249 : vector<4x32xf32>
    %251 = vector.extract_strided_slice %238 {offsets = [0, 64], sizes = [4, 32], strides = [1, 1]} : vector<4x128xf32> to vector<4x32xf32>
    %252 = math.tanh %251 : vector<4x32xf32>
    %253 = vector.extract_strided_slice %238 {offsets = [0, 96], sizes = [4, 32], strides = [1, 1]} : vector<4x128xf32> to vector<4x32xf32>
    %254 = arith.negf %253 : vector<4x32xf32>
    %255 = math.exp %254 : vector<4x32xf32>
    %cst_41 = arith.constant 1.000000e+00 : f32
    %256 = vector.broadcast %cst_41 : f32 to vector<4x32xf32>
    %257 = arith.addf %256, %255 : vector<4x32xf32>
    %258 = arith.divf %256, %257 : vector<4x32xf32>
    %259 = arith.mulf %250, %228 : vector<4x32xf32>
    %260 = arith.mulf %244, %252 : vector<4x32xf32>
    %261 = arith.addf %259, %260 : vector<4x32xf32>
    %262 = math.tanh %261 : vector<4x32xf32>
    %263 = arith.mulf %258, %262 : vector<4x32xf32>
    %264 = vector.extract_strided_slice %7 {offsets = [7, 0, 0], sizes = [1, 4, 128], strides = [1, 1, 1]} : vector<10x8x128xf32> to vector<1x4x128xf32>
    %265 = vector.shape_cast %264 : vector<1x4x128xf32> to vector<4x128xf32>
    %266 = vector.extract_strided_slice %7 {offsets = [7, 4, 0], sizes = [1, 4, 128], strides = [1, 1, 1]} : vector<10x8x128xf32> to vector<1x4x128xf32>
    %267 = vector.shape_cast %266 : vector<1x4x128xf32> to vector<4x128xf32>
    %268 = arith.select %27, %265, %267 : vector<4x128xi1>, vector<4x128xf32>
    %269 = arith.truncf %263 : vector<4x32xf32> to vector<4x32xbf16>
    %cst_42 = arith.constant dense<0.000000e+00> : vector<4x128xf32>
    %270 = tpu.matmul %269, %8, %cst_42 {dimension_numbers = #tpu.dot_dimension_numbers<[1], [0], [0], [1], [0, 0, 1, 1], [], []>} : vector<4x32xbf16>, vector<32x128xbf16>, vector<4x128xf32> -> vector<4x128xf32>
    %271 = arith.addf %268, %270 : vector<4x128xf32>
    %272 = vector.extract_strided_slice %271 {offsets = [0, 0], sizes = [4, 32], strides = [1, 1]} : vector<4x128xf32> to vector<4x32xf32>
    %273 = arith.negf %272 : vector<4x32xf32>
    %274 = math.exp %273 : vector<4x32xf32>
    %cst_43 = arith.constant 1.000000e+00 : f32
    %275 = vector.broadcast %cst_43 : f32 to vector<4x32xf32>
    %276 = arith.addf %275, %274 : vector<4x32xf32>
    %277 = arith.divf %275, %276 : vector<4x32xf32>
    %278 = vector.extract_strided_slice %271 {offsets = [0, 32], sizes = [4, 32], strides = [1, 1]} : vector<4x128xf32> to vector<4x32xf32>
    %279 = arith.negf %278 : vector<4x32xf32>
    %280 = math.exp %279 : vector<4x32xf32>
    %cst_44 = arith.constant 1.000000e+00 : f32
    %281 = vector.broadcast %cst_44 : f32 to vector<4x32xf32>
    %282 = arith.addf %281, %280 : vector<4x32xf32>
    %283 = arith.divf %281, %282 : vector<4x32xf32>
    %284 = vector.extract_strided_slice %271 {offsets = [0, 64], sizes = [4, 32], strides = [1, 1]} : vector<4x128xf32> to vector<4x32xf32>
    %285 = math.tanh %284 : vector<4x32xf32>
    %286 = vector.extract_strided_slice %271 {offsets = [0, 96], sizes = [4, 32], strides = [1, 1]} : vector<4x128xf32> to vector<4x32xf32>
    %287 = arith.negf %286 : vector<4x32xf32>
    %288 = math.exp %287 : vector<4x32xf32>
    %cst_45 = arith.constant 1.000000e+00 : f32
    %289 = vector.broadcast %cst_45 : f32 to vector<4x32xf32>
    %290 = arith.addf %289, %288 : vector<4x32xf32>
    %291 = arith.divf %289, %290 : vector<4x32xf32>
    %292 = arith.mulf %283, %261 : vector<4x32xf32>
    %293 = arith.mulf %277, %285 : vector<4x32xf32>
    %294 = arith.addf %292, %293 : vector<4x32xf32>
    %295 = math.tanh %294 : vector<4x32xf32>
    %296 = arith.mulf %291, %295 : vector<4x32xf32>
    %297 = vector.extract_strided_slice %7 {offsets = [8, 0, 0], sizes = [1, 4, 128], strides = [1, 1, 1]} : vector<10x8x128xf32> to vector<1x4x128xf32>
    %298 = vector.shape_cast %297 : vector<1x4x128xf32> to vector<4x128xf32>
    %299 = vector.extract_strided_slice %7 {offsets = [8, 4, 0], sizes = [1, 4, 128], strides = [1, 1, 1]} : vector<10x8x128xf32> to vector<1x4x128xf32>
    %300 = vector.shape_cast %299 : vector<1x4x128xf32> to vector<4x128xf32>
    %301 = arith.select %27, %298, %300 : vector<4x128xi1>, vector<4x128xf32>
    %302 = arith.truncf %296 : vector<4x32xf32> to vector<4x32xbf16>
    %cst_46 = arith.constant dense<0.000000e+00> : vector<4x128xf32>
    %303 = tpu.matmul %302, %8, %cst_46 {dimension_numbers = #tpu.dot_dimension_numbers<[1], [0], [0], [1], [0, 0, 1, 1], [], []>} : vector<4x32xbf16>, vector<32x128xbf16>, vector<4x128xf32> -> vector<4x128xf32>
    %304 = arith.addf %301, %303 : vector<4x128xf32>
    %305 = vector.extract_strided_slice %304 {offsets = [0, 0], sizes = [4, 32], strides = [1, 1]} : vector<4x128xf32> to vector<4x32xf32>
    %306 = arith.negf %305 : vector<4x32xf32>
    %307 = math.exp %306 : vector<4x32xf32>
    %cst_47 = arith.constant 1.000000e+00 : f32
    %308 = vector.broadcast %cst_47 : f32 to vector<4x32xf32>
    %309 = arith.addf %308, %307 : vector<4x32xf32>
    %310 = arith.divf %308, %309 : vector<4x32xf32>
    %311 = vector.extract_strided_slice %304 {offsets = [0, 32], sizes = [4, 32], strides = [1, 1]} : vector<4x128xf32> to vector<4x32xf32>
    %312 = arith.negf %311 : vector<4x32xf32>
    %313 = math.exp %312 : vector<4x32xf32>
    %cst_48 = arith.constant 1.000000e+00 : f32
    %314 = vector.broadcast %cst_48 : f32 to vector<4x32xf32>
    %315 = arith.addf %314, %313 : vector<4x32xf32>
    %316 = arith.divf %314, %315 : vector<4x32xf32>
    %317 = vector.extract_strided_slice %304 {offsets = [0, 64], sizes = [4, 32], strides = [1, 1]} : vector<4x128xf32> to vector<4x32xf32>
    %318 = math.tanh %317 : vector<4x32xf32>
    %319 = vector.extract_strided_slice %304 {offsets = [0, 96], sizes = [4, 32], strides = [1, 1]} : vector<4x128xf32> to vector<4x32xf32>
    %320 = arith.negf %319 : vector<4x32xf32>
    %321 = math.exp %320 : vector<4x32xf32>
    %cst_49 = arith.constant 1.000000e+00 : f32
    %322 = vector.broadcast %cst_49 : f32 to vector<4x32xf32>
    %323 = arith.addf %322, %321 : vector<4x32xf32>
    %324 = arith.divf %322, %323 : vector<4x32xf32>
    %325 = arith.mulf %316, %294 : vector<4x32xf32>
    %326 = arith.mulf %310, %318 : vector<4x32xf32>
    %327 = arith.addf %325, %326 : vector<4x32xf32>
    %328 = math.tanh %327 : vector<4x32xf32>
    %329 = arith.mulf %324, %328 : vector<4x32xf32>
    %330 = vector.extract_strided_slice %7 {offsets = [9, 0, 0], sizes = [1, 4, 128], strides = [1, 1, 1]} : vector<10x8x128xf32> to vector<1x4x128xf32>
    %331 = vector.shape_cast %330 : vector<1x4x128xf32> to vector<4x128xf32>
    %332 = vector.extract_strided_slice %7 {offsets = [9, 4, 0], sizes = [1, 4, 128], strides = [1, 1, 1]} : vector<10x8x128xf32> to vector<1x4x128xf32>
    %333 = vector.shape_cast %332 : vector<1x4x128xf32> to vector<4x128xf32>
    %334 = arith.select %27, %331, %333 : vector<4x128xi1>, vector<4x128xf32>
    %335 = arith.truncf %329 : vector<4x32xf32> to vector<4x32xbf16>
    %cst_50 = arith.constant dense<0.000000e+00> : vector<4x128xf32>
    %336 = tpu.matmul %335, %8, %cst_50 {dimension_numbers = #tpu.dot_dimension_numbers<[1], [0], [0], [1], [0, 0, 1, 1], [], []>} : vector<4x32xbf16>, vector<32x128xbf16>, vector<4x128xf32> -> vector<4x128xf32>
    %337 = arith.addf %334, %336 : vector<4x128xf32>
    %338 = vector.extract_strided_slice %337 {offsets = [0, 0], sizes = [4, 32], strides = [1, 1]} : vector<4x128xf32> to vector<4x32xf32>
    %339 = arith.negf %338 : vector<4x32xf32>
    %340 = math.exp %339 : vector<4x32xf32>
    %cst_51 = arith.constant 1.000000e+00 : f32
    %341 = vector.broadcast %cst_51 : f32 to vector<4x32xf32>
    %342 = arith.addf %341, %340 : vector<4x32xf32>
    %343 = arith.divf %341, %342 : vector<4x32xf32>
    %344 = vector.extract_strided_slice %337 {offsets = [0, 32], sizes = [4, 32], strides = [1, 1]} : vector<4x128xf32> to vector<4x32xf32>
    %345 = arith.negf %344 : vector<4x32xf32>
    %346 = math.exp %345 : vector<4x32xf32>
    %cst_52 = arith.constant 1.000000e+00 : f32
    %347 = vector.broadcast %cst_52 : f32 to vector<4x32xf32>
    %348 = arith.addf %347, %346 : vector<4x32xf32>
    %349 = arith.divf %347, %348 : vector<4x32xf32>
    %350 = vector.extract_strided_slice %337 {offsets = [0, 64], sizes = [4, 32], strides = [1, 1]} : vector<4x128xf32> to vector<4x32xf32>
    %351 = math.tanh %350 : vector<4x32xf32>
    %352 = vector.extract_strided_slice %337 {offsets = [0, 96], sizes = [4, 32], strides = [1, 1]} : vector<4x128xf32> to vector<4x32xf32>
    %353 = arith.negf %352 : vector<4x32xf32>
    %354 = math.exp %353 : vector<4x32xf32>
    %cst_53 = arith.constant 1.000000e+00 : f32
    %355 = vector.broadcast %cst_53 : f32 to vector<4x32xf32>
    %356 = arith.addf %355, %354 : vector<4x32xf32>
    %357 = arith.divf %355, %356 : vector<4x32xf32>
    %358 = arith.mulf %349, %327 : vector<4x32xf32>
    %359 = arith.mulf %343, %351 : vector<4x32xf32>
    %360 = arith.addf %358, %359 : vector<4x32xf32>
    %361 = math.tanh %360 : vector<4x32xf32>
    %362 = arith.mulf %357, %361 : vector<4x32xf32>
    %363 = vector.extract_strided_slice %65 {offsets = [0, 0], sizes = [2, 32], strides = [1, 1]} : vector<4x32xf32> to vector<2x32xf32>
    %364 = vector.extract_strided_slice %362 {offsets = [0, 0], sizes = [2, 32], strides = [1, 1]} : vector<4x32xf32> to vector<2x32xf32>
    %365 = arith.select %30, %363, %364 : vector<2x32xi1>, vector<2x32xf32>
    %366 = vector.extract_strided_slice %98 {offsets = [0, 0], sizes = [2, 32], strides = [1, 1]} : vector<4x32xf32> to vector<2x32xf32>
    %367 = vector.extract_strided_slice %329 {offsets = [0, 0], sizes = [2, 32], strides = [1, 1]} : vector<4x32xf32> to vector<2x32xf32>
    %368 = arith.select %30, %366, %367 : vector<2x32xi1>, vector<2x32xf32>
    %369 = vector.extract_strided_slice %131 {offsets = [0, 0], sizes = [2, 32], strides = [1, 1]} : vector<4x32xf32> to vector<2x32xf32>
    %370 = vector.extract_strided_slice %296 {offsets = [0, 0], sizes = [2, 32], strides = [1, 1]} : vector<4x32xf32> to vector<2x32xf32>
    %371 = arith.select %30, %369, %370 : vector<2x32xi1>, vector<2x32xf32>
    %372 = vector.extract_strided_slice %164 {offsets = [0, 0], sizes = [2, 32], strides = [1, 1]} : vector<4x32xf32> to vector<2x32xf32>
    %373 = vector.extract_strided_slice %263 {offsets = [0, 0], sizes = [2, 32], strides = [1, 1]} : vector<4x32xf32> to vector<2x32xf32>
    %374 = arith.select %30, %372, %373 : vector<2x32xi1>, vector<2x32xf32>
    %375 = vector.extract_strided_slice %197 {offsets = [0, 0], sizes = [2, 32], strides = [1, 1]} : vector<4x32xf32> to vector<2x32xf32>
    %376 = vector.extract_strided_slice %230 {offsets = [0, 0], sizes = [2, 32], strides = [1, 1]} : vector<4x32xf32> to vector<2x32xf32>
    %377 = arith.select %30, %375, %376 : vector<2x32xi1>, vector<2x32xf32>
    %378 = vector.extract_strided_slice %230 {offsets = [0, 0], sizes = [2, 32], strides = [1, 1]} : vector<4x32xf32> to vector<2x32xf32>
    %379 = vector.extract_strided_slice %197 {offsets = [0, 0], sizes = [2, 32], strides = [1, 1]} : vector<4x32xf32> to vector<2x32xf32>
    %380 = arith.select %30, %378, %379 : vector<2x32xi1>, vector<2x32xf32>
    %381 = vector.extract_strided_slice %263 {offsets = [0, 0], sizes = [2, 32], strides = [1, 1]} : vector<4x32xf32> to vector<2x32xf32>
    %382 = vector.extract_strided_slice %164 {offsets = [0, 0], sizes = [2, 32], strides = [1, 1]} : vector<4x32xf32> to vector<2x32xf32>
    %383 = arith.select %30, %381, %382 : vector<2x32xi1>, vector<2x32xf32>
    %384 = vector.extract_strided_slice %296 {offsets = [0, 0], sizes = [2, 32], strides = [1, 1]} : vector<4x32xf32> to vector<2x32xf32>
    %385 = vector.extract_strided_slice %131 {offsets = [0, 0], sizes = [2, 32], strides = [1, 1]} : vector<4x32xf32> to vector<2x32xf32>
    %386 = arith.select %30, %384, %385 : vector<2x32xi1>, vector<2x32xf32>
    %387 = vector.extract_strided_slice %329 {offsets = [0, 0], sizes = [2, 32], strides = [1, 1]} : vector<4x32xf32> to vector<2x32xf32>
    %388 = vector.extract_strided_slice %98 {offsets = [0, 0], sizes = [2, 32], strides = [1, 1]} : vector<4x32xf32> to vector<2x32xf32>
    %389 = arith.select %30, %387, %388 : vector<2x32xi1>, vector<2x32xf32>
    %390 = vector.extract_strided_slice %362 {offsets = [0, 0], sizes = [2, 32], strides = [1, 1]} : vector<4x32xf32> to vector<2x32xf32>
    %391 = vector.extract_strided_slice %65 {offsets = [0, 0], sizes = [2, 32], strides = [1, 1]} : vector<4x32xf32> to vector<2x32xf32>
    %392 = arith.select %30, %390, %391 : vector<2x32xi1>, vector<2x32xf32>
    %393 = vector.shape_cast %365 : vector<2x32xf32> to vector<2x1x32xf32>
    %394 = vector.shape_cast %368 : vector<2x32xf32> to vector<2x1x32xf32>
    %395 = vector.shape_cast %371 : vector<2x32xf32> to vector<2x1x32xf32>
    %396 = vector.shape_cast %374 : vector<2x32xf32> to vector<2x1x32xf32>
    %397 = vector.shape_cast %377 : vector<2x32xf32> to vector<2x1x32xf32>
    %398 = vector.shape_cast %380 : vector<2x32xf32> to vector<2x1x32xf32>
    %399 = vector.shape_cast %383 : vector<2x32xf32> to vector<2x1x32xf32>
    %400 = vector.shape_cast %386 : vector<2x32xf32> to vector<2x1x32xf32>
    %401 = vector.shape_cast %389 : vector<2x32xf32> to vector<2x1x32xf32>
    %402 = vector.shape_cast %392 : vector<2x32xf32> to vector<2x1x32xf32>
    %403 = tpu.concatenate %393, %394, %395, %396, %397, %398, %399, %400, %401, %402 in 1 : vector<2x1x32xf32>, vector<2x1x32xf32>, vector<2x1x32xf32>, vector<2x1x32xf32>, vector<2x1x32xf32>, vector<2x1x32xf32>, vector<2x1x32xf32>, vector<2x1x32xf32>, vector<2x1x32xf32>, vector<2x1x32xf32> -> vector<2x10x32xf32>
    %c0_54 = arith.constant 0 : index
    %c0_55 = arith.constant 0 : index
    %c0_56 = arith.constant 0 : index
    %404 = vector.load %arg5[%c0_54, %c0_55, %c0_56] : memref<2x10x32xf32, #tpu.memory_space<vmem>>, vector<2x10x32xf32>
    tpu.vector_store %arg5[%c0_54, %c0_55, %c0_56], %403 {strides = array<i32>} : memref<2x10x32xf32, #tpu.memory_space<vmem>>, vector<2x10x32xf32>,
    %405 = vector.extract_strided_slice %65 {offsets = [2, 0], sizes = [2, 32], strides = [1, 1]} : vector<4x32xf32> to vector<2x32xf32>
    %406 = vector.extract_strided_slice %296 {offsets = [2, 0], sizes = [2, 32], strides = [1, 1]} : vector<4x32xf32> to vector<2x32xf32>
    %407 = arith.select %30, %405, %406 : vector<2x32xi1>, vector<2x32xf32>
    %408 = vector.extract_strided_slice %98 {offsets = [2, 0], sizes = [2, 32], strides = [1, 1]} : vector<4x32xf32> to vector<2x32xf32>
    %409 = vector.extract_strided_slice %263 {offsets = [2, 0], sizes = [2, 32], strides = [1, 1]} : vector<4x32xf32> to vector<2x32xf32>
    %410 = arith.select %30, %408, %409 : vector<2x32xi1>, vector<2x32xf32>
    %411 = vector.extract_strided_slice %131 {offsets = [2, 0], sizes = [2, 32], strides = [1, 1]} : vector<4x32xf32> to vector<2x32xf32>
    %412 = vector.extract_strided_slice %230 {offsets = [2, 0], sizes = [2, 32], strides = [1, 1]} : vector<4x32xf32> to vector<2x32xf32>
    %413 = arith.select %30, %411, %412 : vector<2x32xi1>, vector<2x32xf32>
    %414 = vector.extract_strided_slice %164 {offsets = [2, 0], sizes = [2, 32], strides = [1, 1]} : vector<4x32xf32> to vector<2x32xf32>
    %415 = vector.extract_strided_slice %197 {offsets = [2, 0], sizes = [2, 32], strides = [1, 1]} : vector<4x32xf32> to vector<2x32xf32>
    %416 = arith.select %30, %414, %415 : vector<2x32xi1>, vector<2x32xf32>
    %417 = vector.extract_strided_slice %197 {offsets = [2, 0], sizes = [2, 32], strides = [1, 1]} : vector<4x32xf32> to vector<2x32xf32>
    %418 = vector.extract_strided_slice %164 {offsets = [2, 0], sizes = [2, 32], strides = [1, 1]} : vector<4x32xf32> to vector<2x32xf32>
    %419 = arith.select %30, %417, %418 : vector<2x32xi1>, vector<2x32xf32>
    %420 = vector.extract_strided_slice %230 {offsets = [2, 0], sizes = [2, 32], strides = [1, 1]} : vector<4x32xf32> to vector<2x32xf32>
    %421 = vector.extract_strided_slice %131 {offsets = [2, 0], sizes = [2, 32], strides = [1, 1]} : vector<4x32xf32> to vector<2x32xf32>
    %422 = arith.select %30, %420, %421 : vector<2x32xi1>, vector<2x32xf32>
    %423 = vector.extract_strided_slice %263 {offsets = [2, 0], sizes = [2, 32], strides = [1, 1]} : vector<4x32xf32> to vector<2x32xf32>
    %424 = vector.extract_strided_slice %98 {offsets = [2, 0], sizes = [2, 32], strides = [1, 1]} : vector<4x32xf32> to vector<2x32xf32>
    %425 = arith.select %30, %423, %424 : vector<2x32xi1>, vector<2x32xf32>
    %426 = vector.extract_strided_slice %296 {offsets = [2, 0], sizes = [2, 32], strides = [1, 1]} : vector<4x32xf32> to vector<2x32xf32>
    %427 = vector.extract_strided_slice %65 {offsets = [2, 0], sizes = [2, 32], strides = [1, 1]} : vector<4x32xf32> to vector<2x32xf32>
    %428 = arith.select %30, %426, %427 : vector<2x32xi1>, vector<2x32xf32>
    %429 = vector.shape_cast %407 : vector<2x32xf32> to vector<2x1x32xf32>
    %430 = vector.shape_cast %410 : vector<2x32xf32> to vector<2x1x32xf32>
    %431 = vector.shape_cast %413 : vector<2x32xf32> to vector<2x1x32xf32>
    %432 = vector.shape_cast %416 : vector<2x32xf32> to vector<2x1x32xf32>
    %433 = vector.shape_cast %419 : vector<2x32xf32> to vector<2x1x32xf32>
    %434 = vector.shape_cast %422 : vector<2x32xf32> to vector<2x1x32xf32>
    %435 = vector.shape_cast %425 : vector<2x32xf32> to vector<2x1x32xf32>
    %436 = vector.shape_cast %428 : vector<2x32xf32> to vector<2x1x32xf32>
    %437 = tpu.concatenate %429, %430, %431, %432, %433, %434, %435, %436 in 1 : vector<2x1x32xf32>, vector<2x1x32xf32>, vector<2x1x32xf32>, vector<2x1x32xf32>, vector<2x1x32xf32>, vector<2x1x32xf32>, vector<2x1x32xf32>, vector<2x1x32xf32> -> vector<2x8x32xf32>
    %c0_57 = arith.constant 0 : index
    %c0_58 = arith.constant 0 : index
    %c0_59 = arith.constant 0 : index
    %438 = vector.load %arg6[%c0_57, %c0_58, %c0_59] : memref<2x8x32xf32, #tpu.memory_space<vmem>>, vector<2x8x32xf32>
    tpu.vector_store %arg6[%c0_57, %c0_58, %c0_59], %437 {strides = array<i32>} : memref<2x8x32xf32, #tpu.memory_space<vmem>>, vector<2x8x32xf32>,
    return
  }
  func.func @transform_0(%arg0: i32) -> (i32, i32, i32) {
    %c0_i32 = arith.constant 0 : i32
    %c0_i32_0 = arith.constant 0 : i32
    %c0_i32_1 = arith.constant 0 : i32
    %c0_i32_2 = arith.constant 0 : i32
    return %c0_i32, %c0_i32_0, %c0_i32_1 : i32, i32, i32
  }
  func.func @transform_1(%arg0: i32) -> (i32, i32) {
    %c0_i32 = arith.constant 0 : i32
    %c0_i32_0 = arith.constant 0 : i32
    %c0_i32_1 = arith.constant 0 : i32
    return %c0_i32, %c0_i32_0 : i32, i32
  }
  func.func @transform_2(%arg0: i32) -> (i32, i32) {
    %c0_i32 = arith.constant 0 : i32
    %c0_i32_0 = arith.constant 0 : i32
    %c0_i32_1 = arith.constant 0 : i32
    return %c0_i32, %c0_i32_0 : i32, i32
  }
  func.func @transform_3(%arg0: i32) -> (i32, i32) {
    %c0_i32 = arith.constant 0 : i32
    %c0_i32_0 = arith.constant 0 : i32
    %c0_i32_1 = arith.constant 0 : i32
    return %c0_i32, %c0_i32_0 : i32, i32
  }
  func.func @transform_4(%arg0: i32) -> (i32, i32, i32) {
    %c0_i32 = arith.constant 0 : i32
    %c0_i32_0 = arith.constant 0 : i32
    %c0_i32_1 = arith.constant 0 : i32
    %c0_i32_2 = arith.constant 0 : i32
    return %c0_i32, %c0_i32_0, %c0_i32_1 : i32, i32, i32
  }
  func.func @transform_5(%arg0: i32) -> (i32, i32, i32) {
    %c0_i32 = arith.constant 0 : i32
    %c0_i32_0 = arith.constant 0 : i32
    %c0_i32_1 = arith.constant 0 : i32
    %c0_i32_2 = arith.constant 0 : i32
    return %c0_i32, %c0_i32_0, %c0_i32_1 : i32, i32, i32
  }
}

module attributes {stable_mosaic.version = 11 : i64} {
  func.func @table_kernel(%arg0: i32, %arg1: memref<1x10x32xf32, #tpu.memory_space<vmem>>, %arg2: memref<1x8x32xf32, #tpu.memory_space<vmem>>, %arg3: memref<10x32xf32, #tpu.memory_space<vmem>>, %arg4: memref<10x32xf32, #tpu.memory_space<vmem>>, %arg5: memref<8x32xf32, #tpu.memory_space<vmem>>, %arg6: memref<8x32xf32, #tpu.memory_space<vmem>>, %arg7: memref<32x32xf32, #tpu.memory_space<vmem>>, %arg8: memref<32x256xf32, #tpu.memory_space<vmem>>, %arg9: memref<32x32xf32, #tpu.memory_space<vmem>>, %arg10: memref<1x32xf32, #tpu.memory_space<vmem>>, %arg11: memref<1x10x256xf32, #tpu.memory_space<vmem>>, %arg12: memref<1x256xf32, #tpu.memory_space<vmem>>, %arg13: memref<1x256xf32, #tpu.memory_space<vmem>>, %arg14: memref<256x256xf32, #tpu.memory_space<vmem>>, %arg15: memref<1x10x256xf32, #tpu.memory_space<vmem>>) attributes {dimension_semantics = [#tpu.dimension_semantics<parallel>], iteration_bounds = array<i64: 2>, scalar_prefetch = 0 : i64, scratch_operands = 0 : i64, tpu.core_type = #tpu.core_type<tc>, window_params = [{transform_indices = @transform_0, window_bounds = array<i64: 1, 10, 32>}, {transform_indices = @transform_1, window_bounds = array<i64: 1, 8, 32>}, {pipeline_mode = #tpu.pipeline_mode<synchronous>, transform_indices = @transform_2, window_bounds = array<i64: 10, 32>}, {pipeline_mode = #tpu.pipeline_mode<synchronous>, transform_indices = @transform_3, window_bounds = array<i64: 10, 32>}, {pipeline_mode = #tpu.pipeline_mode<synchronous>, transform_indices = @transform_4, window_bounds = array<i64: 8, 32>}, {pipeline_mode = #tpu.pipeline_mode<synchronous>, transform_indices = @transform_5, window_bounds = array<i64: 8, 32>}, {pipeline_mode = #tpu.pipeline_mode<synchronous>, transform_indices = @transform_6, window_bounds = array<i64: 32, 32>}, {pipeline_mode = #tpu.pipeline_mode<synchronous>, transform_indices = @transform_7, window_bounds = array<i64: 32, 256>}, {pipeline_mode = #tpu.pipeline_mode<synchronous>, transform_indices = @transform_8, window_bounds = array<i64: 32, 32>}, {pipeline_mode = #tpu.pipeline_mode<synchronous>, transform_indices = @transform_9, window_bounds = array<i64: 1, 32>}, {transform_indices = @transform_10, window_bounds = array<i64: 1, 10, 256>}, {pipeline_mode = #tpu.pipeline_mode<synchronous>, transform_indices = @transform_11, window_bounds = array<i64: 1, 256>}, {pipeline_mode = #tpu.pipeline_mode<synchronous>, transform_indices = @transform_12, window_bounds = array<i64: 1, 256>}, {pipeline_mode = #tpu.pipeline_mode<synchronous>, transform_indices = @transform_13, window_bounds = array<i64: 256, 256>}, {transform_indices = @transform_14, window_bounds = array<i64: 1, 10, 256>}]} {
    %c0 = arith.constant 0 : index
    %c0_0 = arith.constant 0 : index
    %c0_1 = arith.constant 0 : index
    %0 = vector.load %arg1[%c0, %c0_0, %c0_1] : memref<1x10x32xf32, #tpu.memory_space<vmem>>, vector<1x10x32xf32>
    %1 = vector.shape_cast %0 : vector<1x10x32xf32> to vector<10x32xf32>
    %c0_2 = arith.constant 0 : index
    %c0_3 = arith.constant 0 : index
    %c0_4 = arith.constant 0 : index
    %2 = vector.load %arg2[%c0_2, %c0_3, %c0_4] : memref<1x8x32xf32, #tpu.memory_space<vmem>>, vector<1x8x32xf32>
    %3 = vector.shape_cast %2 : vector<1x8x32xf32> to vector<8x32xf32>
    %c0_5 = arith.constant 0 : index
    %c0_6 = arith.constant 0 : index
    %4 = vector.load %arg7[%c0_5, %c0_6] : memref<32x32xf32, #tpu.memory_space<vmem>>, vector<32x32xf32>
    %c0_7 = arith.constant 0 : index
    %c0_8 = arith.constant 0 : index
    %5 = vector.load %arg3[%c0_7, %c0_8] : memref<10x32xf32, #tpu.memory_space<vmem>>, vector<10x32xf32>
    %6 = arith.mulf %1, %5 : vector<10x32xf32>
    %cst = arith.constant dense<0.000000e+00> : vector<10x32xf32>
    %7 = tpu.matmul %1, %4, %cst {dimension_numbers = #tpu.dot_dimension_numbers<[1], [0], [0], [1], [0, 0, 1, 1], [], []>} : vector<10x32xf32>, vector<32x32xf32>, vector<10x32xf32> -> vector<10x32xf32>
    %c0_9 = arith.constant 0 : index
    %c0_10 = arith.constant 0 : index
    %8 = vector.load %arg4[%c0_9, %c0_10] : memref<10x32xf32, #tpu.memory_space<vmem>>, vector<10x32xf32>
    %9 = arith.mulf %7, %8 : vector<10x32xf32>
    %10 = arith.addf %6, %9 : vector<10x32xf32>
    %c0_11 = arith.constant 0 : index
    %c0_12 = arith.constant 0 : index
    %11 = vector.load %arg5[%c0_11, %c0_12] : memref<8x32xf32, #tpu.memory_space<vmem>>, vector<8x32xf32>
    %12 = arith.mulf %3, %11 : vector<8x32xf32>
    %cst_13 = arith.constant dense<0.000000e+00> : vector<8x32xf32>
    %13 = tpu.matmul %3, %4, %cst_13 {dimension_numbers = #tpu.dot_dimension_numbers<[1], [0], [0], [1], [0, 0, 1, 1], [], []>} : vector<8x32xf32>, vector<32x32xf32>, vector<8x32xf32> -> vector<8x32xf32>
    %c0_14 = arith.constant 0 : index
    %c0_15 = arith.constant 0 : index
    %14 = vector.load %arg6[%c0_14, %c0_15] : memref<8x32xf32, #tpu.memory_space<vmem>>, vector<8x32xf32>
    %15 = arith.mulf %13, %14 : vector<8x32xf32>
    %16 = arith.addf %12, %15 : vector<8x32xf32>
    %c0_16 = arith.constant 0 : index
    %c0_17 = arith.constant 0 : index
    %17 = vector.load %arg8[%c0_16, %c0_17] : memref<32x256xf32, #tpu.memory_space<vmem>>, vector<32x256xf32>
    %cst_18 = arith.constant dense<0.000000e+00> : vector<10x256xf32>
    %18 = tpu.matmul %10, %17, %cst_18 {dimension_numbers = #tpu.dot_dimension_numbers<[1], [0], [0], [1], [0, 0, 1, 1], [], []>} : vector<10x32xf32>, vector<32x256xf32>, vector<10x256xf32> -> vector<10x256xf32>
    %c0_19 = arith.constant 0 : index
    %c0_20 = arith.constant 0 : index
    %19 = vector.load %arg9[%c0_19, %c0_20] : memref<32x32xf32, #tpu.memory_space<vmem>>, vector<32x32xf32>
    %cst_21 = arith.constant dense<0.000000e+00> : vector<8x32xf32>
    %20 = tpu.matmul %16, %19, %cst_21 {dimension_numbers = #tpu.dot_dimension_numbers<[1], [0], [0], [1], [0, 0, 1, 1], [], []>} : vector<8x32xf32>, vector<32x32xf32>, vector<8x32xf32> -> vector<8x32xf32>
    %c0_22 = arith.constant 0 : index
    %c0_23 = arith.constant 0 : index
    %21 = vector.load %arg10[%c0_22, %c0_23] : memref<1x32xf32, #tpu.memory_space<vmem>>, vector<1x32xf32>
    %22 = vector.broadcast %21 : vector<1x32xf32> to vector<8x32xf32>
    %23 = arith.addf %20, %22 : vector<8x32xf32>
    %24 = vector.extract_strided_slice %23 {offsets = [0, 0], sizes = [1, 32], strides = [1, 1]} : vector<8x32xf32> to vector<1x32xf32>
    %25 = vector.extract_strided_slice %23 {offsets = [1, 0], sizes = [1, 32], strides = [1, 1]} : vector<8x32xf32> to vector<1x32xf32>
    %26 = vector.extract_strided_slice %23 {offsets = [2, 0], sizes = [1, 32], strides = [1, 1]} : vector<8x32xf32> to vector<1x32xf32>
    %27 = vector.extract_strided_slice %23 {offsets = [3, 0], sizes = [1, 32], strides = [1, 1]} : vector<8x32xf32> to vector<1x32xf32>
    %28 = vector.extract_strided_slice %23 {offsets = [4, 0], sizes = [1, 32], strides = [1, 1]} : vector<8x32xf32> to vector<1x32xf32>
    %29 = vector.extract_strided_slice %23 {offsets = [5, 0], sizes = [1, 32], strides = [1, 1]} : vector<8x32xf32> to vector<1x32xf32>
    %30 = vector.extract_strided_slice %23 {offsets = [6, 0], sizes = [1, 32], strides = [1, 1]} : vector<8x32xf32> to vector<1x32xf32>
    %31 = vector.extract_strided_slice %23 {offsets = [7, 0], sizes = [1, 32], strides = [1, 1]} : vector<8x32xf32> to vector<1x32xf32>
    %32 = tpu.concatenate %24, %25, %26, %27, %28, %29, %30, %31 in 1 : vector<1x32xf32>, vector<1x32xf32>, vector<1x32xf32>, vector<1x32xf32>, vector<1x32xf32>, vector<1x32xf32>, vector<1x32xf32>, vector<1x32xf32> -> vector<1x256xf32>
    %33 = vector.broadcast %32 : vector<1x256xf32> to vector<10x256xf32>
    %34 = arith.addf %18, %33 : vector<10x256xf32>
    %cst_24 = arith.constant 0.000000e+00 : f32
    %35 = vector.broadcast %cst_24 : f32 to vector<10x256xf32>
    %36 = arith.maximumf %34, %35 : vector<10x256xf32>
    %c0_25 = arith.constant 0 : index
    %c0_26 = arith.constant 0 : index
    %c0_27 = arith.constant 0 : index
    %37 = vector.load %arg11[%c0_25, %c0_26, %c0_27] : memref<1x10x256xf32, #tpu.memory_space<vmem>>, vector<1x10x256xf32>
    %38 = vector.shape_cast %37 : vector<1x10x256xf32> to vector<10x256xf32>
    %39 = arith.addf %36, %38 : vector<10x256xf32>
    %c0_28 = arith.constant 0 : index
    %c0_29 = arith.constant 0 : index
    %40 = vector.load %arg14[%c0_28, %c0_29] : memref<256x256xf32, #tpu.memory_space<vmem>>, vector<256x256xf32>
    %cst_30 = arith.constant dense<0.000000e+00> : vector<10x256xf32>
    %41 = tpu.matmul %39, %40, %cst_30 {dimension_numbers = #tpu.dot_dimension_numbers<[1], [0], [0], [1], [0, 0, 1, 1], [], []>} : vector<10x256xf32>, vector<256x256xf32>, vector<10x256xf32> -> vector<10x256xf32>
    %42 = arith.subf %39, %41 : vector<10x256xf32>
    %43 = arith.mulf %42, %42 : vector<10x256xf32>
    %cst_31 = arith.constant dense<0.000000e+00> : vector<10x256xf32>
    %44 = tpu.matmul %43, %40, %cst_31 {dimension_numbers = #tpu.dot_dimension_numbers<[1], [0], [0], [1], [0, 0, 1, 1], [], []>} : vector<10x256xf32>, vector<256x256xf32>, vector<10x256xf32> -> vector<10x256xf32>
    %cst_32 = arith.constant 9.99999974E-6 : f32
    %45 = vector.broadcast %cst_32 : f32 to vector<10x256xf32>
    %46 = arith.addf %44, %45 : vector<10x256xf32>
    %47 = math.rsqrt %46 : vector<10x256xf32>
    %48 = arith.mulf %42, %47 : vector<10x256xf32>
    %c0_33 = arith.constant 0 : index
    %c0_34 = arith.constant 0 : index
    %49 = vector.load %arg12[%c0_33, %c0_34] : memref<1x256xf32, #tpu.memory_space<vmem>>, vector<1x256xf32>
    %50 = vector.broadcast %49 : vector<1x256xf32> to vector<10x256xf32>
    %51 = arith.mulf %48, %50 : vector<10x256xf32>
    %c0_35 = arith.constant 0 : index
    %c0_36 = arith.constant 0 : index
    %52 = vector.load %arg13[%c0_35, %c0_36] : memref<1x256xf32, #tpu.memory_space<vmem>>, vector<1x256xf32>
    %53 = vector.broadcast %52 : vector<1x256xf32> to vector<10x256xf32>
    %54 = arith.addf %51, %53 : vector<10x256xf32>
    %c0_37 = arith.constant 0 : index
    %c0_38 = arith.constant 0 : index
    %c0_39 = arith.constant 0 : index
    %55 = vector.load %arg15[%c0_37, %c0_38, %c0_39] : memref<1x10x256xf32, #tpu.memory_space<vmem>>, vector<1x10x256xf32>
    %56 = vector.shape_cast %55 : vector<1x10x256xf32> to vector<10x256xf32>
    %57 = vector.shape_cast %54 : vector<10x256xf32> to vector<1x10x256xf32>
    tpu.vector_store %arg15[%c0_37, %c0_38, %c0_39], %57 {strides = array<i32>} : memref<1x10x256xf32, #tpu.memory_space<vmem>>, vector<1x10x256xf32>,
    return
  }
  func.func @transform_0(%arg0: i32) -> (i32, i32, i32) {
    %c0_i32 = arith.constant 0 : i32
    %c0_i32_0 = arith.constant 0 : i32
    %c0_i32_1 = arith.constant 0 : i32
    return %arg0, %c0_i32, %c0_i32_0 : i32, i32, i32
  }
  func.func @transform_1(%arg0: i32) -> (i32, i32, i32) {
    %c0_i32 = arith.constant 0 : i32
    %c0_i32_0 = arith.constant 0 : i32
    %c0_i32_1 = arith.constant 0 : i32
    return %arg0, %c0_i32, %c0_i32_0 : i32, i32, i32
  }
  func.func @transform_2(%arg0: i32) -> (i32, i32) {
    %c0_i32 = arith.constant 0 : i32
    %c0_i32_0 = arith.constant 0 : i32
    %c0_i32_1 = arith.constant 0 : i32
    return %c0_i32, %c0_i32_0 : i32, i32
  }
  func.func @transform_3(%arg0: i32) -> (i32, i32) {
    %c0_i32 = arith.constant 0 : i32
    %c0_i32_0 = arith.constant 0 : i32
    %c0_i32_1 = arith.constant 0 : i32
    return %c0_i32, %c0_i32_0 : i32, i32
  }
  func.func @transform_4(%arg0: i32) -> (i32, i32) {
    %c0_i32 = arith.constant 0 : i32
    %c0_i32_0 = arith.constant 0 : i32
    %c0_i32_1 = arith.constant 0 : i32
    return %c0_i32, %c0_i32_0 : i32, i32
  }
  func.func @transform_5(%arg0: i32) -> (i32, i32) {
    %c0_i32 = arith.constant 0 : i32
    %c0_i32_0 = arith.constant 0 : i32
    %c0_i32_1 = arith.constant 0 : i32
    return %c0_i32, %c0_i32_0 : i32, i32
  }
  func.func @transform_6(%arg0: i32) -> (i32, i32) {
    %c0_i32 = arith.constant 0 : i32
    %c0_i32_0 = arith.constant 0 : i32
    %c0_i32_1 = arith.constant 0 : i32
    return %c0_i32, %c0_i32_0 : i32, i32
  }
  func.func @transform_7(%arg0: i32) -> (i32, i32) {
    %c0_i32 = arith.constant 0 : i32
    %c0_i32_0 = arith.constant 0 : i32
    %c0_i32_1 = arith.constant 0 : i32
    return %c0_i32, %c0_i32_0 : i32, i32
  }
  func.func @transform_8(%arg0: i32) -> (i32, i32) {
    %c0_i32 = arith.constant 0 : i32
    %c0_i32_0 = arith.constant 0 : i32
    %c0_i32_1 = arith.constant 0 : i32
    return %c0_i32, %c0_i32_0 : i32, i32
  }
  func.func @transform_9(%arg0: i32) -> (i32, i32) {
    %c0_i32 = arith.constant 0 : i32
    %c0_i32_0 = arith.constant 0 : i32
    %c0_i32_1 = arith.constant 0 : i32
    return %c0_i32, %c0_i32_0 : i32, i32
  }
  func.func @transform_10(%arg0: i32) -> (i32, i32, i32) {
    %c0_i32 = arith.constant 0 : i32
    %c0_i32_0 = arith.constant 0 : i32
    %c0_i32_1 = arith.constant 0 : i32
    return %arg0, %c0_i32, %c0_i32_0 : i32, i32, i32
  }
  func.func @transform_11(%arg0: i32) -> (i32, i32) {
    %c0_i32 = arith.constant 0 : i32
    %c0_i32_0 = arith.constant 0 : i32
    %c0_i32_1 = arith.constant 0 : i32
    return %c0_i32, %c0_i32_0 : i32, i32
  }
  func.func @transform_12(%arg0: i32) -> (i32, i32) {
    %c0_i32 = arith.constant 0 : i32
    %c0_i32_0 = arith.constant 0 : i32
    %c0_i32_1 = arith.constant 0 : i32
    return %c0_i32, %c0_i32_0 : i32, i32
  }
  func.func @transform_13(%arg0: i32) -> (i32, i32) {
    %c0_i32 = arith.constant 0 : i32
    %c0_i32_0 = arith.constant 0 : i32
    %c0_i32_1 = arith.constant 0 : i32
    return %c0_i32, %c0_i32_0 : i32, i32
  }
  func.func @transform_14(%arg0: i32) -> (i32, i32, i32) {
    %c0_i32 = arith.constant 0 : i32
    %c0_i32_0 = arith.constant 0 : i32
    %c0_i32_1 = arith.constant 0 : i32
    return %arg0, %c0_i32, %c0_i32_0 : i32, i32, i32
  }
}

</mosaic_0001>

<bundles_post_ra>
// kernel: joint_module_forward.5
= control target key start
LH: loop header
LB: loop body
LE: loop exit
PB: predicated region body
PF: predicated region fallthrough
CT: control target
= control target key end

     0   :  { %s1443_s29 = smov 0   ;;  %s1774_s0 = inlined_call_operand.vmem [shape: f32[2,10,32], index: 0, kind: input, shape index: {}]   ;;  %s1775_s1 = inlined_call_operand.vmem [shape: f32[2,8,32], index: 1, kind: input, shape index: {}]   ;;  %s1776_s2 = inlined_call_operand.vmem [shape: f32[10,32], index: 2, kind: input, shape index: {}]   ;;  %s1777_s3 = inlined_call_operand.vmem [shape: f32[10,32], index: 3, kind: input, shape index: {}]   ;;  %s1778_s4 = inlined_call_operand.vmem [shape: f32[8,32], index: 4, kind: input, shape index: {}]   ;;  %s1779_s5 = inlined_call_operand.vmem [shape: f32[8,32], index: 5, kind: input, shape index: {}]   ;;  %s1780_s6 = inlined_call_operand.vmem [shape: f32[32,32], index: 6, kind: input, shape index: {}]   ;;  %s1781_s7 = inlined_call_operand.vmem [shape: f32[32,256], index: 7, kind: input, shape index: {}]   ;;  %s1782_s8 = inlined_call_operand.vmem [shape: f32[32,32], index: 8, kind: input, shape index: {}]   ;;  %s1783_s9 = inlined_call_operand.vmem [shape: f32[1,32], index: 9, kind: input, shape index: {}]   ;;  %s1784_s10 = inlined_call_operand.vmem [shape: f32[2,10,256], index: 10, kind: input, shape index: {}]   ;;  %s1785_s11 = inlined_call_operand.vmem [shape: f32[1,256], index: 11, kind: input, shape index: {}]   ;;  %s1786_s12 = inlined_call_operand.vmem [shape: f32[1,256], index: 12, kind: input, shape index: {}]   ;;  %s1787_s13 = inlined_call_operand.vmem [shape: f32[256,256], index: 13, kind: input, shape index: {}]   ;;  %s1788_s14 = inlined_call_operand.vmem [shape: f32[2,10,256], index: 14, kind: output, shape index: {}]  }
   0x1 LB: > { %s1261_s30 = sadd.s32 4294967295, %s1361_s29   ;;  %p1265_p0 = scmp.ge.s32.totalorder %s1361_s29, 1  ;;  %s1361_s29 = sphi %s1443_s29, %s24_s29  }
   0x2   : > { %p431_p1 = scmp.lt.s32.totalorder %s1361_s29, 3 }
   0x4   : > { %p432_p2 = pnand %p1265_p0, %p431_p1 }
   0x5   : > { %p486_p3 = scmp.lt.s32.totalorder (!%p432_p2), %s1261_s30, 1  ;;  %s1365_s19 = smov (!%p432_p2), 64  }
   0x6   : > { %435 = sbr.rel (%p432_p2) target bundleno = 969 (0x3c9), region = 76  ;;  %s1366_s20 = smov (!%p432_p2), 32  }
   0x7   : > { %s1367_s17 = smov (!%p432_p2), 96  }
   0xb   : > { %v511_v0 = vld [vmem:[%s1780_s6 + $0x18] sm:$0xff]  ;;  %v1363_v1 = vmov 0.0   ;;  %v510_v2 = vld [vmem:[%s1780_s6 + $0x10] sm:$0xff]  ;;  %vm1364_vm0 = vmmov 0   ;;  %s1790_s30 = smov (!%p486_p3, %s1261_s30), 1  ;;  %v509_v3 = vld [vmem:[%s1780_s6 + $0x8] sm:$0xff] }
   0xc   : > { %1312 = vmatprep.subr.mxu1 %v1363_v1  ;;  %1320 = vmatprep.mubr.msk.f32.mxu1 %vm1364_vm0, %v1363_v1  ;;  %s1268_s21 = sshll.u32 %s1790_s30, 3  ;;  %v508_v4 = vld [vmem:[%s1780_s6] sm:$0xff]  ;;  %vm516_vm1 = vcmask 261120   ;;  %s1282_s27 = sshll.u32 %s1790_s30, 4  ;;  %v693_v8 = vld [vmem:[%s1782_s8 + $0x18] sm:$0xff]  ;;  %v692_v9 = vld [vmem:[%s1782_s8 + $0x10] sm:$0xff] }
   0xd   : > { %1313 = vmatpush3.msra.mxu1 %v511_v0  ;;  %1301 = vmatprep.subr.mxu0 %v511_v0  ;;  %s494_s26 = scalar_lea.vmem %s1775_s1, %s1268_s21  ;;  %s490_s16 = scalar_lea.vmem %s1774_s0, %s1282_s27  ;;  %v691_v10 = vld [vmem:[%s1782_s8 + $0x8] sm:$0xff]  ;;  %v690_v11 = vld [vmem:[%s1782_s8] sm:$0xff]  ;;  %v689_v12 = vld [vmem:[%s1781_s7 + $0x38] sm:$0xff]  ;;  %vm802_vm2 = vcmask 523264   ;;  %vm804_vm3 = vcmask 785408  }
   0xe   : > { %1314 = vmatprep.subr.mxu1 %v1363_v1  ;;  %1302 = vmatpush3.msra.mxu0 %v511_v0  ;;  %v507_v5 = vld [vmem:[%s494_s26] sm:$0xff]  ;;  %v506_v7 = vld [vmem:[%s490_s16 + $0x8] sm:$0x3]  ;;  %v688_v13 = vld [vmem:[%s1781_s7 + $0x30] sm:$0xff]  ;;  %s1283_s18 = sshll.u32 %s1790_s30, 5 }
   0xf   : > { %1315 = vmatpush3.msra.mxu1 %v510_v2  ;;  %1303 = vmatprep.subr.mxu0 %v510_v2  ;;  %v505_v6 = vld [vmem:[%s490_s16] sm:$0xff]  ;;  %v687_v14 = vld [vmem:[%s1781_s7 + $0x28] sm:$0xff]  ;;  %v685_v16 = vld [vmem:[%s1781_s7 + $0x18] sm:$0xff]  ;;  %s499_s21 = scalar_lea.vmem %s1784_s10, %s1283_s18  ;;  %s504_s28 = scalar_lea.vmem %s1788_s14, %s1283_s18 }
  0x10   : > { %1316 = vmatprep.subr.mxu1 %v1363_v1  ;;  %1304 = vmatpush3.msra.mxu0 %v510_v2  ;;  %v686_v15 = vld [vmem:[%s1781_s7 + $0x20] sm:$0xff]  ;;  %v684_v17 = vld [vmem:[%s1781_s7 + $0x10] sm:$0xff]  ;;  %v683_v18 = vld [vmem:[%s1781_s7 + $0x8] sm:$0xff] }
  0x11   : > { %1317 = vmatpush3.msra.mxu1 %v509_v3  ;;  %1305 = vmatprep.subr.mxu0 %v509_v3  ;;  %v682_v19 = vld [vmem:[%s1781_s7] sm:$0xff]  ;;  %v513_v26 = vld [vmem:[%s1776_s2 + $0x8] sm:$0x3]  ;;  %v943_v39 = vld [vmem:[%s1787_s13 + $0xf8] sm:$0xff] }
  0x12   : > { %1318 = vmatprep.subr.mxu1 %v1363_v1  ;;  %1306 = vmatpush3.msra.mxu0 %v509_v3  ;;  %v604_v20 = vld [vmem:[%s1778_s4] sm:$0xff]  ;;  %v599_v29 = vld [vmem:[%s1777_s3 + $0x8] sm:$0x3]  ;;  %v515_v34 = vmul.f32 %v513_v26, %v506_v7  ;;  %v942_v40 = vld [vmem:[%s1787_s13 + $0xf0] sm:$0xff] }
  0x13   : > { %1319 = vmatpush3.msra.mxu1 %v508_v4  ;;  %1307 = vmatprep.subr.mxu0 %v508_v4  ;;  %v679_v21 = vld [vmem:[%s1779_s5] sm:$0xff]  ;;  %v605_v22 = vmul.f32 %v604_v20, %v507_v5  ;;  %v941_v41 = vld [vmem:[%s1787_s13 + $0xe8] sm:$0xff]  ;;  %v939_v43 = vld [vmem:[%s1787_s13 + $0xd8] sm:$0xff] }
  0x14   : > { %1321 = vmatmul.mubr.msk.f32.vlgmr.msra.gmra.mxu1 %vm516_vm1, %v507_v5  ;;  %1308 = vmatpush3.msra.mxu0 %v508_v4  ;;  %v512_v23 = vld [vmem:[%s1776_s2] sm:$0xff]  ;;  %v938_v44 = vld [vmem:[%s1787_s13 + $0xd0] sm:$0xff]  ;;  %v937_v45 = vld [vmem:[%s1787_s13 + $0xc8] sm:$0xff] }
  0x15   : > { %1309 = vmatprep.mubr.msk.f32.mxu0 %vm516_vm1, %v505_v6  ;;  %1323 = vmatprep.subr.mxu0 %v1363_v1  ;;  %v598_v30 = vld [vmem:[%s1777_s3] sm:$0xff]  ;;  %v514_v31 = vmul.f32 %v512_v23, %v505_v6  ;;  %v935_v47 = vld [vmem:[%s1787_s13 + $0xb8] sm:$0xff]  ;;  %v934_v48 = vld [vmem:[%s1787_s13 + $0xb0] sm:$0xff] }
  0x16   : > { %1310 = vmatmul.mubr.msk.f32.vlgmr.msra.gmra.mxu0 %vm516_vm1, %v506_v7  ;;  %887 = vmatprep.mubr.f32.mxu1 %v1363_v1  ;;  %v940_v42 = vld [vmem:[%s1787_s13 + $0xe0] sm:$0xff]  ;;  %v933_v49 = vld [vmem:[%s1787_s13 + $0xa8] sm:$0xff]  ;;  %v931_v51 = vld [vmem:[%s1787_s13 + $0x98] sm:$0xff] }
  0x17   : > { %1324 = vmatpush3.msra.mxu0 %v693_v8  ;;  %1331 = vmatprep.mubr.msk.f32.mxu0 %vm1364_vm0, %v1363_v1  ;;  %v936_v46 = vld [vmem:[%s1787_s13 + $0xc0] sm:$0xff]  ;;  %v930_v52 = vld [vmem:[%s1787_s13 + $0x90] sm:$0xff]  ;;  %v929_v53 = vld [vmem:[%s1787_s13 + $0x88] sm:$0xff] }
  0x18   : > { %1325 = vmatprep.subr.mxu0 %v1363_v1  ;;  %847 = vmatprep.subr.mxu1 %v689_v12  ;;  %v932_v50 = vld [vmem:[%s1787_s13 + $0xa0] sm:$0xff]  ;;  %v927_v55 = vld [vmem:[%s1787_s13 + $0x78] sm:$0xff]  ;;  %v926_v56 = vld [vmem:[%s1787_s13 + $0x70] sm:$0xff] }
  0x19   : > { %1326 = vmatpush3.msra.mxu0 %v692_v9  ;;  %848 = vmatpush1.msra.mxu1 %v688_v13  ;;  %v928_v54 = vld [vmem:[%s1787_s13 + $0x80] sm:$0xff]  ;;  %v925_v57 = vld [vmem:[%s1787_s13 + $0x68] sm:$0xff]  ;;  %v923_v59 = vld [vmem:[%s1787_s13 + $0x58] sm:$0xff] }
  0x1a   : > { %1327 = vmatprep.subr.mxu0 %v1363_v1  ;;  %849 = vmatprep.subr.mxu1 %v687_v14  ;;  %v924_v58 = vld [vmem:[%s1787_s13 + $0x60] sm:$0xff]  ;;  %v922_v60 = vld [vmem:[%s1787_s13 + $0x50] sm:$0xff]  ;;  %v921_v61 = vld [vmem:[%s1787_s13 + $0x48] sm:$0xff] }
  0x1b   : > { %1328 = vmatpush3.msra.mxu0 %v691_v10  ;;  %850 = vmatpush1.msra.mxu1 %v686_v15  ;;  %v920_v62 = vld [vmem:[%s1787_s13 + $0x40] sm:$0xff]  ;;  %v919_v63 = vld [vmem:[%s1787_s13 + $0x38] sm:$0xff]  ;;  %v918_v0 = vld [vmem:[%s1787_s13 + $0x30] sm:$0xff] }
  0x1c   : > { %1329 = vmatprep.subr.mxu0 %v1363_v1  ;;  %851 = vmatprep.subr.mxu1 %v685_v16  ;;  %v916_v2 = vld [vmem:[%s1787_s13 + $0x20] sm:$0xff]  ;;  %v915_v3 = vld [vmem:[%s1787_s13 + $0x18] sm:$0xff]  ;;  %v914_v4 = vld [vmem:[%s1787_s13 + $0x10] sm:$0xff] }
  0x1d   : > { %1330 = vmatpush3.msra.mxu0 %v690_v11  ;;  %852 = vmatpush1.msra.mxu1 %v684_v17  ;;  %v913_v5 = vld [vmem:[%s1787_s13 + $0x8] sm:$0xff]  ;;  %v912_v6 = vld [vmem:[%s1787_s13] sm:$0xff]  ;;  %v975_v7 = vld [vmem:[%s1787_s13 + $0x1f8] sm:$0xff] }
  0x1e   : > { %853 = vmatprep.subr.mxu1 %v683_v18  ;;  %976 = vmatprep.subr.mxu0 %v943_v39  ;;  %v974_v8 = vld [vmem:[%s1787_s13 + $0x1f0] sm:$0xff]  ;;  %v973_v9 = vld [vmem:[%s1787_s13 + $0x1e8] sm:$0xff]  ;;  %v972_v10 = vld [vmem:[%s1787_s13 + $0x1e0] sm:$0xff] }
  0x1f   : > { %854 = vmatpush1.msra.mxu1 %v682_v19  ;;  %v971_v11 = vld [vmem:[%s1787_s13 + $0x1d8] sm:$0xff]  ;;  %v970_v12 = vld [vmem:[%s1787_s13 + $0x1d0] sm:$0xff]  ;;  %v969_v13 = vld [vmem:[%s1787_s13 + $0x1c8] sm:$0xff] }
  0x20   : > { %1061 = vmatprep.subr.mxu1 %v943_v39  ;;  %v968_v14 = vld [vmem:[%s1787_s13 + $0x1c0] sm:$0xff]  ;;  %v967_v15 = vld [vmem:[%s1787_s13 + $0x1b8] sm:$0xff]  ;;  %v966_v16 = vld [vmem:[%s1787_s13 + $0x1b0] sm:$0xff] }
  0x21   : > { %v965_v17 = vld [vmem:[%s1787_s13 + $0x1a8] sm:$0xff]  ;;  %v964_v18 = vld [vmem:[%s1787_s13 + $0x1a0] sm:$0xff]  ;;  %v963_v19 = vld [vmem:[%s1787_s13 + $0x198] sm:$0xff] }
  0x22   : > { %v962_v20 = vld [vmem:[%s1787_s13 + $0x190] sm:$0xff]  ;;  %v959_v23 = vld [vmem:[%s1787_s13 + $0x178] sm:$0xff]  ;;  %v956_v26 = vld [vmem:[%s1787_s13 + $0x160] sm:$0xff] }
  0x23   : > { %v949_v39 = vld [vmem:[%s1787_s13 + $0x128] sm:$0xff] }
  0xd4   : > { %v675_v24 = vpop.f32.mrf.mxu1 }
  0xd5   : > { %v680_v25 = vmul.f32 %v679_v21, %v675_v24  ;;  %v961_v21 = vld [vmem:[%s1787_s13 + $0x188] sm:$0xff]  ;;  %v958_v24 = vld [vmem:[%s1787_s13 + $0x170] sm:$0xff] }
  0xd6   : > { %v1322_v27 = vpop.f32.mrf.mxu1  ;;  %v1311_v28 = vpop.f32.mrf.mxu0 }
  0xd7   : > { %v681_v32 = vadd.f32 %v680_v25, %v605_v22  ;;  %v601_v35 = vmul.f32 %v1311_v28, %v599_v29  ;;  %v960_v22 = vld [vmem:[%s1787_s13 + $0x180] sm:$0xff]  ;;  %v957_v25 = vld [vmem:[%s1787_s13 + $0x168] sm:$0xff]  ;;  %v955_v27 = vld [vmem:[%s1787_s13 + $0x158] sm:$0xff] }
  0xd8   : > { %v589_v33 = vpop.f32.mrf.mxu0  ;;  %v954_v28 = vld [vmem:[%s1787_s13 + $0x150] sm:$0xff]  ;;  %v1276_v29 = vld [vmem:[%s1783_s9] ss:$0 sm:$0xff] }
  0xd9   : > { %1332 = vmatmul.mubr.msk.f32.vlgmr.msra.gmra.mxu0 %vm516_vm1, %v681_v32  ;;  %v600_v36 = vmul.f32 %v598_v30, %v589_v33  ;;  %v603_v38 = vadd.f32 %v601_v35, %v515_v34  ;;  %v952_v33 = vld [vmem:[%s1787_s13 + $0x140] sm:$0xff]  ;;  %v951_v35 = vld [vmem:[%s1787_s13 + $0x138] sm:$0xff] }
  0xda   : > { %977 = vmatpush1.msra.mxu0 %v942_v40 }
  0xdb   : > { %v602_v37 = vadd.f32 %v600_v36, %v514_v31  ;;  %978 = vmatprep.subr.mxu0 %v941_v41  ;;  %v953_v31 = vld [vmem:[%s1787_s13 + $0x148] sm:$0xff] }
  0xdc   : > { %979 = vmatpush1.msra.mxu0 %v940_v42 }
  0xdd   : > { %1278 = vmatmul.mubr.msk.f32.vlgmr.msra.gmra.mxu1 %vm516_vm1, %v602_v37  ;;  %980 = vmatprep.subr.mxu0 %v939_v43 }
  0xde   : > { %893 = vmatprep.mubr.f32.mxu1 %v1363_v1  ;;  %1062 = vmatpush1.msra.mxu1 %v942_v40  ;;  %v917_v1 = vld [vmem:[%s1787_s13 + $0x28] sm:$0xff]  ;;  %v948_v40 = vld [vmem:[%s1787_s13 + $0x120] sm:$0xff] }
  0xdf   : > { %1063 = vmatprep.subr.mxu1 %v941_v41  ;;  %981 = vmatpush1.msra.mxu0 %v938_v44  ;;  %v947_v41 = vld [vmem:[%s1787_s13 + $0x118] sm:$0xff] }
  0xe0   : > { %1064 = vmatpush1.msra.mxu1 %v940_v42  ;;  %982 = vmatprep.subr.mxu0 %v937_v45 }
  0xe1   : > { %1279 = vmatmul.mubr.msk.f32.gmra.mxu1 %vm516_vm1, %v603_v38  ;;  %1065 = vmatprep.subr.mxu1 %v939_v43  ;;  %v950_v38 = vld [vmem:[%s1787_s13 + $0x130] sm:$0xff] }
  0xe2   : > { %1066 = vmatpush1.msra.mxu1 %v938_v44  ;;  %983 = vmatpush1.msra.mxu0 %v936_v46  ;;  %v946_v44 = vld [vmem:[%s1787_s13 + $0x110] sm:$0xff] }
  0xe3   : > { %1067 = vmatprep.subr.mxu1 %v937_v45  ;;  %984 = vmatprep.subr.mxu0 %v935_v47  ;;  %v945_v45 = vld [vmem:[%s1787_s13 + $0x108] sm:$0xff] }
  0xe4   : > { %1068 = vmatpush1.msra.mxu1 %v936_v46  ;;  %985 = vmatpush1.msra.mxu0 %v934_v48  ;;  %v944_v46 = vld [vmem:[%s1787_s13 + $0x100] sm:$0xff] }
  0xe5   : > { %1069 = vmatprep.subr.mxu1 %v935_v47  ;;  %986 = vmatprep.subr.mxu0 %v933_v49 }
  0xe6   : > { %1070 = vmatpush1.msra.mxu1 %v934_v48  ;;  %987 = vmatpush1.msra.mxu0 %v932_v50 }
  0xe7   : > { %1071 = vmatprep.subr.mxu1 %v933_v49  ;;  %988 = vmatprep.subr.mxu0 %v931_v51  ;;  %v809_v49 = vlaneseq }
  0xe8   : > { %1072 = vmatpush1.msra.mxu1 %v932_v50  ;;  %989 = vmatpush1.msra.mxu0 %v930_v52 }
  0xe9   : > { %1073 = vmatprep.subr.mxu1 %v931_v51  ;;  %990 = vmatprep.subr.mxu0 %v929_v53 }
  0xea   : > { %1074 = vmatpush1.msra.mxu1 %v930_v52  ;;  %991 = vmatpush1.msra.mxu0 %v928_v54 }
  0xeb   : > { %1075 = vmatprep.subr.mxu1 %v929_v53  ;;  %992 = vmatprep.subr.mxu0 %v927_v55  ;;  %v1742_v53 = vshrl.u32 %v809_v49, 7 }
  0xec   : > { %1076 = vmatpush1.msra.mxu1 %v928_v54  ;;  %993 = vmatpush1.msra.mxu0 %v926_v56 }
  0xed   : > { %1077 = vmatprep.subr.mxu1 %v927_v55  ;;  %994 = vmatprep.subr.mxu0 %v925_v57 }
  0xee   : > { %1078 = vmatpush1.msra.mxu1 %v926_v56  ;;  %995 = vmatpush1.msra.mxu0 %v924_v58 }
  0xef   : > { %1079 = vmatprep.subr.mxu1 %v925_v57  ;;  %996 = vmatprep.subr.mxu0 %v923_v59 }
  0xf0   : > { %1080 = vmatpush1.msra.mxu1 %v924_v58  ;;  %997 = vmatpush1.msra.mxu0 %v922_v60 }
  0xf1   : > { %1081 = vmatprep.subr.mxu1 %v923_v59  ;;  %998 = vmatprep.subr.mxu0 %v921_v61 }
  0xf2   : > { %1082 = vmatpush1.msra.mxu1 %v922_v60  ;;  %999 = vmatpush1.msra.mxu0 %v920_v62  ;;  %v1747_v60 = vsub.s32 0, %v1742_v53 }
  0xf3   : > { %1083 = vmatprep.subr.mxu1 %v921_v61  ;;  %1000 = vmatprep.subr.mxu0 %v919_v63 }
  0xf4   : > { %1084 = vmatpush1.msra.mxu1 %v920_v62  ;;  %1001 = vmatpush1.msra.mxu0 %v918_v0 }
  0xf5   : > { %1085 = vmatprep.subr.mxu1 %v919_v63  ;;  %1002 = vmatprep.subr.mxu0 %v917_v1 }
  0xf6   : > { %1086 = vmatpush1.msra.mxu1 %v918_v0  ;;  %1003 = vmatpush1.msra.mxu0 %v916_v2 }
  0xf7   : > { %1087 = vmatprep.subr.mxu1 %v917_v1  ;;  %1004 = vmatprep.subr.mxu0 %v915_v3 }
  0xf8   : > { %1088 = vmatpush1.msra.mxu1 %v916_v2  ;;  %1005 = vmatpush1.msra.mxu0 %v914_v4 }
  0xf9   : > { %1089 = vmatprep.subr.mxu1 %v915_v3  ;;  %1006 = vmatprep.subr.mxu0 %v913_v5 }
  0xfa   : > { %1090 = vmatpush1.msra.mxu1 %v914_v4  ;;  %1007 = vmatpush1.msra.mxu0 %v912_v6 }
  0xfb   : > { %1091 = vmatprep.subr.mxu1 %v913_v5  ;;  %1008 = vmatprep.subr.mxu0 %v975_v7 }
  0xfc   : > { %1092 = vmatpush1.msra.mxu1 %v912_v6  ;;  %1009 = vmatpush2.msra.mxu0 %v974_v8 }
  0xfd   : > { %1093 = vmatprep.subr.mxu1 %v975_v7  ;;  %1010 = vmatprep.subr.mxu0 %v973_v9 }
  0xfe   : > { %1094 = vmatpush2.msra.mxu1 %v974_v8  ;;  %1011 = vmatpush2.msra.mxu0 %v972_v10 }
  0xff   : > { %1095 = vmatprep.subr.mxu1 %v973_v9  ;;  %1012 = vmatprep.subr.mxu0 %v971_v11 }
 0x100   : > { %1096 = vmatpush2.msra.mxu1 %v972_v10  ;;  %1013 = vmatpush2.msra.mxu0 %v970_v12  ;;  %v904_v10 = vld [vmem:[%s499_s21] sm:$0xff] }
 0x101   : > { %1097 = vmatprep.subr.mxu1 %v971_v11  ;;  %1014 = vmatprep.subr.mxu0 %v969_v13 }
 0x102   : > { %1098 = vmatpush2.msra.mxu1 %v970_v12  ;;  %1015 = vmatpush2.msra.mxu0 %v968_v14  ;;  %v905_v12 = vld [vmem:[%s499_s21 + $0x8] sm:$0xff] }
 0x103   : > { %1099 = vmatprep.subr.mxu1 %v969_v13  ;;  %1016 = vmatprep.subr.mxu0 %v967_v15 }
 0x104   : > { %1100 = vmatpush2.msra.mxu1 %v968_v14  ;;  %1017 = vmatpush2.msra.mxu0 %v966_v16 }
 0x105   : > { %1101 = vmatprep.subr.mxu1 %v967_v15  ;;  %1018 = vmatprep.subr.mxu0 %v965_v17 }
 0x106   : > { %1102 = vmatpush2.msra.mxu1 %v966_v16  ;;  %1019 = vmatpush2.msra.mxu0 %v964_v18  ;;  %v907_v16 = vld [vmem:[%s499_s21 + $0x18] sm:$0x3] }
 0x107   : > { %1103 = vmatprep.subr.mxu1 %v965_v17  ;;  %1020 = vmatprep.subr.mxu0 %v963_v19 }
 0x108   : > { %1104 = vmatpush2.msra.mxu1 %v964_v18  ;;  %1021 = vmatpush2.msra.mxu0 %v962_v20 }
 0x109   : > { %1105 = vmatprep.subr.mxu1 %v963_v19  ;;  %1022 = vmatprep.subr.mxu0 %v961_v21 }
 0x10a   : > { %1106 = vmatpush2.msra.mxu1 %v962_v20  ;;  %1023 = vmatpush2.msra.mxu0 %v960_v22 }
 0x10b   : > { %1107 = vmatprep.subr.mxu1 %v961_v21  ;;  %1024 = vmatprep.subr.mxu0 %v959_v23  ;;  %v906_v21 = vld [vmem:[%s499_s21 + $0x10] sm:$0x3] }
 0x10c   : > { %1108 = vmatpush2.msra.mxu1 %v960_v22  ;;  %1025 = vmatpush2.msra.mxu0 %v958_v24 }
 0x10d   : > { %1109 = vmatprep.subr.mxu1 %v959_v23  ;;  %1026 = vmatprep.subr.mxu0 %v957_v25 }
 0x10e   : > { %1110 = vmatpush2.msra.mxu1 %v958_v24  ;;  %1027 = vmatpush2.msra.mxu0 %v956_v26 }
 0x10f   : > { %1111 = vmatprep.subr.mxu1 %v957_v25  ;;  %1028 = vmatprep.subr.mxu0 %v955_v27 }
 0x110   : > { %1112 = vmatpush2.msra.mxu1 %v956_v26  ;;  %1029 = vmatpush2.msra.mxu0 %v954_v28 }
 0x111   : > { %1113 = vmatprep.subr.mxu1 %v955_v27  ;;  %1030 = vmatprep.subr.mxu0 %v953_v31 }
 0x112   : > { %1114 = vmatpush2.msra.mxu1 %v954_v28  ;;  %1031 = vmatpush2.msra.mxu0 %v952_v33 }
 0x113   : > { %1115 = vmatprep.subr.mxu1 %v953_v31  ;;  %1032 = vmatprep.subr.mxu0 %v951_v35 }
 0x114   : > { %1116 = vmatpush2.msra.mxu1 %v952_v33  ;;  %1033 = vmatpush2.msra.mxu0 %v950_v38 }
 0x115   : > { %1117 = vmatprep.subr.mxu1 %v951_v35  ;;  %1034 = vmatprep.subr.mxu0 %v949_v39 }
 0x116   : > { %1118 = vmatpush2.msra.mxu1 %v950_v38  ;;  %1035 = vmatpush2.msra.mxu0 %v948_v40 }
 0x117   : > { %1119 = vmatprep.subr.mxu1 %v949_v39  ;;  %1036 = vmatprep.subr.mxu0 %v947_v41 }
 0x118   : > { %1120 = vmatpush2.msra.mxu1 %v948_v40  ;;  %1037 = vmatpush2.msra.mxu0 %v946_v44 }
 0x119   : > { %1121 = vmatprep.subr.mxu1 %v947_v41  ;;  %1038 = vmatprep.subr.mxu0 %v945_v45 }
 0x11a   : > { %1122 = vmatpush2.msra.mxu1 %v946_v44  ;;  %1039 = vmatpush2.msra.mxu0 %v944_v46  ;;  %v1154_v44 = vsub.s32 1, %v1742_v53 }
 0x11b   : > { %1123 = vmatprep.subr.mxu1 %v945_v45  ;;  %v1162_v45 = vld [vmem:[%s1786_s12] sm:$0x3] }
 0x11c   : > { %1124 = vmatpush2.msra.mxu1 %v944_v46  ;;  %v1167_v49 = vrot.slane %v1162_v45, %v1747_v60 }
 0x199   : > { %v770_v30 = vpop.f32.mrf.mxu0 }
 0x19a   : > { %v771_v32 = vadd.f32 %v1276_v29, %v770_v30 }
 0x19b   : > { %v1333_v34 = vpop.f32.mrf.mxu0 }
 0x19c   : > { %v793_v36 = vrot.slane %v771_v32, 6  ;;  %v789_v37 = vrot.slane %v771_v32, 5  ;;  %v779_v42 = vrot.slane %v771_v32, 2  ;;  %v775_v43 = vrot.slane %v771_v32, 1 }
 0x19d   : > { %v783_v47 = vrot.slane %v771_v32, 3  ;;  %v797_v48 = vrot.slane %v771_v32, 7  ;;  %v889_v50 = vpop.f32.mrf.mxu1  ;;  %v787_v54 = vrot.slane %v771_v32, 4 }
 0x19e   : > { %794 = vrot.lane.b32.xlu1 %v793_v36, %s1365_s19  ;;  %790 = vrot.lane.b32.xlu0 %v789_v37, %s1366_s20 }
 0x19f   : > { %v891_v55 = vpop.f32.mrf.mxu1 }
 0x1a1   : > { %v895_v61 = vpop.f32.mrf.mxu1 }
 0x1a2   : > { %780 = vrot.lane.b32.xlu1 %v779_v42, %s1365_s19  ;;  %776 = vrot.lane.b32.xlu0 %v775_v43, %s1366_s20  ;;  %v1146_v43 = vld [vmem:[%s1785_s11] sm:$0x3] }
 0x1a3   : > { %v897_v6 = vpop.f32.mrf.mxu1  ;;  %v1151_v46 = vrot.slane %v1146_v43, %v1747_v60 }
 0x1a6   : > { %784 = vrot.lane.b32.xlu1 %v783_v47, %s1367_s17  ;;  %798 = vrot.lane.b32.xlu0 %v797_v48, %s1367_s17  ;;  %v1155_v48 = vrot.slane %v1146_v43, %v1154_v44 }
 0x210   : > { %v795_v51 = vpop.permute.xlu1 %794  ;;  %v791_v52 = vpop.permute.xlu0 %790 }
 0x211   : > { %v806_v58 = vsel %vm516_vm1, %v787_v54, %v791_v52  ;;  %v1171_v52 = vrot.slane %v1162_v45, %v1154_v44 }
 0x212   : > { %v807_v0 = vsel %vm802_vm2, %v806_v58, %v795_v51 }
 0x214   : > { %v781_v56 = vpop.permute.xlu1 %780  ;;  %v777_v57 = vpop.permute.xlu0 %776 }
 0x215   : > { %v801_v59 = vsel %vm516_vm1, %v771_v32, %v777_v57 }
 0x216   : > { %v803_v63 = vsel %vm802_vm2, %v801_v59, %v781_v56 }
 0x218   : > { %v785_v62 = vpop.permute.xlu1 %784  ;;  %v799_v1 = vpop.permute.xlu0 %798 }
 0x219   : > { %v805_v2 = vsel %vm804_vm3, %v803_v63, %v785_v62  ;;  %v808_v3 = vsel %vm804_vm3, %v807_v0, %v799_v1 }
 0x21a   : > { %v812_v4 = vrot.slane %v805_v2, %v1747_v60  ;;  %v816_v5 = vrot.slane %v808_v3, %v1747_v60 }
 0x21c   : > { %v890_v7 = vadd.f32 %v889_v50, %v812_v4  ;;  %v892_v8 = vadd.f32 %v891_v55, %v816_v5  ;;  %v898_v9 = vadd.f32 %v897_v6, %v816_v5  ;;  %v896_v11 = vadd.f32 %v895_v61, %v812_v4 }
 0x21e   : > { %v900_v13 = vmax.f32 %v890_v7, 0.0  ;;  %v901_v14 = vmax.f32 %v892_v8, 0.0  ;;  %v903_v15 = vmax.f32 %v898_v9, 0.0  ;;  %v902_v19 = vmax.f32 %v896_v11, 0.0 }
 0x220   : > { %v908_v17 = vadd.f32 %v904_v10, %v900_v13  ;;  %v909_v18 = vadd.f32 %v905_v12, %v901_v14  ;;  %v911_v20 = vadd.f32 %v907_v16, %v903_v15  ;;  %v910_v22 = vadd.f32 %v906_v21, %v902_v19 }
 0x222   : > { %1040 = vmatprep.mubr.f32.mxu0 %v909_v18 }
 0x223   : > { %1041 = vmatmul.mubr.f32.vlgmr.msra.gmra.mxu0 %v908_v17 }
 0x224   : > { %1046 = vmatprep.mubr.f32.mxu0 %v911_v20 }
 0x227   : > { %1047 = vmatmul.mubr.f32.gmra.mxu0 %v910_v22 }
 0x2e3   : > { %v1042_v23 = vpop.f32.mrf.mxu0 }
 0x2e4   : > { %v1053_v24 = vsub.f32 %v908_v17, %v1042_v23 }
 0x2e5   : > { %v1044_v25 = vpop.f32.mrf.mxu0 }
 0x2e6   : > { %v1054_v26 = vsub.f32 %v909_v18, %v1044_v25  ;;  %v1057_v29 = vmul.f32 %v1053_v24, %v1053_v24 }
 0x2e7   : > { %v1048_v27 = vpop.f32.mrf.mxu0 }
 0x2e8   : > { %v1058_v28 = vmul.f32 %v1054_v26, %v1054_v26  ;;  %v1055_v30 = vsub.f32 %v910_v22, %v1048_v27 }
 0x2e9   : > { %v1050_v31 = vpop.f32.mrf.mxu0 }
 0x2ea   : > { %v1056_v32 = vsub.f32 %v911_v20, %v1050_v31  ;;  %1125 = vmatprep.mubr.f32.mxu1 %v1058_v28  ;;  %v1059_v34 = vmul.f32 %v1055_v30, %v1055_v30 }
 0x2eb   : > { %1126 = vmatmul.mubr.f32.vlgmr.msra.gmra.mxu1 %v1057_v29 }
 0x2ec   : > { %v1060_v33 = vmul.f32 %v1056_v32, %v1056_v32 }
 0x2ee   : > { %1131 = vmatprep.mubr.f32.mxu1 %v1060_v33 }
 0x2ef   : > { %1132 = vmatmul.mubr.f32.gmra.mxu1 %v1059_v34 }
 0x3ab   : > { %v1127_v35 = vpop.f32.mrf.mxu1 }
 0x3ac   : > { %v1128_v36 = vadd.f32 1e-05, %v1127_v35 }
 0x3ad   : > { %v1129_v37 = vpop.f32.mrf.mxu1 }
 0x3ae   : > { %1347 = vrsqrt.f32 %v1128_v36  ;;  %v1130_v38 = vadd.f32 1e-05, %v1129_v37 }
 0x3af   : > { %v1133_v39 = vpop.f32.mrf.mxu1 }
 0x3b0   : > { %1349 = vrsqrt.f32 %v1130_v38  ;;  %v1134_v40 = vadd.f32 1e-05, %v1133_v39 }
 0x3b1   : > { %v1135_v41 = vpop.f32.mrf.mxu1 }
 0x3b2   : > { %1351 = vrsqrt.f32 %v1134_v40  ;;  %v1136_v42 = vadd.f32 1e-05, %v1135_v41 }
 0x3b4   : > { %1353 = vrsqrt.f32 %v1136_v42 }
 0x3bb   : > { %v1348_v47 = vpop.eup %1347 }
 0x3bc   : > { %v1142_v50 = vmul.f32 %v1348_v47, %v1053_v24 }
 0x3bd   : > { %v1350_v51 = vpop.eup %1349 }
 0x3be   : > { %v1158_v54 = vmul.f32 %v1151_v46, %v1142_v50  ;;  %v1143_v55 = vmul.f32 %v1350_v51, %v1054_v26 }
 0x3bf   : > { %v1352_v56 = vpop.eup %1351 }
 0x3c0   : > { %v1174_v53 = vadd.f32 %v1167_v49, %v1158_v54  ;;  %v1159_v57 = vmul.f32 %v1155_v48, %v1143_v55  ;;  %v1144_v58 = vmul.f32 %v1352_v56, %v1055_v30 }
 0x3c1   : > { %v1354_v59 = vpop.eup %1353 }
 0x3c2   : > { %1178 = vst [vmem:[%s504_s28] sm:$0xff] %v1174_v53  ;;  %v1175_v61 = vadd.f32 %v1171_v52, %v1159_v57  ;;  %v1160_v62 = vmul.f32 %v1151_v46, %v1144_v58  ;;  %v1145_v63 = vmul.f32 %v1354_v59, %v1056_v32 }
 0x3c4   : > { %1179 = vst [vmem:[%s504_s28 + $0x8] sm:$0xff] %v1175_v61  ;;  %v1176_v60 = vadd.f32 %v1167_v49, %v1160_v62  ;;  %v1161_v0 = vmul.f32 %v1155_v48, %v1145_v63 }
 0x3c6   : > { %1180 = vst [vmem:[%s504_s28 + $0x10] sm:$0x3] %v1176_v60  ;;  %v1177_v1 = vadd.f32 %v1171_v52, %v1161_v0 }
 0x3c8   : > { %1181 = vst [vmem:[%s504_s28 + $0x18] sm:$0x3] %v1177_v1 }
 0x3c9 PF: > { %s24_s29 = sadd.s32 1, %s1361_s29  }
 0x3ca   : > { %p21_p4 = scmp.ge.s32.totalorder %s24_s29, 4  }
 0x3cc   :  { %23 = sbr.rel (!%p21_p4) target bundleno = 1 (0x1), region = 112 }

// kernel: joint_module_forward.4
= control target key start
LH: loop header
LB: loop body
LE: loop exit
PB: predicated region body
PF: predicated region fallthrough
CT: control target
= control target key end

     0   :  { %17 = vsyncpa [#allocation3], 0  ;;  %s1684_s0 = inlined_call_operand.hbm [shape: bf16[20,20], index: 0, kind: input, shape index: {}]   ;;  %s1685_s1 = inlined_call_operand.vmem [shape: bf16[20,16], index: 1, kind: input, shape index: {}]   ;;  %s1686_s2 = inlined_call_operand.hbm [shape: bf16[20,20], index: 2, kind: input, shape index: {}]   ;;  %s1687_s3 = inlined_call_operand.hbm [shape: bf16[16,16], index: 3, kind: input, shape index: {}]   ;;  %s1688_s4 = inlined_call_operand.hbm [shape: bf16[16,20], index: 4, kind: input, shape index: {}]   ;;  %s1689_s5 = inlined_call_operand.hbm [shape: bf16[16,16], index: 5, kind: input, shape index: {}]   ;;  %s1690_s6 = inlined_call_operand.vmem [shape: bf16[20,32], index: 6, kind: input, shape index: {}]   ;;  %s1691_s7 = inlined_call_operand.vmem [shape: bf16[16,32], index: 7, kind: input, shape index: {}]   ;;  %s1692_s8 = inlined_call_operand.hbm [shape: bf16[8,32,32], index: 8, kind: input, shape index: {}]   ;;  %s1693_s9 = inlined_call_operand.hbm [shape: f32[1,32], index: 9, kind: input, shape index: {}]   ;;  %s1694_s10 = inlined_call_operand.vmem [shape: f32[20,32], index: 10, kind: output, shape index: {0}]   ;;  %s1695_s11 = inlined_call_operand.vmem [shape: f32[16,32], index: 11, kind: output, shape index: {1}]  }
   0x1   :  { %18 = vsyncpa [#allocation5], 0 }
   0x2   :  { %19 = vsyncpa [#allocation8], 0 }
   0x3   :  { %20 = vsyncpa [#allocation11], 0  ;;  %s1470_s17 = smov [#allocation4]   ;;  %s1471_s19 = smov [#allocation7]  }
   0x4   :  { %s40_s18 = sshll.u32 %s1470_s17, 4  ;;  %s64_s20 = sshll.u32 %s1471_s19, 4  ;;  %s41_s18 = int_to_ptr.vmem [resolvable:$true] %s40_s18  ;;  %s65_s20 = int_to_ptr.vmem [resolvable:$true] %s64_s20 }
   0x5   :  { %s1330_s21 = scalar_lea.vmem %s41_s18, 192  ;;  %p1335_p1 = scmp.lt.s32.totalorder %s41_s18, %s41_s18 }
   0x6   :  { %p1331_p0 = scmp.ne.s32.totalorder %s41_s18, %s1330_s21  ;;  %p1336_p2 = scmp.lt.s32.totalorder %s1330_s21, %s1330_s21 }
   0x8   :  { %p1337_p3 = por %p1336_p2, %p1335_p1 }
   0xa   :  { %p1338_p4 = pnand %p1337_p3, %p1331_p0 }
   0xc   :  { %1341 = shalt.err (!%p1338_p4)
}
   0xd   :  { %s1472_s22 = smov 64   ;;  %s1473_s23 = smov 4  }
   0xe   :  { %46 = dma.hbm_to_vmem [thread:$0]  %s1686_s2, 192, %s41_s18, [#allocation5], %s1472_s22, %s1472_s22, %s1473_s23  }
   0xf   :  { %s1350_s26 = scalar_lea.vmem %s65_s20, 128  ;;  %p1355_p6 = scmp.lt.s32.totalorder %s65_s20, %s65_s20 }
  0x10   :  { %p1351_p5 = scmp.ne.s32.totalorder %s65_s20, %s1350_s26  ;;  %p1356_p7 = scmp.lt.s32.totalorder %s1350_s26, %s1350_s26 }
  0x12   :  { %p1357_p8 = por %p1356_p7, %p1355_p6 }
  0x14   :  { %p1358_p9 = pnand %p1357_p8, %p1351_p5 }
  0x16   :  { %1361 = shalt.err (!%p1358_p9)
}
  0x17   :  { %70 = dma.hbm_to_vmem [thread:$0]  %s1688_s4, 128, %s65_s20, [#allocation8], %s1472_s22, %s1472_s22, %s1473_s23  }
  0x18   :  { %s1474_s29 = smov [#allocation10]   ;;  %s1475_s12 = smov [#allocation2]  }
  0x19   :  { %s92_s30 = sshll.u32 %s1474_s29, 4  ;;  %s26_s13 = sshll.u32 %s1475_s12, 4  ;;  %s93_s30 = int_to_ptr.vmem [resolvable:$true] %s92_s30  ;;  %s27_s13 = int_to_ptr.vmem [resolvable:$true] %s26_s13 }
  0x1a   :  { %s1370_s2 = scalar_lea.vmem %s93_s30, 2048  ;;  %p1375_p11 = scmp.lt.s32.totalorder %s93_s30, %s93_s30 }
  0x1b   :  { %p1371_p10 = scmp.ne.s32.totalorder %s93_s30, %s1370_s2  ;;  %p1376_p12 = scmp.lt.s32.totalorder %s1370_s2, %s1370_s2 }
  0x1d   :  { %p1377_p13 = por %p1376_p12, %p1375_p11 }
  0x1f   :  { %p1378_p0 = pnand %p1377_p13, %p1371_p10 }
  0x21   :  { %1381 = shalt.err (!%p1378_p0)
}
  0x22   :  { %98 = dma.hbm_to_vmem [thread:$0]  %s1692_s8, 2048, %s93_s30, [#allocation11], %s1472_s22, %s1472_s22, %s1473_s23  }
  0x23   :  { %s1390_s4 = scalar_lea.vmem %s27_s13, 192  ;;  %p1395_p2 = scmp.lt.s32.totalorder %s27_s13, %s27_s13 }
  0x24   :  { %p1391_p1 = scmp.ne.s32.totalorder %s27_s13, %s1390_s4  ;;  %p1396_p3 = scmp.lt.s32.totalorder %s1390_s4, %s1390_s4 }
  0x26   :  { %p1397_p4 = por %p1396_p3, %p1395_p2 }
  0x28   :  { %p1398_p5 = pnand %p1397_p4, %p1391_p1 }
  0x2a   :  { %1401 = shalt.err (!%p1398_p5)
}
  0x2b   :  { %32 = dma.hbm_to_vmem [thread:$0]  %s1684_s0, 192, %s27_s13, [#allocation3], %s1472_s22, %s1472_s22, %s1473_s23  }
  0x2c   :  { %s1476_s18 = smov [#allocation6]   ;;  %s1477_s20 = smov [#allocation9]  }
  0x2d   :  { %s52_s19 = sshll.u32 %s1476_s18, 4  ;;  %s76_s21 = sshll.u32 %s1477_s20, 4  ;;  %s53_s19 = int_to_ptr.vmem [resolvable:$true] %s52_s19  ;;  %s77_s21 = int_to_ptr.vmem [resolvable:$true] %s76_s21 }
  0x2e   :  { %s1410_s8 = scalar_lea.vmem %s53_s19, 128  ;;  %p1415_p7 = scmp.lt.s32.totalorder %s53_s19, %s53_s19 }
  0x2f   :  { %p1411_p6 = scmp.ne.s32.totalorder %s53_s19, %s1410_s8  ;;  %p1416_p8 = scmp.lt.s32.totalorder %s1410_s8, %s1410_s8 }
  0x31   :  { %p1417_p9 = por %p1416_p8, %p1415_p7 }
  0x33   :  { %p1418_p10 = pnand %p1417_p9, %p1411_p6 }
  0x35   :  { %1421 = shalt.err (!%p1418_p10)
}
  0x36   :  { %58 = dma.hbm_to_vmem [thread:$0]  %s1687_s3, 128, %s53_s19, [#allocation5], %s1472_s22, %s1472_s22, %s1473_s23  }
  0x37   :  { %s1430_s0 = scalar_lea.vmem %s77_s21, 128  ;;  %p1435_p12 = scmp.lt.s32.totalorder %s77_s21, %s77_s21 }
  0x38   :  { %p1431_p11 = scmp.ne.s32.totalorder %s77_s21, %s1430_s0  ;;  %p1436_p13 = scmp.lt.s32.totalorder %s1430_s0, %s1430_s0 }
  0x3a   :  { %p1437_p0 = por %p1436_p13, %p1435_p12 }
  0x3c   :  { %p1438_p1 = pnand %p1437_p0, %p1431_p11 }
  0x3e   :  { %1441 = shalt.err (!%p1438_p1)
}
  0x3f   :  { %82 = dma.hbm_to_vmem [thread:$0]  %s1689_s5, 128, %s77_s21, [#allocation8], %s1472_s22, %s1472_s22, %s1473_s23  }
  0x40   :  { %s1478_s28 = smov [#allocation12]  }
  0x41   :  { %s105_s29 = sshll.u32 %s1478_s28, 4  ;;  %s106_s29 = int_to_ptr.vmem [resolvable:$true] %s105_s29 }
  0x42   :  { %s1450_s30 = scalar_lea.vmem %s106_s29, 16  ;;  %s1454_s3 = scalar_lea.vmem %s106_s29, 32 }
  0x43   :  { %p1451_p2 = scmp.ne.s32.totalorder %s106_s29, %s1450_s30  ;;  %p1455_p3 = scmp.lt.s32.totalorder %s106_s29, %s106_s29 }
  0x44   :  { %p1456_p4 = scmp.lt.s32.totalorder %s1454_s3, %s1450_s30 }
  0x46   :  { %p1457_p5 = por %p1456_p4, %p1455_p3 }
  0x48   :  { %p1458_p6 = pnand %p1457_p5, %p1451_p2 }
  0x4a   :  { %1461 = shalt.err (!%p1458_p6)
}
  0x4b   :  { %108 = dma.hbm_to_vmem [thread:$0]  %s1693_s9, 16, %s106_s29, [#allocation11]  }
  0x4c   :  { %1462 = dma.done.wait [#allocation3], 192  }
  0x4d   :  { %1463 = vsyncadd [#allocation3], 4294967104 }
  0x4e   :  { %1464 = dma.done.wait [#allocation5], 320  }
  0x4f   :  { %1465 = vsyncadd [#allocation5], 4294966976 }
  0x50   :  { %1466 = dma.done.wait [#allocation8], 256  }
  0x51   :  { %1467 = vsyncadd [#allocation8], 4294967040 }
  0x52   :  { %1468 = dma.done.wait [#allocation11], 2064  }
  0x53   :  { %1469 = vsyncadd [#allocation11], 4294965232  ;;  %vm196_vm0 = vcmask 1041408   ;;  %vm267_vm1 = vcmask 130048   ;;  %v1588_v1 = vld [vmem:[%s1691_s7] sm:$0xff]   ;;  %vm189_vm2 = vcmask 162816  }
  0x54   :  { %v1583_v0 = vld [vmem:[%s1690_s6 + $0x8] ss:$0 sps:$4 sm:$0x33]   ;;  %1183 = vmatprep.subr.bf16.mxu1 %v1588_v1  ;;  %v1296_v3 = vld [vmem:[%s1685_s1] sm:$0xff]   ;;  %v1303_v10 = vld [vmem:[#allocation10 + $0x8] sm:$0xff]   ;;  %vm336_vm3 = vcmask 261120  }
  0x55   :  { %1281 = vmatprep.subr.msk.bf16.mxu0 %vm196_vm0, %v1583_v0  ;;  %v198_v2 = vsel %vm196_vm0, %v1583_v0, 0  ;;  %1184 = vmatpush3.bf16.msra.mxu1 %v1588_v1  ;;  %v1297_v4 = vld [vmem:[%s1690_s6] sm:$0xff]   ;;  %v1298_v5 = vld [vmem:[%s1685_s1 + $0x8] ss:$0 sps:$4 sm:$0x33]   ;;  %v1304_v11 = vld [vmem:[#allocation10] sm:$0xff]  }
  0x56   :  { %1176 = vmatpush3.bf16.msra.mxu0 %v198_v2  ;;  %1185 = vmatprep.mubr.msk.bf16.mxu1 %vm267_vm1, %v1296_v3  ;;  %v1299_v6 = vld [vmem:[#allocation2] sm:$0xff]   ;;  %v1300_v7 = vld [vmem:[#allocation2 + $0x8] ss:$0 sps:$4 sm:$0x33]   ;;  %v1305_v19 = vld [vmem:[#allocation4] sm:$0xff]   ;;  %v1479_v28 = vmov 0.0  }
  0x57   :  { %1177 = vmatprep.subr.bf16.mxu0 %v1297_v4  ;;  %1179 = vmatprep.mubr.msk.bf16.mxu0 %vm189_vm2, %v1299_v6  ;;  %v1301_v8 = vld [vmem:[#allocation10 + $0x18] sm:$0xff]   ;;  %v1302_v9 = vld [vmem:[#allocation10 + $0x10] sm:$0xff]   ;;  %v1306_v26 = vld [vmem:[#allocation4 + $0x8] ss:$0 sps:$4 sm:$0x33]   ;;  %vm1480_vm4 = vmmov 0  }
  0x58   :  { %1186 = vmatmul.mubr.msk.bf16.vlgmr.msra.gmra.mxu1 %vm267_vm1, %v1298_v5  ;;  %1189 = vmatprep.subr.bf16.mxu1 %v1301_v8  ;;  %v1307_v25 = vld [vmem:[#allocation10 + $0x38] sm:$0xff]   ;;  %v1308_v27 = vld [vmem:[#allocation10 + $0x30] sm:$0xff]   ;;  %v1310_v30 = vld [vmem:[#allocation10 + $0x28] sm:$0xff]   ;;  %vm675_vm5 = vcmask 257024  }
  0x59   :  { %1190 = vmatpush3.bf16.msra.mxu1 %v1301_v8  ;;  %v1309_v29 = vld [vmem:[#allocation7] sm:$0xff]   ;;  %v1311_v31 = vld [vmem:[#allocation10 + $0x20] sm:$0xff]   ;;  %v1312_v51 = vld [vmem:[#allocation6] sm:$0xff]  }
  0x5a   :  { %1178 = vmatpush3.bf16.msra.mxu0 %v1297_v4  ;;  %1191 = vmatprep.subr.bf16.mxu1 %v1302_v9  ;;  %v1313_v52 = vld [vmem:[#allocation10 + $0x58] sm:$0xff]   ;;  %v1314_v55 = vld [vmem:[#allocation10 + $0x50] sm:$0xff]   ;;  %v1316_v60 = vld [vmem:[#allocation10 + $0x48] sm:$0xff]  }
  0x5b   :  { %1197 = vmatprep.subr.bf16.mxu0 %v1303_v10  ;;  %v1315_v59 = vld [vmem:[#allocation9] sm:$0xff]   ;;  %v1317_v61 = vld [vmem:[#allocation10 + $0x40] sm:$0xff]   ;;  %v1320_v63 = vld [vmem:[#allocation10 + $0x70] sm:$0xff]  }
  0x5c   :  { %v1318_v62 = vld [vmem:[#allocation10 + $0x78] sm:$0xff]  }
  0x5d   :  { %1180 = vmatmul.mubr.msk.bf16.vlgmr.msra.gmra.mxu0 %vm189_vm2, %v1300_v7  ;;  %1192 = vmatpush3.bf16.msra.mxu1 %v1302_v9 }
  0x5e   :  { %1198 = vmatpush3.bf16.msra.mxu0 %v1303_v10  ;;  %1282 = vmatprep.subr.msk.bf16.mxu1 %vm196_vm0, %v1583_v0 }
  0x5f   :  { %1199 = vmatprep.subr.bf16.mxu0 %v1304_v11 }
  0x62   :  { %1200 = vmatpush3.bf16.msra.mxu0 %v1304_v11 }
  0x63   :  { %1213 = vmatprep.subr.bf16.mxu0 %v1310_v30 }
 0x118   :  { %v1187_v12 = vpop.f32.mrf.mxu1 }
 0x119   :  { %v323_v20 = vpack.c.bf16 %v1187_v12, %v1187_v12 }
 0x11a   :  { %v308_v13 = vpop.f32.mrf.mxu1 }
 0x11c   :  { %v1188_v15 = vpop.f32.mrf.mxu1 }
 0x11d   :  { %v1181_v14 = vpop.f32.mrf.mxu0 }
 0x11e   :  { %v311_v17 = vpop.f32.mrf.mxu1  ;;  %v249_v22 = vpack.c.bf16 %v1181_v14, %v1181_v14 }
 0x11f   :  { %v234_v16 = vpop.f32.mrf.mxu0  ;;  %v322_v18 = vpack.c.bf16 %v311_v17, %v308_v13 }
 0x121   :  { %v1182_v21 = vpop.f32.mrf.mxu0  ;;  %1193 = vmatprep.mubr.msk.bf16.mxu1 %vm336_vm3, %v322_v18 }
 0x122   :  { %1194 = vmatmul.mubr.msk.bf16.vlgmr.msra.gmra.mxu1 %vm336_vm3, %v323_v20  ;;  %v1319_v21 = vld [vmem:[#allocation10 + $0x68] sm:$0xff]  }
 0x123   :  { %v237_v23 = vpop.f32.mrf.mxu0  ;;  %1206 = vmatpush3.bf16.msra.mxu1 %v198_v2  ;;  %1209 = vmatprep.mubr.msk.bf16.mxu1 %vm189_vm2, %v1305_v19 }
 0x124   :  { %v248_v24 = vpack.c.bf16 %v237_v23, %v234_v16  ;;  %1207 = vmatprep.subr.bf16.mxu1 %v1297_v4 }
 0x126   :  { %1201 = vmatprep.mubr.msk.bf16.mxu0 %vm336_vm3, %v248_v24 }
 0x127   :  { %1202 = vmatmul.mubr.msk.bf16.vlgmr.msra.gmra.mxu0 %vm336_vm3, %v249_v22  ;;  %1208 = vmatpush3.bf16.msra.mxu1 %v1297_v4 }
 0x128   :  { %1221 = vmatprep.subr.bf16.mxu1 %v1307_v25  ;;  %1214 = vmatpush3.bf16.msra.mxu0 %v1310_v30 }
 0x129   :  { %1215 = vmatprep.subr.bf16.mxu0 %v1311_v31 }
 0x12a   :  { %1210 = vmatmul.mubr.msk.bf16.vlgmr.msra.gmra.mxu1 %vm189_vm2, %v1306_v26  ;;  %v1321_v26 = vld [vmem:[#allocation10 + $0x60] sm:$0xff]  }
 0x12b   :  { %1222 = vmatpush3.bf16.msra.mxu1 %v1307_v25  ;;  %1225 = vmatprep.mubr.msk.bf16.mxu1 %vm336_vm3, %v1297_v4 }
 0x12c   :  { %1223 = vmatprep.subr.bf16.mxu1 %v1308_v27  ;;  %1216 = vmatpush3.bf16.msra.mxu0 %v1311_v31 }
 0x12d   :  { %1229 = vmatprep.subr.bf16.mxu0 %v1479_v28 }
 0x12f   :  { %1224 = vmatpush3.bf16.msra.mxu1 %v1308_v27 }
 0x130   :  { %1235 = vmatprep.subr.bf16.mxu1 %v1479_v28 }
 0x132   :  { %1226 = vmatmul.mubr.msk.bf16.vlgmr.msra.gmra.mxu1 %vm336_vm3, %v1583_v0 }
 0x133   :  { %1236 = vmatpush3.bf16.msra.mxu1 %v198_v2  ;;  %1239 = vmatprep.mubr.msk.bf16.mxu1 %vm1480_vm4, %v1479_v28 }
 0x134   :  { %1237 = vmatprep.subr.bf16.mxu1 %v1479_v28 }
 0x137   :  { %1238 = vmatpush3.bf16.msra.mxu1 %v1297_v4  ;;  %v1653_v4 = vld [vmem:[#allocation12] ss:$0 sm:$0xff] }
 0x138   :  { %1251 = vmatprep.subr.bf16.mxu1 %v1479_v28 }
 0x13a   :  { %1240 = vmatmul.mubr.msk.bf16.vlgmr.msra.gmra.mxu1 %vm189_vm2, %v1309_v29 }
 0x13b   :  { %1255 = vmatprep.mubr.msk.bf16.mxu1 %vm1480_vm4, %v1479_v28  ;;  %1252 = vmatpush3.bf16.msra.mxu1 %v1316_v60 }
 0x13c   :  { %1253 = vmatprep.subr.bf16.mxu1 %v1479_v28 }
 0x13f   :  { %1254 = vmatpush3.bf16.msra.mxu1 %v1317_v61 }
 0x140   :  { %1265 = vmatprep.subr.bf16.mxu1 %v1479_v28 }
 0x1e2   :  { %v1195_v32 = vpop.f32.mrf.mxu1 }
 0x1e4   :  { %v377_v33 = vpop.f32.mrf.mxu1 }
 0x1e6   :  { %v1196_v34 = vpop.f32.mrf.mxu1 }
 0x1e7   :  { %v1203_v35 = vpop.f32.mrf.mxu0 }
 0x1e8   :  { %v452_v36 = vadd.f32 %v1203_v35, %v1195_v32  ;;  %v380_v37 = vpop.f32.mrf.mxu1 }
 0x1e9   :  { %v443_v38 = vpop.f32.mrf.mxu0 }
 0x1ea   :  { %v444_v39 = vadd.f32 %v443_v38, %v377_v33  ;;  %v1211_v41 = vpop.f32.mrf.mxu1 }
 0x1eb   :  { %v1204_v40 = vpop.f32.mrf.mxu0  ;;  %v523_v46 = vpack.c.bf16 %v1211_v41, %v1211_v41 }
 0x1ec   :  { %v508_v42 = vpop.f32.mrf.mxu1 }
 0x1ed   :  { %v446_v0 = vpop.f32.mrf.mxu0 }
 0x1ee   :  { %v1212_v43 = vpop.f32.mrf.mxu1  ;;  %v447_v9 = vadd.f32 %v446_v0, %v380_v37 }
 0x1f0   :  { %v511_v44 = vpop.f32.mrf.mxu1 }
 0x1f1   :  { %v522_v45 = vpack.c.bf16 %v511_v44, %v508_v42 }
 0x1f2   :  { %v1227_v47 = vpop.f32.mrf.mxu1 }
 0x1f3   :  { %1217 = vmatprep.mubr.msk.bf16.mxu0 %vm336_vm3, %v522_v45 }
 0x1f4   :  { %1218 = vmatmul.mubr.msk.bf16.vlgmr.msra.gmra.mxu0 %vm336_vm3, %v523_v46  ;;  %v644_v48 = vpop.f32.mrf.mxu1 }
 0x1f5   :  { %1230 = vmatpush3.bf16.msra.mxu0 %v1588_v1  ;;  %1231 = vmatprep.mubr.msk.bf16.mxu0 %vm1480_vm4, %v1479_v28 }
 0x1f6   :  { %v1228_v49 = vpop.f32.mrf.mxu1  ;;  %1243 = vmatprep.subr.bf16.mxu0 %v1479_v28 }
 0x1f8   :  { %v647_v50 = vpop.f32.mrf.mxu1 }
 0x1fa   :  { %v773_v53 = vpop.f32.mrf.mxu1 }
 0x1fc   :  { %1232 = vmatmul.mubr.msk.bf16.vlgmr.msra.gmra.mxu0 %vm267_vm1, %v1312_v51  ;;  %v1241_v54 = vpop.f32.mrf.mxu1 }
 0x1fd   :  { %1244 = vmatpush3.bf16.msra.mxu0 %v1313_v52  ;;  %1247 = vmatprep.mubr.msk.bf16.mxu0 %vm1480_vm4, %v1479_v28 }
 0x1fe   :  { %v776_v56 = vpop.f32.mrf.mxu1  ;;  %1245 = vmatprep.subr.bf16.mxu0 %v1479_v28 }
 0x1ff   :  { %v780_v58 = vpack.c.bf16 %v776_v56, %v773_v53 }
 0x200   :  { %v1242_v57 = vpop.f32.mrf.mxu1 }
 0x201   :  { %1246 = vmatpush3.bf16.msra.mxu0 %v1314_v55 }
 0x202   :  { %1259 = vmatprep.subr.bf16.mxu0 %v1479_v28 }
 0x204   :  { %1248 = vmatmul.mubr.msk.bf16.vlgmr.msra.gmra.mxu0 %vm336_vm3, %v780_v58 }
 0x205   :  { %1260 = vmatpush3.bf16.msra.mxu0 %v1588_v1  ;;  %1261 = vmatprep.mubr.msk.bf16.mxu0 %vm1480_vm4, %v1479_v28 }
 0x206   :  { %1273 = vmatprep.subr.bf16.mxu0 %v1479_v28 }
 0x20c   :  { %1262 = vmatmul.mubr.msk.bf16.vlgmr.msra.gmra.mxu0 %vm267_vm1, %v1315_v59 }
 0x20d   :  { %1277 = vmatprep.mubr.msk.bf16.mxu0 %vm1480_vm4, %v1479_v28  ;;  %1274 = vmatpush3.bf16.msra.mxu0 %v1318_v62 }
 0x20e   :  { %1275 = vmatprep.subr.bf16.mxu0 %v1479_v28 }
 0x211   :  { %1276 = vmatpush3.bf16.msra.mxu0 %v1320_v63 }
 0x214   :  { %1278 = vmatmul.mubr.msk.bf16.vlgmr.msra.gmra.mxu0 %vm336_vm3, %v1588_v1 }
 0x2b4   :  { %v1219_v2 = vpop.f32.mrf.mxu0 }
 0x2b5   :  { %v592_v3 = vadd.f32 %v1219_v2, %v452_v36 }
 0x2b6   :  { %v576_v5 = vpop.f32.mrf.mxu0 }
 0x2b7   :  { %v660_v6 = vadd.f32 %v1227_v47, %v592_v3  ;;  %v590_v7 = vadd.f32 %v576_v5, %v444_v39 }
 0x2b8   :  { %v1220_v8 = vpop.f32.mrf.mxu0 }
 0x2b9   :  { %v669_v10 = vadd.f32 %v1653_v4, %v660_v6  ;;  %v658_v11 = vadd.f32 %v644_v48, %v590_v7 }
 0x2ba   :  { %v579_v12 = vpop.f32.mrf.mxu0 }
 0x2bb   :  { %v672_v13 = vmax.f32 %v669_v10, 0.0  ;;  %v667_v14 = vadd.f32 %v1653_v4, %v658_v11  ;;  %v591_v15 = vadd.f32 %v579_v12, %v447_v9 }
 0x2bc   :  { %v721_v1 = vpop.f32.mrf.mxu0 }
 0x2bd   :  { %676 = vst.msk [vmem:[%s1694_s10 + $0x10] sm:$0xf] %vm675_vm5, %v672_v13  ;;  %v670_v16 = vmax.f32 %v667_v14, 0.0  ;;  %v659_v17 = vadd.f32 %v647_v50, %v591_v15 }
 0x2be   :  { %v1233_v18 = vpop.f32.mrf.mxu0 }
 0x2bf   :  { %673 = vst.msk [vmem:[%s1694_s10] sm:$0xff] %vm336_vm3, %v670_v16  ;;  %v668_v19 = vadd.f32 %v1653_v4, %v659_v17 }
 0x2c0   :  { %v724_v20 = vpop.f32.mrf.mxu0 }
 0x2c1   :  { %v671_v22 = vmax.f32 %v668_v19, 0.0  ;;  %v728_v23 = vpack.c.bf16 %v724_v20, %v721_v1 }
 0x2c2   :  { %v1234_v24 = vpop.f32.mrf.mxu0 }
 0x2c3   :  { %674 = vst.msk [vmem:[%s1694_s10 + $0x8] sm:$0xff] %vm336_vm3, %v671_v22  ;;  %1256 = vmatmul.mubr.msk.bf16.vlgmr.msra.gmra.mxu1 %vm336_vm3, %v728_v23 }
 0x2c4   :  { %v830_v25 = vpop.f32.mrf.mxu0  ;;  %1266 = vmatpush3.bf16.msra.mxu1 %v1319_v21  ;;  %1269 = vmatprep.mubr.msk.bf16.mxu1 %vm1480_vm4, %v1479_v28 }
 0x2c5   :  { %1267 = vmatprep.subr.bf16.mxu1 %v1479_v28 }
 0x2c6   :  { %v1249_v27 = vpop.f32.mrf.mxu0 }
 0x2c8   :  { %v833_v29 = vpop.f32.mrf.mxu0  ;;  %1268 = vmatpush3.bf16.msra.mxu1 %v1321_v26 }
 0x2ca   :  { %v1250_v30 = vpop.f32.mrf.mxu0 }
 0x2cc   :  { %v937_v31 = vpop.f32.mrf.mxu0 }
 0x2ce   :  { %v1263_v32 = vpop.f32.mrf.mxu0 }
 0x2d0   :  { %v940_v33 = vpop.f32.mrf.mxu0 }
 0x2d1   :  { %v944_v34 = vpack.c.bf16 %v940_v33, %v937_v31 }
 0x2d2   :  { %v1264_v35 = vpop.f32.mrf.mxu0 }
 0x2d3   :  { %1270 = vmatmul.mubr.msk.bf16.vlgmr.msra.gmra.mxu1 %vm336_vm3, %v944_v34 }
 0x2d4   :  { %v1052_v36 = vpop.f32.mrf.mxu0 }
 0x2d6   :  { %v1279_v37 = vpop.f32.mrf.mxu0 }
 0x2d8   :  { %v1055_v38 = vpop.f32.mrf.mxu0 }
 0x2da   :  { %v1280_v39 = vpop.f32.mrf.mxu0 }
 0x383   :  { %v886_v40 = vpop.f32.mrf.mxu1 }
 0x384   :  { %v887_v28 = vadd.f32 %v886_v40, %v830_v25 }
 0x385   :  { %v1257_v41 = vpop.f32.mrf.mxu1 }
 0x387   :  { %v889_v42 = vpop.f32.mrf.mxu1 }
 0x388   :  { %v890_v47 = vadd.f32 %v889_v42, %v833_v29 }
 0x389   :  { %v1258_v43 = vpop.f32.mrf.mxu1 }
 0x393   :  { %v994_v44 = vpop.f32.mrf.mxu1 }
 0x394   :  { %v1001_v45 = vadd.f32 %v994_v44, %v887_v28 }
 0x395   :  { %v1271_v46 = vpop.f32.mrf.mxu1 }
 0x396   :  { %v1059_v48 = vadd.f32 %v1052_v36, %v1001_v45 }
 0x397   :  { %v997_v49 = vpop.f32.mrf.mxu1 }
 0x398   :  { %v1061_v50 = vadd.f32 %v1653_v4, %v1059_v48  ;;  %v1002_v51 = vadd.f32 %v997_v49, %v890_v47 }
 0x399   :  { %v1272_v52 = vpop.f32.mrf.mxu1 }
 0x39a   :  { %v1063_v53 = vmax.f32 %v1061_v50, 0.0  ;;  %v1060_v54 = vadd.f32 %v1055_v38, %v1002_v51 }
 0x39c   :  { %1065 = vst.msk [vmem:[%s1695_s11] sm:$0xff] %vm336_vm3, %v1063_v53  ;;  %v1062_v55 = vadd.f32 %v1653_v4, %v1060_v54 }
 0x39e   :  { %v1064_v56 = vmax.f32 %v1062_v55, 0.0 }
 0x3a0   :  { %1066 = vst.msk [vmem:[%s1695_s11 + $0x8] sm:$0xff] %vm336_vm3, %v1064_v56 }
 0x3a1   :  { %1075 = vsyncpa [#allocation3], 1 }
 0x3a2   :  { %1076 = vsyncpa [#allocation5], 1 }
 0x3a3   :  { %1077 = vsyncpa [#allocation8], 1 }
 0x3a4   :  { %1078 = vsyncpa [#allocation11], 1 }

// kernel: joint_module_forward.3
= control target key start
LH: loop header
LB: loop body
LE: loop exit
PB: predicated region body
PF: predicated region fallthrough
CT: control target
= control target key end

     0   :  { %11 = vsyncpa [#allocation3], 0  ;;  %s1987_s18 = smov [#allocation2]   ;;  %s2512_s0 = inlined_call_operand.vmem [shape: bf16[10,8,48], index: 0, kind: input, shape index: {}]   ;;  %s2513_s1 = inlined_call_operand.vmem [shape: bf16[48,128], index: 1, kind: input, shape index: {}]   ;;  %s2514_s2 = inlined_call_operand.vmem [shape: bf16[32,128], index: 2, kind: input, shape index: {}]   ;;  %s2515_s3 = inlined_call_operand.hbm [shape: f32[1,128], index: 3, kind: input, shape index: {}]   ;;  %s2516_s4 = inlined_call_operand.vmem [shape: f32[2,10,32], index: 4, kind: output, shape index: {0}]   ;;  %s2517_s5 = inlined_call_operand.vmem [shape: f32[2,8,32], index: 5, kind: output, shape index: {1}]  }
   0x1   :  { %s24_s19 = sshll.u32 %s1987_s18, 4  ;;  %s25_s19 = int_to_ptr.vmem [resolvable:$true] %s24_s19 }
   0x2   :  { %s1973_s20 = scalar_lea.vmem %s25_s19, 16  ;;  %s1977_s21 = scalar_lea.vmem %s25_s19, 32 }
   0x3   :  { %p1974_p0 = scmp.ne.s32.totalorder %s25_s19, %s1973_s20  ;;  %p1978_p1 = scmp.lt.s32.totalorder %s25_s19, %s25_s19 }
   0x4   :  { %p1979_p2 = scmp.lt.s32.totalorder %s1977_s21, %s1973_s20 }
   0x6   :  { %p1980_p3 = por %p1979_p2, %p1978_p1 }
   0x8   :  { %p1981_p4 = pnand %p1980_p3, %p1974_p0 }
   0xa   :  { %1984 = shalt.err (!%p1981_p4)
}
   0xb   :  { %27 = dma.hbm_to_vmem [thread:$0]  %s2515_s3, 16, %s25_s19, [#allocation3]  }
   0xc   :  { %1985 = dma.done.wait [#allocation3], 16  }
   0xd   :  { %1986 = vsyncadd [#allocation3], 4294967280  ;;  %v1988_v0 = vmov 0.0   ;;  %vm1989_vm0 = vmmov 0   ;;  %v1875_v1 = vld [vmem:[%s2513_s1 + $0x10] sm:$0xff]   ;;  %v2039_v2 = vld [vmem:[%s2514_s2 + $0x8] sm:$0xff]   ;;  %v191_v8 = vlaneseq }
   0xe   :  { %1762 = vmatprep.subr.bf16.mxu0 %v1988_v0  ;;  %1788 = vmatprep.subr.bf16.mxu1 %v1988_v0  ;;  %v1877_v3 = vld [vmem:[%s2513_s1 + $0x8] sm:$0xff]   ;;  %v2049_v4 = vld [vmem:[%s2514_s2] sm:$0xff]   ;;  %v1990_v7 = vmov 0   ;;  %vm98_vm1 = vcmask 392192   ;;  %s1992_s2 = smov 32   ;;  %vm223_vm3 = vcmask 261120  }
   0xf   :  { %1792 = vmatprep.mubr.msk.bf16.mxu1 %vm1989_vm0, %v1988_v0  ;;  %1768 = vmatprep.mubr.msk.bf16.mxu0 %vm1989_vm0, %v1988_v0  ;;  %v1879_v5 = vld [vmem:[%s2513_s1] sm:$0xff]   ;;  %v2076_v9 = vand.u32 127, %v191_v8  ;;  %s1991_s1 = smov 64   ;;  %v1881_v58 = vld [vmem:[%s2512_s0 + $0x8] sm:$0xff]   ;;  %vm1340_vm5 = vcmask 1040384   ;;  %vm1343_vm6 = vcmask 1041408  }
  0x10   :  { %1763 = vmatpush3.bf16.msra.mxu0 %v1875_v1  ;;  %1789 = vmatpush3.bf16.msra.mxu1 %v2039_v2  ;;  %v1880_v6 = vld [vmem:[%s2512_s0] sm:$0xff]   ;;  %vm1346_vm7 = vcmask 1042432   ;;  %vm1349_vm8 = vcmask 1043456   ;;  %vm1352_vm9 = vcmask 1044480   ;;  %vm1355_vm10 = vcmask 1045504  }
  0x11   :  { %1764 = vmatprep.subr.bf16.mxu0 %v1988_v0  ;;  %1790 = vmatprep.subr.bf16.mxu1 %v1988_v0  ;;  %v2078_v11 = vld [vmem:[#allocation2] ss:$0 sm:$0xff]  ;;  %v197_v12 = vand.u32 31, %v2076_v9  ;;  %vm206_vm4 = vcmp.lt.s32.totalorder %v2076_v9, 16  ;;  %vm1358_vm11 = vcmask 1046528   ;;  %vm1364_vm12 = vcmask 254976  }
  0x13   :  { %vm2082_vm2 = vcmp.lt.s32.totalorder %v197_v12, 16 }
  0x14   :  { %1765 = vmatpush3.bf16.msra.mxu0 %v1877_v3  ;;  %1791 = vmatpush3.bf16.msra.mxu1 %v2049_v4 }
  0x15   :  { %1766 = vmatprep.subr.bf16.mxu0 %v1988_v0  ;;  %1796 = vmatprep.subr.bf16.mxu1 %v1988_v0 }
  0x17   :  { %1793 = vmatmul.mubr.bf16.vlgmr.msra.gmra.mxu1 %v1990_v7 }
  0x18   :  { %1767 = vmatpush3.bf16.msra.mxu0 %v1879_v5  ;;  %1797 = vmatpush3.bf16.msra.mxu1 %v2039_v2 }
  0x19   :  { %1800 = vmatprep.mubr.msk.bf16.mxu1 %vm1989_vm0, %v1988_v0  ;;  %1798 = vmatprep.subr.bf16.mxu1 %v1988_v0 }
  0x1a   :  { %1836 = vmatprep.subr.bf16.mxu0 %v1988_v0 }
  0x1b   :  { %1769 = vmatmul.mubr.msk.bf16.vlgmr.msra.gmra.mxu0 %vm98_vm1, %v1880_v6 }
  0x1c   :  { %1772 = vmatprep.mubr.msk.bf16.mxu0 %vm1989_vm0, %v1988_v0  ;;  %1837 = vmatpush3.bf16.msra.mxu0 %v2039_v2 }
  0x1d   :  { %1799 = vmatpush3.bf16.msra.mxu1 %v2049_v4  ;;  %1838 = vmatprep.subr.bf16.mxu0 %v1988_v0 }
  0x1e   :  { %1804 = vmatprep.subr.bf16.mxu1 %v1988_v0 }
  0x20   :  { %1839 = vmatpush3.bf16.msra.mxu0 %v2049_v4 }
  0x21   :  { %1852 = vmatprep.subr.bf16.mxu0 %v1988_v0 }
  0x23   :  { %1773 = vmatmul.mubr.msk.bf16.gmra.mxu0 %vm98_vm1, %v1881_v58 }
  0x24   :  { %1776 = vmatprep.mubr.msk.bf16.mxu0 %vm1989_vm0, %v1988_v0 }
  0xd7   :  { %v261_v10 = vpop.f32.mrf.mxu1 }
  0xd9   :  { %v1794_v13 = vpop.f32.mrf.mxu1 }
  0xdb   :  { %v148_v14 = vpop.f32.mrf.mxu0  ;;  %v264_v16 = vpop.f32.mrf.mxu1 }
  0xdc   :  { %v149_v15 = vadd.f32 %v2078_v11, %v148_v14 }
  0xdd   :  { %v1770_v18 = vpop.f32.mrf.mxu0  ;;  %v1795_v20 = vpop.f32.mrf.mxu1 }
  0xde   :  { %v208_v19 = vrot.slane %v149_v15, 4 }
  0xdf   :  { %v151_v21 = vpop.f32.mrf.mxu0 }
  0xe0   :  { %v210_v22 = vsel %vm2082_vm2, %v149_v15, %v208_v19  ;;  %v152_v40 = vadd.f32 %v2078_v11, %v151_v21 }
  0xe1   :  { %v267_v23 = vadd.f32 %v261_v10, %v210_v22  ;;  %v1771_v24 = vpop.f32.mrf.mxu0 }
  0xe2   :  { %v293_v41 = vrot.slane %v152_v40, 4 }
  0xe3   :  { %1885 = vtanh.f32 %v267_v23  ;;  %v1705_v26 = vmul.f32 -1.442695, %v267_v23  ;;  %v156_v63 = vpop.f32.mrf.mxu0 }
  0xe4   :  { %v295_v42 = vsel %vm2082_vm2, %v152_v40, %v293_v41  ;;  %v157_v7 = vadd.f32 %v2078_v11, %v156_v63 }
  0xe5   :  { %1887 = vpow2.f32 %v1705_v26  ;;  %v1774_v1 = vpop.f32.mrf.mxu0 }
  0xe6   :  { %v369_v10 = vrot.slane %v157_v7, 4 }
  0xe7   :  { %v159_v3 = vpop.f32.mrf.mxu0 }
  0xe8   :  { %v371_v12 = vsel %vm2082_vm2, %v157_v7, %v369_v10 }
  0xe9   :  { %v1775_v5 = vpop.f32.mrf.mxu0 }
  0xf0   :  { %v1886_v25 = vpop.eup %1885 }
  0xf1   :  { %277 = vrot.lane.b32.xlu0 %v1886_v25, %s1991_s1 }
  0xf2   :  { %v1888_v27 = vpop.eup %1887 }
  0xf3   :  { %v271_v28 = vadd.f32 1.0, %v1888_v27 }
  0xf5   :  { %1889 = vrcp.f32 %v271_v28 }
 0x102   :  { %v1890_v29 = vpop.eup %1889 }
 0x103   :  { %v275_v32 = vmul.f32 0.0, %v1890_v29 }
 0x163   :  { %v278_v30 = vpop.permute.xlu0 %277 }
 0x164   :  { %v280_v31 = vmul.f32 %v1890_v29, %v278_v30 }
 0x166   :  { %282 = vrot.lane.b32.xlu0 %v280_v31, %s1992_s2 }
 0x1d8   :  { %v283_v33 = vpop.permute.xlu0 %282 }
 0x1d9   :  { %v285_v34 = vadd.f32 %v283_v33, %v275_v32 }
 0x1db   :  { %1891 = vtanh.f32 %v285_v34 }
 0x1e8   :  { %v1892_v35 = vpop.eup %1891 }
 0x1e9   :  { %288 = vrot.lane.b32.xlu1 %v1892_v35, %s1991_s1 }
 0x25b   :  { %v289_v36 = vpop.permute.xlu1 %288 }
 0x25c   :  { %v2091_v37 = vmul.f32 %v1890_v29, %v289_v36 }
 0x25e   :  { %v296_v38 = vpack.c.bf16 %v2091_v37, %v2091_v37 }
 0x260   :  { %298 = vrot.lane.b32.xlu1 %v296_v38, %s1992_s2 }
 0x2d2   :  { %v299_v39 = vpop.permute.xlu1 %298 }
 0x2d3   :  { %1801 = vmatmul.mubr.msk.bf16.vlgmr.msra.gmra.mxu1 %vm223_vm3, %v299_v39 }
 0x2d4   :  { %1805 = vmatpush3.bf16.msra.mxu1 %v2039_v2  ;;  %1808 = vmatprep.mubr.msk.bf16.mxu1 %vm1989_vm0, %v1988_v0 }
 0x2d5   :  { %1806 = vmatprep.subr.bf16.mxu1 %v1988_v0 }
 0x2d8   :  { %1807 = vmatpush3.bf16.msra.mxu1 %v2049_v4 }
 0x2d9   :  { %1812 = vmatprep.subr.bf16.mxu1 %v1988_v0 }
 0x393   :  { %v337_v43 = vpop.f32.mrf.mxu1 }
 0x394   :  { %v343_v44 = vadd.f32 %v337_v43, %v295_v42 }
 0x395   :  { %v1802_v45 = vpop.f32.mrf.mxu1 }
 0x396   :  { %1893 = vtanh.f32 %v343_v44  ;;  %v1707_v49 = vmul.f32 -1.442695, %v343_v44 }
 0x397   :  { %v340_v46 = vpop.f32.mrf.mxu1 }
 0x398   :  { %1895 = vpow2.f32 %v1707_v49 }
 0x399   :  { %v1803_v47 = vpop.f32.mrf.mxu1 }
 0x3a3   :  { %v1894_v48 = vpop.eup %1893 }
 0x3a4   :  { %353 = vrot.lane.b32.xlu0 %v1894_v48, %s1991_s1 }
 0x3a5   :  { %v1896_v50 = vpop.eup %1895 }
 0x3a6   :  { %v347_v51 = vadd.f32 1.0, %v1896_v50 }
 0x3a8   :  { %1897 = vrcp.f32 %v347_v51 }
 0x3b5   :  { %v1898_v52 = vpop.eup %1897 }
 0x3b6   :  { %v351_v55 = vmul.f32 %v1898_v52, %v285_v34  ;;  %v160_v34 = vadd.f32 %v2078_v11, %v159_v3 }
 0x3b8   :  { %v445_v35 = vrot.slane %v160_v34, 4 }
 0x3ba   :  { %v447_v36 = vsel %vm2082_vm2, %v160_v34, %v445_v35 }
 0x416   :  { %v354_v53 = vpop.permute.xlu0 %353 }
 0x417   :  { %v356_v54 = vmul.f32 %v1898_v52, %v354_v53  ;;  %v1882_v53 = vld [vmem:[%s2512_s0 + $0x10] sm:$0xff]  }
 0x418   :  { %1777 = vmatmul.mubr.msk.bf16.gmra.mxu0 %vm98_vm1, %v1882_v53 }
 0x419   :  { %358 = vrot.lane.b32.xlu1 %v356_v54, %s1992_s2  ;;  %1780 = vmatprep.mubr.msk.bf16.mxu0 %vm1989_vm0, %v1988_v0 }
 0x48b   :  { %v359_v56 = vpop.permute.xlu1 %358 }
 0x48c   :  { %v361_v57 = vadd.f32 %v359_v56, %v351_v55 }
 0x48e   :  { %1899 = vtanh.f32 %v361_v57 }
 0x49b   :  { %v1900_v59 = vpop.eup %1899 }
 0x49c   :  { %364 = vrot.lane.b32.xlu0 %v1900_v59, %s1991_s1 }
 0x4d8   :  { %v164_v58 = vpop.f32.mrf.mxu0 }
 0x4d9   :  { %v165_v1 = vadd.f32 %v2078_v11, %v164_v58 }
 0x4da   :  { %v1778_v59 = vpop.f32.mrf.mxu0 }
 0x4db   :  { %v521_v3 = vrot.slane %v165_v1, 4 }
 0x4dd   :  { %v523_v5 = vsel %vm2082_vm2, %v165_v1, %v521_v3 }
 0x50e   :  { %v365_v60 = vpop.permute.xlu0 %364 }
 0x50f   :  { %v2115_v61 = vmul.f32 %v1898_v52, %v365_v60  ;;  %v167_v60 = vpop.f32.mrf.mxu0 }
 0x511   :  { %v372_v62 = vpack.c.bf16 %v2115_v61, %v2115_v61  ;;  %v1377_v17 = vrot.slane %v2115_v61, 2 }
 0x513   :  { %374 = vrot.lane.b32.xlu1 %v372_v62, %s1992_s2  ;;  %v1779_v62 = vpop.f32.mrf.mxu0 }
 0x585   :  { %v375_v6 = vpop.permute.xlu1 %374 }
 0x586   :  { %1809 = vmatmul.mubr.msk.bf16.vlgmr.msra.gmra.mxu1 %vm223_vm3, %v375_v6 }
 0x587   :  { %1813 = vmatpush3.bf16.msra.mxu1 %v2039_v2  ;;  %1816 = vmatprep.mubr.msk.bf16.mxu1 %vm1989_vm0, %v1988_v0 }
 0x588   :  { %1814 = vmatprep.subr.bf16.mxu1 %v1988_v0 }
 0x58b   :  { %1815 = vmatpush3.bf16.msra.mxu1 %v2049_v4 }
 0x58c   :  { %1820 = vmatprep.subr.bf16.mxu1 %v1988_v0 }
 0x646   :  { %v413_v13 = vpop.f32.mrf.mxu1 }
 0x647   :  { %v419_v14 = vadd.f32 %v413_v13, %v371_v12 }
 0x648   :  { %v1810_v15 = vpop.f32.mrf.mxu1 }
 0x649   :  { %1901 = vtanh.f32 %v419_v14  ;;  %v1709_v20 = vmul.f32 -1.442695, %v419_v14 }
 0x64a   :  { %v416_v16 = vpop.f32.mrf.mxu1 }
 0x64b   :  { %1903 = vpow2.f32 %v1709_v20 }
 0x64c   :  { %v1811_v18 = vpop.f32.mrf.mxu1 }
 0x656   :  { %v1902_v19 = vpop.eup %1901 }
 0x657   :  { %429 = vrot.lane.b32.xlu0 %v1902_v19, %s1991_s1 }
 0x658   :  { %v1904_v21 = vpop.eup %1903 }
 0x659   :  { %v423_v22 = vadd.f32 1.0, %v1904_v21 }
 0x65b   :  { %1905 = vrcp.f32 %v423_v22 }
 0x668   :  { %v1906_v23 = vpop.eup %1905 }
 0x669   :  { %v427_v26 = vmul.f32 %v1906_v23, %v361_v57 }
 0x6c9   :  { %v430_v24 = vpop.permute.xlu0 %429 }
 0x6ca   :  { %v432_v25 = vmul.f32 %v1906_v23, %v430_v24 }
 0x6cc   :  { %434 = vrot.lane.b32.xlu1 %v432_v25, %s1992_s2 }
 0x73e   :  { %v435_v27 = vpop.permute.xlu1 %434 }
 0x73f   :  { %v437_v28 = vadd.f32 %v435_v27, %v427_v26 }
 0x741   :  { %1907 = vtanh.f32 %v437_v28 }
 0x74e   :  { %v1908_v29 = vpop.eup %1907 }
 0x74f   :  { %440 = vrot.lane.b32.xlu0 %v1908_v29, %s1991_s1 }
 0x7c1   :  { %v441_v30 = vpop.permute.xlu0 %440 }
 0x7c2   :  { %v2133_v31 = vmul.f32 %v1906_v23, %v441_v30  ;;  %v168_v30 = vadd.f32 %v2078_v11, %v167_v60 }
 0x7c4   :  { %v448_v32 = vpack.c.bf16 %v2133_v31, %v2133_v31 }
 0x7c6   :  { %450 = vrot.lane.b32.xlu1 %v448_v32, %s1992_s2  ;;  %v597_v32 = vrot.slane %v168_v30, 4 }
 0x838   :  { %v451_v33 = vpop.permute.xlu1 %450 }
 0x839   :  { %1817 = vmatmul.mubr.msk.bf16.vlgmr.msra.gmra.mxu1 %vm223_vm3, %v451_v33  ;;  %v599_v33 = vsel %vm2082_vm2, %v168_v30, %v597_v32 }
 0x83a   :  { %1821 = vmatpush3.bf16.msra.mxu1 %v2039_v2  ;;  %1824 = vmatprep.mubr.msk.bf16.mxu1 %vm1989_vm0, %v1988_v0 }
 0x83b   :  { %1822 = vmatprep.subr.bf16.mxu1 %v1988_v0 }
 0x83e   :  { %1823 = vmatpush3.bf16.msra.mxu1 %v2049_v4 }
 0x83f   :  { %1828 = vmatprep.subr.bf16.mxu1 %v1988_v0 }
 0x8f9   :  { %v489_v38 = vpop.f32.mrf.mxu1 }
 0x8fa   :  { %v495_v39 = vadd.f32 %v489_v38, %v447_v36 }
 0x8fb   :  { %v1818_v40 = vpop.f32.mrf.mxu1 }
 0x8fc   :  { %1909 = vtanh.f32 %v495_v39  ;;  %v1711_v44 = vmul.f32 -1.442695, %v495_v39 }
 0x8fd   :  { %v492_v41 = vpop.f32.mrf.mxu1 }
 0x8fe   :  { %1911 = vpow2.f32 %v1711_v44 }
 0x8ff   :  { %v1819_v42 = vpop.f32.mrf.mxu1 }
 0x909   :  { %v1910_v43 = vpop.eup %1909 }
 0x90a   :  { %505 = vrot.lane.b32.xlu0 %v1910_v43, %s1991_s1 }
 0x90b   :  { %v1912_v45 = vpop.eup %1911 }
 0x90c   :  { %v499_v46 = vadd.f32 1.0, %v1912_v45 }
 0x90e   :  { %1913 = vrcp.f32 %v499_v46 }
 0x91b   :  { %v1914_v47 = vpop.eup %1913 }
 0x91c   :  { %v503_v50 = vmul.f32 %v1914_v47, %v437_v28 }
 0x97c   :  { %v506_v48 = vpop.permute.xlu0 %505 }
 0x97d   :  { %v508_v49 = vmul.f32 %v1914_v47, %v506_v48 }
 0x97f   :  { %510 = vrot.lane.b32.xlu1 %v508_v49, %s1992_s2 }
 0x9f1   :  { %v511_v51 = vpop.permute.xlu1 %510 }
 0x9f2   :  { %v513_v52 = vadd.f32 %v511_v51, %v503_v50  ;;  %v1883_v50 = vld [vmem:[%s2512_s0 + $0x18] sm:$0xff]   ;;  %v1884_v51 = vld [vmem:[%s2512_s0 + $0x20] sm:$0xff]  }
 0x9f3   :  { %1781 = vmatmul.mubr.msk.bf16.gmra.mxu0 %vm98_vm1, %v1883_v50 }
 0x9f4   :  { %1915 = vtanh.f32 %v513_v52  ;;  %1784 = vmatprep.mubr.msk.bf16.mxu0 %vm1989_vm0, %v1988_v0 }
 0x9fb   :  { %1785 = vmatmul.mubr.msk.bf16.gmra.mxu0 %vm98_vm1, %v1884_v51 }
 0x9fc   :  { %1840 = vmatprep.mubr.msk.bf16.mxu0 %vm1989_vm0, %v1988_v0 }
 0xa01   :  { %v1916_v54 = vpop.eup %1915 }
 0xa02   :  { %516 = vrot.lane.b32.xlu0 %v1916_v54, %s1991_s1 }
 0xa74   :  { %v517_v55 = vpop.permute.xlu0 %516 }
 0xa75   :  { %v2157_v56 = vmul.f32 %v1914_v47, %v517_v55 }
 0xa77   :  { %v524_v57 = vpack.c.bf16 %v2157_v56, %v2157_v56 }
 0xa79   :  { %526 = vrot.lane.b32.xlu1 %v524_v57, %s1992_s2 }
 0xab3   :  { %v172_v57 = vpop.f32.mrf.mxu0 }
 0xab5   :  { %v1782_v58 = vpop.f32.mrf.mxu0 }
 0xab7   :  { %v175_v59 = vpop.f32.mrf.mxu0 }
 0xab9   :  { %v1783_v60 = vpop.f32.mrf.mxu0 }
 0xabb   :  { %v2210_v62 = vpop.f32.mrf.mxu0 }
 0xabc   :  { %v181_v58 = vadd.f32 %v2078_v11, %v2210_v62 }
 0xaeb   :  { %v527_v63 = vpop.permute.xlu1 %526 }
 0xaec   :  { %1825 = vmatmul.mubr.msk.bf16.vlgmr.msra.gmra.mxu1 %vm223_vm3, %v527_v63  ;;  %v1786_v63 = vpop.f32.mrf.mxu0 }
 0xaed   :  { %1829 = vmatpush3.bf16.msra.mxu1 %v2039_v2  ;;  %1832 = vmatprep.mubr.msk.bf16.mxu1 %vm1989_vm0, %v1988_v0 }
 0xaee   :  { %1830 = vmatprep.subr.bf16.mxu1 %v1988_v0  ;;  %v2212_v1 = vpop.f32.mrf.mxu0 }
 0xaf0   :  { %v1787_v3 = vpop.f32.mrf.mxu0 }
 0xaf1   :  { %1831 = vmatpush3.bf16.msra.mxu1 %v2049_v4 }
 0xaf2   :  { %1844 = vmatprep.subr.bf16.mxu1 %v1988_v0 }
 0xbac   :  { %v565_v6 = vpop.f32.mrf.mxu1 }
 0xbad   :  { %v571_v7 = vadd.f32 %v565_v6, %v523_v5  ;;  %v173_v6 = vadd.f32 %v2078_v11, %v172_v57 }
 0xbae   :  { %v1826_v10 = vpop.f32.mrf.mxu1 }
 0xbaf   :  { %1917 = vtanh.f32 %v571_v7  ;;  %v1713_v15 = vmul.f32 -1.442695, %v571_v7  ;;  %v673_v7 = vrot.slane %v173_v6, 4 }
 0xbb0   :  { %v568_v12 = vpop.f32.mrf.mxu1 }
 0xbb1   :  { %1919 = vpow2.f32 %v1713_v15  ;;  %v675_v10 = vsel %vm2082_vm2, %v173_v6, %v673_v7 }
 0xbb2   :  { %v1827_v13 = vpop.f32.mrf.mxu1 }
 0xbbc   :  { %v1918_v14 = vpop.eup %1917 }
 0xbbd   :  { %581 = vrot.lane.b32.xlu0 %v1918_v14, %s1991_s1 }
 0xbbe   :  { %v1920_v16 = vpop.eup %1919 }
 0xbbf   :  { %v575_v18 = vadd.f32 1.0, %v1920_v16 }
 0xbc1   :  { %1921 = vrcp.f32 %v575_v18 }
 0xbce   :  { %v1922_v19 = vpop.eup %1921 }
 0xbcf   :  { %v579_v22 = vmul.f32 %v1922_v19, %v513_v52 }
 0xc2f   :  { %v582_v20 = vpop.permute.xlu0 %581 }
 0xc30   :  { %v584_v21 = vmul.f32 %v1922_v19, %v582_v20 }
 0xc32   :  { %586 = vrot.lane.b32.xlu1 %v584_v21, %s1992_s2 }
 0xca4   :  { %v587_v23 = vpop.permute.xlu1 %586 }
 0xca5   :  { %v589_v24 = vadd.f32 %v587_v23, %v579_v22 }
 0xca7   :  { %1923 = vtanh.f32 %v589_v24 }
 0xcb4   :  { %v1924_v25 = vpop.eup %1923 }
 0xcb5   :  { %592 = vrot.lane.b32.xlu0 %v1924_v25, %s1991_s1 }
 0xd27   :  { %v593_v26 = vpop.permute.xlu0 %592 }
 0xd28   :  { %v2175_v27 = vmul.f32 %v1922_v19, %v593_v26 }
 0xd2a   :  { %v600_v28 = vpack.c.bf16 %v2175_v27, %v2175_v27 }
 0xd2c   :  { %602 = vrot.lane.b32.xlu1 %v600_v28, %s1992_s2 }
 0xd9e   :  { %v603_v29 = vpop.permute.xlu1 %602 }
 0xd9f   :  { %1833 = vmatmul.mubr.msk.bf16.vlgmr.msra.gmra.mxu1 %vm223_vm3, %v603_v29 }
 0xda0   :  { %1845 = vmatpush3.bf16.msra.mxu1 %v2039_v2  ;;  %1848 = vmatprep.mubr.msk.bf16.mxu1 %vm1989_vm0, %v1988_v0 }
 0xda1   :  { %1846 = vmatprep.subr.bf16.mxu1 %v1988_v0 }
 0xda4   :  { %1847 = vmatpush3.bf16.msra.mxu1 %v2049_v4 }
 0xda5   :  { %1860 = vmatprep.subr.bf16.mxu1 %v1988_v0 }
 0xe5f   :  { %v641_v34 = vpop.f32.mrf.mxu1 }
 0xe60   :  { %v647_v35 = vadd.f32 %v641_v34, %v599_v33 }
 0xe61   :  { %v1834_v36 = vpop.f32.mrf.mxu1 }
 0xe62   :  { %1925 = vtanh.f32 %v647_v35  ;;  %v1715_v41 = vmul.f32 -1.442695, %v647_v35  ;;  %v176_v35 = vadd.f32 %v2078_v11, %v175_v59  ;;  %v825_v59 = vrot.slane %v181_v58, 4 }
 0xe63   :  { %v644_v38 = vpop.f32.mrf.mxu1 }
 0xe64   :  { %1927 = vpow2.f32 %v1715_v41  ;;  %v749_v36 = vrot.slane %v176_v35, 4  ;;  %v827_v60 = vsel %vm2082_vm2, %v181_v58, %v825_v59 }
 0xe65   :  { %v1835_v39 = vpop.f32.mrf.mxu1 }
 0xe66   :  { %v751_v38 = vsel %vm2082_vm2, %v176_v35, %v749_v36 }
 0xe6f   :  { %v1926_v40 = vpop.eup %1925 }
 0xe70   :  { %657 = vrot.lane.b32.xlu0 %v1926_v40, %s1991_s1 }
 0xe71   :  { %v1928_v42 = vpop.eup %1927 }
 0xe72   :  { %v651_v43 = vadd.f32 1.0, %v1928_v42 }
 0xe74   :  { %1929 = vrcp.f32 %v651_v43 }
 0xe81   :  { %v1930_v44 = vpop.eup %1929 }
 0xe82   :  { %v655_v47 = vmul.f32 %v1930_v44, %v589_v24 }
 0xee2   :  { %v658_v45 = vpop.permute.xlu0 %657 }
 0xee3   :  { %v660_v46 = vmul.f32 %v1930_v44, %v658_v45 }
 0xee5   :  { %662 = vrot.lane.b32.xlu1 %v660_v46, %s1992_s2 }
 0xf57   :  { %v663_v48 = vpop.permute.xlu1 %662 }
 0xf58   :  { %v665_v49 = vadd.f32 %v663_v48, %v655_v47 }
 0xf5a   :  { %1931 = vtanh.f32 %v665_v49 }
 0xf67   :  { %v1932_v52 = vpop.eup %1931 }
 0xf68   :  { %668 = vrot.lane.b32.xlu0 %v1932_v52, %s1991_s1 }
 0xfda   :  { %v669_v53 = vpop.permute.xlu0 %668 }
 0xfdb   :  { %v2205_v54 = vmul.f32 %v1930_v44, %v669_v53 }
 0xfdd   :  { %v676_v55 = vpack.c.bf16 %v2205_v54, %v2205_v54 }
 0xfdf   :  { %678 = vrot.lane.b32.xlu1 %v676_v55, %s1992_s2 }
0x1051   :  { %v679_v5 = vpop.permute.xlu1 %678 }
0x1052   :  { %1841 = vmatmul.mubr.msk.bf16.vlgmr.msra.gmra.mxu0 %vm223_vm3, %v679_v5 }
0x1053   :  { %1853 = vmatpush3.bf16.msra.mxu0 %v2039_v2  ;;  %1856 = vmatprep.mubr.msk.bf16.mxu0 %vm1989_vm0, %v1988_v0 }
0x1054   :  { %1854 = vmatprep.subr.bf16.mxu0 %v1988_v0 }
0x1057   :  { %1855 = vmatpush3.bf16.msra.mxu0 %v2049_v4 }
0x1112   :  { %v717_v12 = vpop.f32.mrf.mxu0 }
0x1113   :  { %v723_v13 = vadd.f32 %v717_v12, %v675_v10 }
0x1114   :  { %v1842_v14 = vpop.f32.mrf.mxu0 }
0x1115   :  { %1933 = vtanh.f32 %v723_v13  ;;  %v1717_v19 = vmul.f32 -1.442695, %v723_v13 }
0x1116   :  { %v720_v15 = vpop.f32.mrf.mxu0 }
0x1117   :  { %1935 = vpow2.f32 %v1717_v19 }
0x1118   :  { %v1843_v16 = vpop.f32.mrf.mxu0 }
0x1122   :  { %v1934_v18 = vpop.eup %1933 }
0x1123   :  { %733 = vrot.lane.b32.xlu0 %v1934_v18, %s1991_s1 }
0x1124   :  { %v1936_v20 = vpop.eup %1935 }
0x1125   :  { %v727_v21 = vadd.f32 1.0, %v1936_v20 }
0x1127   :  { %1937 = vrcp.f32 %v727_v21 }
0x1134   :  { %v1938_v22 = vpop.eup %1937 }
0x1135   :  { %v731_v25 = vmul.f32 %v1938_v22, %v665_v49 }
0x1195   :  { %v734_v23 = vpop.permute.xlu0 %733 }
0x1196   :  { %v736_v24 = vmul.f32 %v1938_v22, %v734_v23 }
0x1198   :  { %738 = vrot.lane.b32.xlu1 %v736_v24, %s1992_s2 }
0x120a   :  { %v739_v26 = vpop.permute.xlu1 %738 }
0x120b   :  { %v741_v28 = vadd.f32 %v739_v26, %v731_v25  ;;  %v184_v26 = vadd.f32 %v2078_v11, %v2212_v1 }
0x120d   :  { %1939 = vtanh.f32 %v741_v28 }
0x121a   :  { %v1940_v29 = vpop.eup %1939 }
0x121b   :  { %744 = vrot.lane.b32.xlu0 %v1940_v29, %s1991_s1 }
0x128d   :  { %v745_v30 = vpop.permute.xlu0 %744 }
0x128e   :  { %v2226_v32 = vmul.f32 %v1938_v22, %v745_v30 }
0x1290   :  { %v752_v33 = vpack.c.bf16 %v2226_v32, %v2226_v32 }
0x1292   :  { %754 = vrot.lane.b32.xlu1 %v752_v33, %s1992_s2 }
0x1304   :  { %v755_v34 = vpop.permute.xlu1 %754 }
0x1305   :  { %1849 = vmatmul.mubr.msk.bf16.vlgmr.msra.gmra.mxu1 %vm223_vm3, %v755_v34 }
0x1306   :  { %1861 = vmatpush3.bf16.msra.mxu1 %v2039_v2  ;;  %1864 = vmatprep.mubr.msk.bf16.mxu1 %vm1989_vm0, %v1988_v0 }
0x1307   :  { %1862 = vmatprep.subr.bf16.mxu1 %v1988_v0 }
0x130a   :  { %1863 = vmatpush3.bf16.msra.mxu1 %v2049_v4 }
0x13c5   :  { %v793_v39 = vpop.f32.mrf.mxu1 }
0x13c6   :  { %v799_v40 = vadd.f32 %v793_v39, %v751_v38 }
0x13c7   :  { %v1850_v41 = vpop.f32.mrf.mxu1 }
0x13c8   :  { %1941 = vtanh.f32 %v799_v40  ;;  %v1719_v44 = vmul.f32 -1.442695, %v799_v40 }
0x13c9   :  { %v796_v42 = vpop.f32.mrf.mxu1 }
0x13ca   :  { %1943 = vpow2.f32 %v1719_v44 }
0x13cb   :  { %v1851_v43 = vpop.f32.mrf.mxu1 }
0x13cc   :  { %v1386_v43 = vrot.slane %v2133_v31, 2 }
0x13d5   :  { %v1942_v2 = vpop.eup %1941 }
0x13d6   :  { %809 = vrot.lane.b32.xlu0 %v1942_v2, %s1991_s1  ;;  %v1368_v2 = vrot.slane %v2091_v37, 2 }
0x13d7   :  { %v1944_v0 = vpop.eup %1943 }
0x13d8   :  { %v803_v45 = vadd.f32 1.0, %v1944_v0 }
0x13da   :  { %1945 = vrcp.f32 %v803_v45 }
0x13e7   :  { %v1946_v4 = vpop.eup %1945 }
0x13e8   :  { %v807_v48 = vmul.f32 %v1946_v4, %v741_v28  ;;  %v901_v28 = vrot.slane %v184_v26, 4 }
0x13ea   :  { %v903_v29 = vsel %vm2082_vm2, %v184_v26, %v901_v28 }
0x1448   :  { %v810_v46 = vpop.permute.xlu0 %809 }
0x1449   :  { %v812_v47 = vmul.f32 %v1946_v4, %v810_v46  ;;  %v1399_v46 = vrot.slane %v2175_v27, 2 }
0x144b   :  { %814 = vrot.lane.b32.xlu1 %v812_v47, %s1992_s2 }
0x14bd   :  { %v815_v49 = vpop.permute.xlu1 %814 }
0x14be   :  { %v817_v50 = vadd.f32 %v815_v49, %v807_v48 }
0x14c0   :  { %1947 = vtanh.f32 %v817_v50 }
0x14cd   :  { %v1948_v51 = vpop.eup %1947 }
0x14ce   :  { %820 = vrot.lane.b32.xlu0 %v1948_v51, %s1991_s1 }
0x1540   :  { %v821_v52 = vpop.permute.xlu0 %820 }
0x1541   :  { %v2243_v53 = vmul.f32 %v1946_v4, %v821_v52 }
0x1543   :  { %v828_v55 = vpack.c.bf16 %v2243_v53, %v2243_v53  ;;  %v1372_v4 = vrot.slane %v2243_v53, 2 }
0x1545   :  { %830 = vrot.lane.b32.xlu1 %v828_v55, %s1992_s2 }
0x15b7   :  { %v831_v57 = vpop.permute.xlu1 %830 }
0x15b8   :  { %1857 = vmatmul.mubr.msk.bf16.vlgmr.msra.gmra.mxu0 %vm223_vm3, %v831_v57 }
0x1678   :  { %v869_v63 = vpop.f32.mrf.mxu0 }
0x1679   :  { %v875_v3 = vadd.f32 %v869_v63, %v827_v60  ;;  %v1031_v60 = vshrl.u32 %v191_v8, 7 }
0x167a   :  { %v1858_v5 = vpop.f32.mrf.mxu0 }
0x167b   :  { %1949 = vtanh.f32 %v875_v3  ;;  %v1721_v12 = vmul.f32 -1.442695, %v875_v3 }
0x167c   :  { %v872_v6 = vpop.f32.mrf.mxu0 }
0x167d   :  { %1951 = vpow2.f32 %v1721_v12 }
0x167e   :  { %v1859_v7 = vpop.f32.mrf.mxu0 }
0x1688   :  { %v1950_v10 = vpop.eup %1949 }
0x1689   :  { %885 = vrot.lane.b32.xlu0 %v1950_v10, %s1991_s1 }
0x168a   :  { %v1952_v13 = vpop.eup %1951 }
0x168b   :  { %v879_v14 = vadd.f32 1.0, %v1952_v13 }
0x168d   :  { %1953 = vrcp.f32 %v879_v14 }
0x169a   :  { %v1954_v15 = vpop.eup %1953 }
0x169b   :  { %v883_v18 = vmul.f32 %v1954_v15, %v817_v50 }
0x16fb   :  { %v886_v62 = vpop.permute.xlu0 %885 }
0x16fc   :  { %v888_v16 = vmul.f32 %v1954_v15, %v886_v62 }
0x16fe   :  { %890 = vrot.lane.b32.xlu1 %v888_v16, %s1992_s2  ;;  %v2328_v16 = vsub.s32 0, %v1031_v60 }
0x1770   :  { %v891_v19 = vpop.permute.xlu1 %890 }
0x1771   :  { %v893_v20 = vadd.f32 %v891_v19, %v883_v18 }
0x1773   :  { %1955 = vtanh.f32 %v893_v20 }
0x1780   :  { %v1956_v21 = vpop.eup %1955 }
0x1781   :  { %896 = vrot.lane.b32.xlu0 %v1956_v21, %s1991_s1 }
0x17f3   :  { %v897_v22 = vpop.permute.xlu0 %896 }
0x17f4   :  { %v899_v23 = vmul.f32 %v1954_v15, %v897_v22 }
0x17f6   :  { %v904_v24 = vpack.c.bf16 %v899_v23, %v899_v23 }
0x17f8   :  { %906 = vrot.lane.b32.xlu1 %v904_v24, %s1992_s2 }
0x186a   :  { %v907_v25 = vpop.permute.xlu1 %906 }
0x186b   :  { %1865 = vmatmul.mubr.msk.bf16.vlgmr.msra.gmra.mxu1 %vm223_vm3, %v907_v25 }
0x192b   :  { %v945_v30 = vpop.f32.mrf.mxu1 }
0x192c   :  { %v951_v33 = vadd.f32 %v945_v30, %v903_v29 }
0x192d   :  { %v1866_v34 = vpop.f32.mrf.mxu1 }
0x192e   :  { %1957 = vtanh.f32 %v951_v33  ;;  %v1723_v39 = vmul.f32 -1.442695, %v951_v33 }
0x192f   :  { %v948_v35 = vpop.f32.mrf.mxu1 }
0x1930   :  { %1959 = vpow2.f32 %v1723_v39 }
0x1931   :  { %v1867_v36 = vpop.f32.mrf.mxu1 }
0x193b   :  { %v1958_v38 = vpop.eup %1957 }
0x193c   :  { %961 = vrot.lane.b32.xlu0 %v1958_v38, %s1991_s1 }
0x193d   :  { %v1960_v40 = vpop.eup %1959 }
0x193e   :  { %v955_v41 = vadd.f32 1.0, %v1960_v40 }
0x1940   :  { %1961 = vrcp.f32 %v955_v41 }
0x194d   :  { %v1962_v42 = vpop.eup %1961 }
0x19ae   :  { %v962_v11 = vpop.permute.xlu0 %961 }
0x19af   :  { %v964_v1 = vmul.f32 %v1962_v42, %v962_v11 }
0x19b1   :  { %966 = vrot.lane.b32.xlu1 %v964_v1, %s1992_s2 }
0x19b5   :  { %986 = vrot.lane.b32.xlu1 %v2115_v61, %s1992_s2  ;;  %v1395_v61 = vrot.slane %v2157_v56, 2 }
0x19b9   :  { %1378 = vrot.lane.b32.xlu1 %v1377_v17, %s1992_s2 }
0x19bd   :  { %995 = vrot.lane.b32.xlu1 %v2133_v31, %s1992_s2  ;;  %v959_v31 = vmul.f32 %v1962_v42, %v893_v20 }
0x19c1   :  { %1387 = vrot.lane.b32.xlu1 %v1386_v43, %s1992_s2 }
0x19c5   :  { %977 = vrot.lane.b32.xlu1 %v2091_v37, %s1992_s2  ;;  %v1381_v37 = vrot.slane %v2226_v32, 2 }
0x19c9   :  { %1004 = vrot.lane.b32.xlu1 %v2157_v56, %s1992_s2  ;;  %v1390_v56 = vrot.slane %v2205_v54, 2 }
0x19cd   :  { %1369 = vrot.lane.b32.xlu1 %v1368_v2, %s1992_s2 }
0x19d1   :  { %1396 = vrot.lane.b32.xlu1 %v1395_v61, %s1992_s2 }
0x19d5   :  { %1013 = vrot.lane.b32.xlu1 %v2175_v27, %s1992_s2 }
0x1a23   :  { %v967_v44 = vpop.permute.xlu1 %966 }
0x1a24   :  { %v969_v0 = vadd.f32 %v967_v44, %v959_v31 }
0x1a26   :  { %1963 = vtanh.f32 %v969_v0 }
0x1a27   :  { %v2296_v47 = vpop.permute.xlu1 %986 }
0x1a2b   :  { %v1379_v48 = vpop.permute.xlu1 %1378 }
0x1a2f   :  { %v2298_v49 = vpop.permute.xlu1 %995 }
0x1a33   :  { %v1964_v45 = vpop.eup %1963  ;;  %v1388_v52 = vpop.permute.xlu1 %1387 }
0x1a34   :  { %972 = vrot.lane.b32.xlu0 %v1964_v45, %s1991_s1 }
0x1a37   :  { %v2305_v57 = vpop.permute.xlu1 %977 }
0x1a38   :  { %990 = vrot.lane.b32.xlu0 %v899_v23, %s1992_s2 }
0x1a3b   :  { %v2311_v63 = vpop.permute.xlu1 %1004 }
0x1a3c   :  { %1382 = vrot.lane.b32.xlu0 %v1381_v37, %s1992_s2 }
0x1a3f   :  { %v1370_v8 = vpop.permute.xlu1 %1369 }
0x1a40   :  { %999 = vrot.lane.b32.xlu0 %v2243_v53, %s1992_s2  ;;  %v1993_v53 = vmov 1966171168  }
0x1a41   :  { %v1028_v27 = vunpack.c.l.s4 %v1993_v53 }
0x1a43   :  { %v1029_v59 = vunpack.c.0.s8 %v1028_v27  ;;  %v1397_v29 = vpop.permute.xlu1 %1396 }
0x1a44   :  { %1391 = vrot.lane.b32.xlu0 %v1390_v56, %s1992_s2 }
0x1a45   :  { %v2315_v6 = vsub.s32 %v1029_v59, %v1031_v60 }
0x1a48   :  { %1008 = vrot.lane.b32.xlu0 %v2226_v32, %s1992_s2 }
0x1a4c   :  { %1373 = vrot.lane.b32.xlu0 %v1372_v4, %s1992_s2 }
0x1a50   :  { %1400 = vrot.lane.b32.xlu0 %v1399_v46, %s1992_s2 }
0x1aa6   :  { %v973_v50 = vpop.permute.xlu0 %972 }
0x1aa7   :  { %v975_v51 = vmul.f32 %v1962_v42, %v973_v50 }
0x1aa9   :  { %981 = vrot.lane.b32.xlu0 %v975_v51, %s1992_s2 }
0x1aaa   :  { %v2301_v55 = vpop.permute.xlu0 %990 }
0x1aad   :  { %1017 = vrot.lane.b32.xlu0 %v2205_v54, %s1992_s2 }
0x1aae   :  { %v1383_v32 = vpop.permute.xlu0 %1382 }
0x1aaf   :  { %v1385_v3 = vsel %vm206_vm4, %v1379_v48, %v1383_v32  ;;  %v1406_v54 = vsel %vm206_vm4, %v1383_v32, %v1379_v48 }
0x1ab0   :  { %v1440_v7 = vrot.slane %v1385_v3, %v2315_v6  ;;  %v1555_v13 = vrot.slane %v1406_v54, %v2315_v6 }
0x1ab2   :  { %v2307_v58 = vpop.permute.xlu0 %999  ;;  %v1441_v15 = vcombine.high %v1440_v7, %v1440_v7  ;;  %v1448_v18 = vrot.slane %v1440_v7, %v2315_v6  ;;  %v1556_v23 = vcombine.high %v1555_v13, %v1555_v13  ;;  %v1563_v30 = vrot.slane %v1555_v13, %v2315_v6 }
0x1ab4   :  { %v1455_v25 = vrot.slane %v1441_v15, %v2315_v6  ;;  %v1597_v33 = vrot.slane %v1448_v18, %v2328_v16  ;;  %v1570_v42 = vrot.slane %v1556_v23, %v2315_v6 }
0x1ab6   :  { %v1392_v5 = vpop.permute.xlu0 %1391  ;;  %v1601_v43 = vrot.slane %v1455_v25, %v2328_v16 }
0x1ab7   :  { %v1394_v10 = vsel %vm206_vm4, %v1388_v52, %v1392_v5  ;;  %v1405_v14 = vsel %vm206_vm4, %v1392_v5, %v1388_v52 }
0x1ab8   :  { %v1463_v62 = vrot.slane %v1394_v10, %v2315_v6  ;;  %v1532_v20 = vrot.slane %v1405_v14, %v2315_v6  ;;  %v1647_v10 = vrot.slane %v1563_v30, %v2328_v16  ;;  %v1024_v30 = vsel %vm206_vm4, %v2301_v55, %v2296_v47 }
0x1aba   :  { %v2322_v12 = vpop.permute.xlu0 %1008  ;;  %v1464_v26 = vcombine.high %v1463_v62, %v1463_v62  ;;  %v1471_v38 = vrot.slane %v1463_v62, %v2315_v6  ;;  %v1533_v39 = vcombine.high %v1532_v20, %v1532_v20  ;;  %v1540_v61 = vrot.slane %v1532_v20, %v2315_v6 }
0x1abc   :  { %v1478_v2 = vrot.slane %v1464_v26, %v2315_v6  ;;  %v1547_v56 = vrot.slane %v1533_v39, %v2315_v6  ;;  %v1607_v4 = vrot.slane %v1471_v38, %v2328_v16  ;;  %v1637_v27 = vrot.slane %v1540_v61, %v2328_v16 }
0x1abd   :  { %v1023_v39 = vsel %vm206_vm4, %v2307_v58, %v2298_v49 }
0x1abe   :  { %v1374_v19 = vpop.permute.xlu0 %1373  ;;  %v1611_v53 = vrot.slane %v1478_v2, %v2328_v16  ;;  %v1641_v14 = vrot.slane %v1547_v56, %v2328_v16 }
0x1abf   :  { %v1376_v21 = vsel %vm206_vm4, %v1370_v8, %v1374_v19  ;;  %v1407_v22 = vsel %vm206_vm4, %v1374_v19, %v1370_v8  ;;  %v1651_v19 = vrot.slane %v1570_v42, %v2328_v16 }
0x1ac0   :  { %v1415_v24 = vrot.slane %v1376_v21, %v2315_v6  ;;  %v1578_v28 = vrot.slane %v1407_v22, %v2315_v6 }
0x1ac2   :  { %v1416_v34 = vcombine.high %v1415_v24, %v1415_v24  ;;  %v1423_v35 = vrot.slane %v1415_v24, %v2315_v6  ;;  %v1401_v36 = vpop.permute.xlu0 %1400  ;;  %v1579_v31 = vcombine.high %v1578_v28, %v1578_v28  ;;  %v1586_v46 = vrot.slane %v1578_v28, %v2315_v6 }
0x1ac3   :  { %v1403_v40 = vsel %vm206_vm4, %v1397_v29, %v1401_v36  ;;  %v1404_v41 = vsel %vm206_vm4, %v1401_v36, %v1397_v29  ;;  %v993_v28 = vsel %vm206_vm4, %v2296_v47, %v2301_v55  ;;  %v1002_v29 = vsel %vm206_vm4, %v2298_v49, %v2307_v58 }
0x1ac4   :  { %v1430_v11 = vrot.slane %v1416_v34, %v2315_v6  ;;  %v1486_v1 = vrot.slane %v1403_v40, %v2315_v6  ;;  %v1509_v17 = vrot.slane %v1404_v41, %v2315_v6  ;;  %v1664_v44 = vsel %vm1340_vm5, %v1423_v35, %v1597_v33 }
0x1ac5   :  { %v1666_v59 = vsel %vm1343_vm6, %v1664_v44, %v1607_v4  ;;  %v1593_v3 = vrot.slane %v1579_v31, %v2315_v6  ;;  %v1657_v15 = vrot.slane %v1586_v46, %v2328_v16  ;;  %v1058_v33 = vrot.slane %v993_v28, %v2315_v6 }
0x1ac6   :  { %v1487_v0 = vcombine.high %v1486_v1, %v1486_v1  ;;  %v1494_v45 = vrot.slane %v1486_v1, %v2315_v6  ;;  %v1510_v37 = vcombine.high %v1509_v17, %v1509_v17  ;;  %v1517_v48 = vrot.slane %v1509_v17, %v2315_v6 }
0x1ac7   :  { %v1665_v50 = vsel %vm1340_vm5, %v1430_v11, %v1601_v43  ;;  %v1661_v22 = vrot.slane %v1593_v3, %v2328_v16  ;;  %v1081_v34 = vrot.slane %v1002_v29, %v2315_v6  ;;  %v1219_v35 = vrot.slane %v1024_v30, %v2315_v6 }
0x1ac8   :  { %v1501_v51 = vrot.slane %v1487_v0, %v2315_v6  ;;  %v1524_v52 = vrot.slane %v1510_v37, %v2315_v6  ;;  %v1617_v32 = vrot.slane %v1494_v45, %v2328_v16  ;;  %v1627_v60 = vrot.slane %v1517_v48, %v2328_v16 }
0x1ac9   :  { %v1667_v8 = vsel %vm1343_vm6, %v1665_v50, %v1611_v53  ;;  %v1011_v36 = vsel %vm206_vm4, %v2311_v63, %v2322_v12  ;;  %v1059_v38 = vcombine.high %v1058_v33, %v1058_v33  ;;  %v1082_v40 = vcombine.high %v1081_v34, %v1081_v34 }
0x1aca   :  { %v1621_v5 = vrot.slane %v1501_v51, %v2328_v16  ;;  %v1631_v54 = vrot.slane %v1524_v52, %v2328_v16  ;;  %v1668_v7 = vsel %vm1346_vm7, %v1666_v59, %v1617_v32  ;;  %v1104_v47 = vrot.slane %v1011_v36, %v2315_v6  ;;  %v1014_v52 = vpop.permute.xlu1 %1013 }
0x1acb   :  { %v1670_v13 = vsel %vm1349_vm8, %v1668_v7, %v1627_v60  ;;  %v1220_v55 = vcombine.high %v1219_v35, %v1219_v35  ;;  %v1022_v41 = vsel %vm206_vm4, %v2322_v12, %v2311_v63  ;;  %v1066_v42 = vrot.slane %v1058_v33, %v2315_v6 }
0x1acc   :  { %v1669_v62 = vsel %vm1346_vm7, %v1667_v8, %v1621_v5  ;;  %v1672_v18 = vsel %vm1352_vm9, %v1670_v13, %v1637_v27  ;;  %v1073_v11 = vrot.slane %v1059_v38, %v2315_v6  ;;  %v2426_v1 = vrot.slane %v1023_v39, %v2315_v6 }
0x1acd   :  { %v1671_v20 = vsel %vm1349_vm8, %v1669_v62, %v1631_v54  ;;  %v1674_v21 = vsel %vm1355_vm10, %v1672_v18, %v1647_v10  ;;  %v1089_v17 = vrot.slane %v1081_v34, %v2315_v6  ;;  %v1096_v49 = vrot.slane %v1082_v40, %v2315_v6 }
0x1ace   :  { %v1673_v23 = vsel %vm1352_vm9, %v1671_v20, %v1641_v14  ;;  %v1676_v24 = vsel %vm1358_vm11, %v1674_v21, %v1657_v15  ;;  %v1105_v58 = vcombine.high %v1104_v47, %v1104_v47  ;;  %v1173_v43 = vrot.slane %v1022_v41, %v2315_v6 }
0x1acf   :  { %v1675_v25 = vsel %vm1355_vm10, %v1673_v23, %v1651_v19  ;;  %1678 = vst.msk [vmem:[%s2517_s5] sm:$0xff] %vm223_vm3, %v1676_v24  ;;  %v1227_v2 = vrot.slane %v1219_v35, %v2315_v6  ;;  %v1234_v61 = vrot.slane %v1220_v55, %v2315_v6  ;;  %v1263_v12 = vrot.slane %v1066_v42, %v2328_v16 }
0x1ad0   :  { %v1677_v26 = vsel %vm1358_vm11, %v1675_v25, %v1661_v22  ;;  %v1112_v31 = vrot.slane %v1104_v47, %v2315_v6  ;;  %v1267_v45 = vrot.slane %v1073_v11, %v2328_v16  ;;  %v1197_v37 = vcombine.high %v2426_v1, %v2426_v1 }
0x1ad1   :  { %1679 = vst.msk [vmem:[%s2517_s5 + $0x8] sm:$0xff] %vm223_vm3, %v1677_v26  ;;  %v1273_v46 = vrot.slane %v1089_v17, %v2328_v16  ;;  %v1277_v48 = vrot.slane %v1096_v49, %v2328_v16  ;;  %v1119_v50 = vrot.slane %v1105_v58, %v2315_v6  ;;  %v1174_v51 = vcombine.high %v1173_v43, %v1173_v43 }
0x1ad2   :  { %v1181_v60 = vrot.slane %v1173_v43, %v2315_v6  ;;  %v1283_v3 = vrot.slane %v1112_v31, %v2328_v16  ;;  %v1204_v26 = vrot.slane %v2426_v1, %v2315_v6  ;;  %v1211_v38 = vrot.slane %v1197_v37, %v2315_v6 }
0x1ad3   :  { %v1287_v14 = vrot.slane %v1119_v50, %v2328_v16  ;;  %v1188_v33 = vrot.slane %v1174_v51, %v2315_v6 }
0x1ad4   :  { %v1313_v40 = vrot.slane %v1181_v60, %v2328_v16  ;;  %v1323_v42 = vrot.slane %v1204_v26, %v2328_v16  ;;  %v1327_v49 = vrot.slane %v1211_v38, %v2328_v16 }
0x1ad5   :  { %v1317_v1 = vrot.slane %v1188_v33, %v2328_v16 }
0x1b1b   :  { %v982_v63 = vpop.permute.xlu0 %981 }
0x1b1c   :  { %v984_v44 = vsel %vm206_vm4, %v2305_v57, %v982_v63  ;;  %v1025_v0 = vsel %vm206_vm4, %v982_v63, %v2305_v57 }
0x1b1d   :  { %v1033_v56 = vrot.slane %v984_v44, %v2315_v6  ;;  %v1244_v4 = vrot.slane %v1025_v0, %v2315_v6 }
0x1b1f   :  { %v1034_v32 = vcombine.high %v1033_v56, %v1033_v56  ;;  %v1041_v57 = vrot.slane %v1033_v56, %v2315_v6  ;;  %v1245_v53 = vcombine.high %v1244_v4, %v1244_v4  ;;  %v1252_v27 = vrot.slane %v1244_v4, %v2315_v6  ;;  %v1018_v59 = vpop.permute.xlu0 %1017 }
0x1b20   :  { %v1020_v5 = vsel %vm206_vm4, %v1014_v52, %v1018_v59  ;;  %v1021_v54 = vsel %vm206_vm4, %v1018_v59, %v1014_v52 }
0x1b21   :  { %v1048_v7 = vrot.slane %v1034_v32, %v2315_v6  ;;  %v1259_v10 = vrot.slane %v1245_v53, %v2315_v6  ;;  %v1333_v8 = vrot.slane %v1252_v27, %v2328_v16  ;;  %v1341_v13 = vsel %vm1340_vm5, %v1041_v57, %v1263_v12 }
0x1b22   :  { %v1344_v15 = vsel %vm1343_vm6, %v1341_v13, %v1273_v46  ;;  %v1127_v62 = vrot.slane %v1020_v5, %v2315_v6  ;;  %v1150_v18 = vrot.slane %v1021_v54, %v2315_v6 }
0x1b23   :  { %v1337_v19 = vrot.slane %v1259_v10, %v2328_v16  ;;  %v1342_v9 = vsel %vm1340_vm5, %v1048_v7, %v1267_v45  ;;  %v1361_v20 = vsel %vm1340_vm5, %v1227_v2, %v1333_v8  ;;  %v1347_v21 = vsel %vm1346_vm7, %v1344_v15, %v1283_v3 }
0x1b24   :  { %v1345_v22 = vsel %vm1343_vm6, %v1342_v9, %v1277_v48  ;;  %1365 = vst.msk [vmem:[%s2516_s4 + $0x8] sm:$0x3] %vm1364_vm12, %v1361_v20  ;;  %v1128_v23 = vcombine.high %v1127_v62, %v1127_v62  ;;  %v1135_v24 = vrot.slane %v1127_v62, %v2315_v6  ;;  %v1151_v25 = vcombine.high %v1150_v18, %v1150_v18 }
0x1b25   :  { %v1362_v28 = vsel %vm1340_vm5, %v1234_v61, %v1337_v19  ;;  %v1348_v29 = vsel %vm1346_vm7, %v1345_v22, %v1287_v14  ;;  %v1158_v30 = vrot.slane %v1150_v18, %v2315_v6 }
0x1b26   :  { %1367 = vst.msk [vmem:[%s2516_s4 + $0x18] sm:$0x3] %vm1364_vm12, %v1362_v28  ;;  %v1142_v34 = vrot.slane %v1128_v23, %v2315_v6  ;;  %v1165_v35 = vrot.slane %v1151_v25, %v2315_v6  ;;  %v1293_v36 = vrot.slane %v1135_v24, %v2328_v16 }
0x1b27   :  { %v1303_v39 = vrot.slane %v1158_v30, %v2328_v16 }
0x1b28   :  { %v1297_v47 = vrot.slane %v1142_v34, %v2328_v16  ;;  %v1307_v55 = vrot.slane %v1165_v35, %v2328_v16  ;;  %v1350_v41 = vsel %vm1349_vm8, %v1347_v21, %v1293_v36 }
0x1b29   :  { %v1353_v11 = vsel %vm1352_vm9, %v1350_v41, %v1303_v39 }
0x1b2a   :  { %v1351_v17 = vsel %vm1349_vm8, %v1348_v29, %v1297_v47  ;;  %v1356_v6 = vsel %vm1355_vm10, %v1353_v11, %v1313_v40 }
0x1b2b   :  { %v1354_v58 = vsel %vm1352_vm9, %v1351_v17, %v1307_v55  ;;  %v1359_v43 = vsel %vm1358_vm11, %v1356_v6, %v1323_v42 }
0x1b2c   :  { %v1357_v2 = vsel %vm1355_vm10, %v1354_v58, %v1317_v1  ;;  %1363 = vst.msk [vmem:[%s2516_s4] sm:$0xff] %vm223_vm3, %v1359_v43 }
0x1b2d   :  { %v1360_v61 = vsel %vm1358_vm11, %v1357_v2, %v1327_v49 }
0x1b2e   :  { %1366 = vst.msk [vmem:[%s2516_s4 + $0x10] sm:$0xff] %vm223_vm3, %v1360_v61 }
0x1b2f   :  { %1688 = vsyncpa [#allocation3], 1 }

</bundles_post_ra>
